<compile_context>
chip_gen: v7x
topology: tpu7x:2x2x1
jax: 0.10.0
libtpu: 0.0.40
codegen_flags: <defaults>
</compile_context>

<pallas_src>
import jax
import jax.numpy as jnp
from jax.experimental import pallas as pl
from jax.experimental.pallas import tpu as pltpu


# Static conv config: (stem pool, 3x conv-block pools). Kernel sizes come from
# the weight shapes; keeping pools out of the params pytree keeps them static.
POOLS = (2, 4, 4, 4)


# ---------------------------------------------------------------------------
# Kernel 1: Conv1d(+bias) -> folded BatchNorm1d -> ReLU -> MaxPool1d
#   input is pre-im2col'd and pre-grouped by pool phase in the wrapper:
#   x_ref[0, j, i, k*Cin + c] = x_padded[i*pool + j + k, c]
# ---------------------------------------------------------------------------
def _conv_bn_relu_pool_kernel(x_ref, w_ref, b_ref, s_ref, t_ref, o_ref):
    # x_ref : (1, pool, Lout, K*Cin)  bf16 im2col input, grouped by pool phase
    # w_ref : (K*Cin, Cout)           bf16 conv weight (taps flattened into K)
    # b_ref : (1, Cout)  conv bias          (f32)
    # s_ref : (1, Cout)  BN scale = gamma/sqrt(var+eps)
    # t_ref : (1, Cout)  BN shift = beta - mean*scale
    # o_ref : (1, Lout, Cout)
    pool = x_ref.shape[1]

    def phase(j):
        y = jnp.dot(x_ref[0, j], w_ref[...],
                    preferred_element_type=jnp.float32)        # one MXU matmul
        return jnp.maximum((y + b_ref[...]) * s_ref[...] + t_ref[...], 0.0)

    pooled = phase(0)
    for j in range(1, pool):                 # MaxPool = elementwise VPU max
        pooled = jnp.maximum(pooled, phase(j))
    o_ref[0] = pooled.astype(o_ref.dtype)


def conv_bn_relu_pool(x, w, b, scale, shift, pool):
    B, L, Cin = x.shape
    K, _, Cout = w.shape
    pad = K // 2
    Lout = L // pool                          # MaxPool1d floors (like PyTorch)
    Lp = Lout * pool

    # Layout plumbing (wrapper/XLA side): 'same' padding + lane-packed im2col,
    # then regroup rows by pool phase so the kernel never needs strided reads.
    xb = x.astype(jnp.bfloat16)
    xp = jnp.pad(xb, ((0, 0), (pad, pad), (0, 0)))
    cols = jnp.concatenate([xp[:, k:k + L, :] for k in range(K)], axis=-1)
    phased = cols[:, :Lp, :].reshape(B, Lout, pool, K * Cin).transpose(0, 2, 1, 3)
    w2d = w.reshape(K * Cin, Cout).astype(jnp.bfloat16)

    return pl.pallas_call(
        _conv_bn_relu_pool_kernel,
        out_shape=jax.ShapeDtypeStruct((B, Lout, Cout), jnp.float32),
        grid=(B,),
        in_specs=[
            pl.BlockSpec((1, pool, Lout, K * Cin), lambda bb: (bb, 0, 0, 0)),
            pl.BlockSpec((K * Cin, Cout), lambda bb: (0, 0)),
            pl.BlockSpec((1, Cout), lambda bb: (0, 0)),
            pl.BlockSpec((1, Cout), lambda bb: (0, 0)),
            pl.BlockSpec((1, Cout), lambda bb: (0, 0)),
        ],
        out_specs=pl.BlockSpec((1, Lout, Cout), lambda bb: (bb, 0, 0)),
        compiler_params=pltpu.CompilerParams(dimension_semantics=("parallel",)),
    )(phased, w2d, b[None, :], scale[None, :], shift[None, :])


# ---------------------------------------------------------------------------
# Kernel 2: full DenseNet-style _dense_block (7 layers) + prediction head
#   (AdaptiveMaxPool1d(1) -> Linear -> Sigmoid), fused, single grid step.
#   The whole batch is packed into the matmul M dimension (M = B*L).
# ---------------------------------------------------------------------------
def _dense_block_pred_kernel(x_ref, nf_ref, nlast_ref, w1_ref, s1_ref, t1_ref,
                             w2_ref, s2_ref, t2_ref, pw_ref, pb_ref,
                             o_ref, feat_ref):
    # x_ref    : (M, c0)           conv features, M = B*L rows
    # nf_ref   : (M, 1)            1.0 unless row is the FIRST position of a batch elem
    # nlast_ref: (M, 1)            1.0 unless row is the LAST position of a batch elem
    # w1_ref   : (nl, cpad, 64)    1x1 conv weights (bf16, zero-padded rows)
    # s1/t1    : (nl, cpad)        folded BN1 scale/shift (zero beyond cin)
    # w2_ref   : (nl, 64, 3*g)     3 conv2 taps fused along N (bf16)
    # s2/t2    : (nl, 64)          folded BN2 scale/shift
    # pw_ref   : (cpad, N) bf16    prediction Linear weight (zero-padded rows)
    # pb_ref   : (1, N)            prediction Linear bias
    # o_ref    : (B, N)            sigmoid(pred)
    # feat_ref : (M, cpad) f32     VMEM scratch: running channel concatenation
    M, c0 = x_ref.shape
    n_layers = w1_ref.shape[0]
    growth = w2_ref.shape[2] // 3
    B = o_ref.shape[0]
    L = M // B

    # concat buffer: [x (c0) | layer0 (g) | ... | layer6 (g) | zero pad]
    feat_ref[...] = jnp.zeros_like(feat_ref)
    feat_ref[:, :c0] = x_ref[...]

    nf = nf_ref[...]
    nlast = nlast_ref[...]
    zrow = jnp.zeros((1, growth), jnp.float32)

    for i in range(n_layers):
        f = feat_ref[...]                                   # (M, cpad)
        # norm1 -> relu1 over the full (zero-padded) concat, then conv1 (1x1)
        # as a single matmul: padded/unwritten columns have scale=shift=0.
        h = jnp.maximum(f * s1_ref[i:i + 1, :] + t1_ref[i:i + 1, :], 0.0)
        mid = jnp.dot(h.astype(jnp.bfloat16), w1_ref[i],
                      preferred_element_type=jnp.float32)   # (M, 64)
        # norm2 -> relu2
        h2 = jnp.maximum(mid * s2_ref[i:i + 1, :] + t2_ref[i:i + 1, :], 0.0)
        # conv2 (k=3, pad=1, no bias): one fused matmul for the 3 taps, then
        # combine with +/-1 row shifts (concat + boundary masks, no MXU work).
        z = jnp.dot(h2.astype(jnp.bfloat16), w2_ref[i],
                    preferred_element_type=jnp.float32)     # (M, 3*growth)
        c_l = z[:, :growth]
        c_m = z[:, growth:2 * growth]
        c_r = z[:, 2 * growth:]
        down = jnp.concatenate([zrow, c_l[:-1, :]], axis=0) * nf     # x[l-1] tap
        up = jnp.concatenate([c_r[1:, :], zrow], axis=0) * nlast     # x[l+1] tap
        # TODO(synk): reference calls F.dropout(p=0.25) with default training=True
        # (stochastic even at eval); omitted for deterministic inference.
        off = c0 + i * growth
        feat_ref[:, off:off + growth] = c_m + down + up

    # AdaptiveMaxPool1d(1) -> Flatten -> Linear -> Sigmoid, for the whole batch.
    feats = feat_ref[...]
    fmax = jnp.concatenate(
        [jnp.max(feats[bb * L:(bb + 1) * L, :], axis=0, keepdims=True)
         for bb in range(B)], axis=0)                       # (B, cpad)
    logits = jnp.dot(fmax.astype(jnp.bfloat16), pw_ref[...],
                     preferred_element_type=jnp.float32) + pb_ref[...]
    o_ref[...] = (1.0 / (1.0 + jnp.exp(-logits))).astype(o_ref.dtype)


def dense_block_pred(x, w1, s1, t1, w2, s2, t2, pred_w, pred_b):
    B, L, c0 = x.shape
    nl, cpad, cmid = w1.shape
    growth = w2.shape[-1]
    cfin, N = pred_w.shape
    M = B * L

    xf = x.reshape(M, c0)
    rows = jnp.arange(M, dtype=jnp.int32) % L
    not_first = (rows != 0).astype(jnp.float32)[:, None]
    not_last = (rows != L - 1).astype(jnp.float32)[:, None]

    # Fuse the 3 conv2 taps along N: w2cat[i][:, k*g + j] = w2[i, k, :, j]
    w2cat = w2.transpose(0, 2, 1, 3).reshape(nl, cmid, 3 * growth)
    w2cat = w2cat.astype(jnp.bfloat16)
    w1b = w1.astype(jnp.bfloat16)
    pwp = jnp.pad(pred_w, ((0, cpad - cfin), (0, 0))).astype(jnp.bfloat16)

    return pl.pallas_call(
        _dense_block_pred_kernel,
        out_shape=jax.ShapeDtypeStruct((B, N), jnp.float32),
        grid=(1,),
        in_specs=[
            pl.BlockSpec((M, c0), lambda i: (0, 0)),
            pl.BlockSpec((M, 1), lambda i: (0, 0)),
            pl.BlockSpec((M, 1), lambda i: (0, 0)),
            pl.BlockSpec((nl, cpad, cmid), lambda i: (0, 0, 0)),
            pl.BlockSpec((nl, cpad), lambda i: (0, 0)),
            pl.BlockSpec((nl, cpad), lambda i: (0, 0)),
            pl.BlockSpec((nl, cmid, 3 * growth), lambda i: (0, 0, 0)),
            pl.BlockSpec((nl, cmid), lambda i: (0, 0)),
            pl.BlockSpec((nl, cmid), lambda i: (0, 0)),
            pl.BlockSpec((cpad, N), lambda i: (0, 0)),
            pl.BlockSpec((1, N), lambda i: (0, 0)),
        ],
        out_specs=pl.BlockSpec((B, N), lambda i: (0, 0)),
        scratch_shapes=[pltpu.VMEM((M, cpad), jnp.float32)],
    )(xf, not_first, not_last, w1b, s1, t1, w2cat, s2, t2, pwp, pred_b[None, :])


# ---------------------------------------------------------------------------
# Full BasenjiV1 forward (crop_len = 0, inference)
# ---------------------------------------------------------------------------
def basenji_v1_forward(x, params):
    h = x.astype(jnp.float32)
    for (w, b, sc, sh), pool in zip(params["convs"], POOLS):
        h = conv_bn_relu_pool(h, w, b, sc, sh, pool)         # stem + 3 conv layers
    w1, s1, t1, w2, s2, t2 = params["dense"]
    return dense_block_pred(h, w1, s1, t1, w2, s2, t2,
                            params["pred_w"], params["pred_b"])


# ---------------------------------------------------------------------------
# Deterministic parameter construction (BatchNorm folded to affine, inference)
# ---------------------------------------------------------------------------
def _fold_bn(key, c):
    k1, k2, k3, k4 = jax.random.split(key, 4)
    gamma = 1.0 + 0.1 * jax.random.normal(k1, (c,), jnp.float32)
    beta = 0.1 * jax.random.normal(k2, (c,), jnp.float32)
    mean = 0.1 * jax.random.normal(k3, (c,), jnp.float32)
    var = 0.5 + jnp.abs(jax.random.normal(k4, (c,), jnp.float32))
    scale = gamma * jax.lax.rsqrt(var + 1e-5)
    shift = beta - mean * scale
    return scale, shift


def init_params(key, n_cells):
    p = {"convs": []}
    # stem: Conv1d(4->64, k=15) BN ReLU MaxPool(2)
    # conv block: 64->72->81->91, k=5, MaxPool(4)   (pools live in POOLS)
    conv_cfg = [(4, 64, 15), (64, 72, 5), (72, 81, 5), (81, 91, 5)]
    for (cin, cout, K) in conv_cfg:
        key, k1, k2, k3 = jax.random.split(key, 4)
        w = 0.1 * jax.random.normal(k1, (K, cin, cout), jnp.float32)
        b = 0.1 * jax.random.normal(k2, (cout,), jnp.float32)
        sc, sh = _fold_bn(k3, cout)
        p["convs"].append((w, b, sc, sh))

    # dense block: 7 layers, c0=91, growth=32, bn_size=2 -> mid=64
    nl, c0, growth, cmid = 7, 91, 32, 64
    cfin = c0 + nl * growth                                  # 315
    cpad = ((cfin + 127) // 128) * 128                       # 384 (lane aligned)
    w1 = jnp.zeros((nl, cpad, cmid), jnp.float32)
    s1 = jnp.zeros((nl, cpad), jnp.float32)
    t1 = jnp.zeros((nl, cpad), jnp.float32)
    s2 = jnp.zeros((nl, cmid), jnp.float32)
    t2 = jnp.zeros((nl, cmid), jnp.float32)
    key, kw2 = jax.random.split(key)
    w2 = 0.05 * jax.random.normal(kw2, (nl, 3, cmid, growth), jnp.float32)
    for i in range(nl):
        cin = c0 + i * growth
        key, k1, k2, k3 = jax.random.split(key, 4)
        w1 = w1.at[i, :cin, :].set(
            0.05 * jax.random.normal(k1, (cin, cmid), jnp.float32))
        a, bsh = _fold_bn(k2, cin)
        s1 = s1.at[i, :cin].set(a)          # padded cols stay exactly 0
        t1 = t1.at[i, :cin].set(bsh)
        a2, b2 = _fold_bn(k3, cmid)
        s2 = s2.at[i].set(a2)
        t2 = t2.at[i].set(b2)
    p["dense"] = (w1, s1, t1, w2, s2, t2)

    # pred: Linear(315 -> n_cells) + Sigmoid
    key, k1, k2 = jax.random.split(key, 3)
    p["pred_w"] = 0.05 * jax.random.normal(k1, (cfin, n_cells), jnp.float32)
    p["pred_b"] = 0.1 * jax.random.normal(k2, (n_cells,), jnp.float32)
    return p


# ---------------------------------------------------------------------------
# Pure-JAX reference (mirrors the PyTorch forward, inference semantics,
# same bf16-operand / f32-accumulate matmul rounding as the kernels)
# ---------------------------------------------------------------------------
def _ref_forward(x, params):
    h = x.astype(jnp.float32)
    for (w, b, sc, sh), pool in zip(params["convs"], POOLS):
        K = w.shape[0]
        pad = K // 2
        B, L, _ = h.shape
        Cout = w.shape[2]
        xp = jnp.pad(h, ((0, 0), (pad, pad), (0, 0)))
        wb = w.astype(jnp.bfloat16)
        acc = jnp.zeros((B, L, Cout), jnp.float32)
        for k in range(K):
            acc = acc + jnp.einsum("blc,cd->bld",
                                   xp[:, k:k + L, :].astype(jnp.bfloat16), wb[k],
                                   preferred_element_type=jnp.float32)
        y = jnp.maximum((acc + b) * sc + sh, 0.0)
        Lout = L // pool
        h = jnp.max(y[:, :Lout * pool].reshape(B, Lout, pool, Cout), axis=2)

    w1, s1, t1, w2, s2, t2 = params["dense"]
    n_layers = w1.shape[0]
    c0 = h.shape[-1]
    growth = w2.shape[-1]
    feats = h
    for i in range(n_layers):
        cin = c0 + i * growth
        a = jnp.maximum(feats * s1[i, :cin] + t1[i, :cin], 0.0)
        mid = jnp.einsum("blc,cd->bld", a.astype(jnp.bfloat16),
                         w1[i, :cin, :].astype(jnp.bfloat16),
                         preferred_element_type=jnp.float32)
        h2 = jnp.maximum(mid * s2[i] + t2[i], 0.0)
        B, L, _ = h2.shape
        xp = jnp.pad(h2, ((0, 0), (1, 1), (0, 0)))
        new = jnp.zeros((B, L, growth), jnp.float32)
        for k in range(3):
            new = new + jnp.einsum("blc,cd->bld",
                                   xp[:, k:k + L, :].astype(jnp.bfloat16),
                                   w2[i, k].astype(jnp.bfloat16),
                                   preferred_element_type=jnp.float32)
        feats = jnp.concatenate([feats, new], axis=-1)

    m = jnp.max(feats, axis=1)
    z = jnp.dot(m.astype(jnp.bfloat16), params["pred_w"].astype(jnp.bfloat16),
                preferred_element_type=jnp.float32) + params["pred_b"]
    return 1.0 / (1.0 + jnp.exp(-z))


if __name__ == "__main__":
    B, L_in, n_cells = 2, 256, 64          # small shapes (real model: L=1344, n_cells=2034)
    key = jax.random.PRNGKey(0)
    kx, kp = jax.random.split(key)
    # input_ids: (B, L, 4) channel-last (the PyTorch forward permutes to NCL itself)
    x = jax.random.normal(kx, (B, L_in, 4), jnp.float32)
    params = init_params(kp, n_cells)

    fwd = jax.jit(basenji_v1_forward)
    out = jax.block_until_ready(fwd(x, params))
    assert out.shape == (B, n_cells), out.shape
    assert bool(jnp.all(jnp.isfinite(out))), "non-finite output"

    ref = jax.block_until_ready(_ref_forward(x, params))
    err = float(jnp.max(jnp.abs(out - ref)))
    assert err < 5e-3, f"mismatch vs pure-JAX reference: {err}"
    print("KERNEL_OK")
</pallas_src>

<mosaic_0001>
module attributes {stable_mosaic.version = 11 : i64} {
  func.func @_conv_bn_relu_pool_kernel(%arg0: i32, %arg1: memref<1x2x128x60xbf16, #tpu.memory_space<vmem>>, %arg2: memref<60x64xbf16, #tpu.memory_space<vmem>>, %arg3: memref<1x64xf32, #tpu.memory_space<vmem>>, %arg4: memref<1x64xf32, #tpu.memory_space<vmem>>, %arg5: memref<1x64xf32, #tpu.memory_space<vmem>>, %arg6: memref<1x128x64xf32, #tpu.memory_space<vmem>>) attributes {dimension_semantics = [#tpu.dimension_semantics<parallel>], iteration_bounds = array<i64: 2>, scalar_prefetch = 0 : i64, scratch_operands = 0 : i64, tpu.core_type = #tpu.core_type<tc>, window_params = [{transform_indices = @transform_0, window_bounds = array<i64: 1, 2, 128, 60>}, {pipeline_mode = #tpu.pipeline_mode<synchronous>, transform_indices = @transform_1, window_bounds = array<i64: 60, 64>}, {pipeline_mode = #tpu.pipeline_mode<synchronous>, transform_indices = @transform_2, window_bounds = array<i64: 1, 64>}, {pipeline_mode = #tpu.pipeline_mode<synchronous>, transform_indices = @transform_3, window_bounds = array<i64: 1, 64>}, {pipeline_mode = #tpu.pipeline_mode<synchronous>, transform_indices = @transform_4, window_bounds = array<i64: 1, 64>}, {transform_indices = @transform_5, window_bounds = array<i64: 1, 128, 64>}]} {
    %c0 = arith.constant 0 : index
    %c0_0 = arith.constant 0 : index
    %c0_1 = arith.constant 0 : index
    %c0_2 = arith.constant 0 : index
    %0 = vector.load %arg1[%c0, %c0_0, %c0_1, %c0_2] : memref<1x2x128x60xbf16, #tpu.memory_space<vmem>>, vector<1x1x128x60xbf16>
    %1 = vector.shape_cast %0 : vector<1x1x128x60xbf16> to vector<128x60xbf16>
    %c0_3 = arith.constant 0 : index
    %c0_4 = arith.constant 0 : index
    %2 = vector.load %arg2[%c0_3, %c0_4] : memref<60x64xbf16, #tpu.memory_space<vmem>>, vector<60x64xbf16>
    %cst = arith.constant dense<0.000000e+00> : vector<128x64xf32>
    %3 = tpu.matmul %1, %2, %cst {dimension_numbers = #tpu.dot_dimension_numbers<[1], [0], [0], [1], [0, 0, 1, 1], [], []>} : vector<128x60xbf16>, vector<60x64xbf16>, vector<128x64xf32> -> vector<128x64xf32>
    %c0_5 = arith.constant 0 : index
    %c0_6 = arith.constant 0 : index
    %4 = vector.load %arg3[%c0_5, %c0_6] : memref<1x64xf32, #tpu.memory_space<vmem>>, vector<1x64xf32>
    %5 = vector.broadcast %4 : vector<1x64xf32> to vector<128x64xf32>
    %6 = arith.addf %3, %5 : vector<128x64xf32>
    %c0_7 = arith.constant 0 : index
    %c0_8 = arith.constant 0 : index
    %7 = vector.load %arg4[%c0_7, %c0_8] : memref<1x64xf32, #tpu.memory_space<vmem>>, vector<1x64xf32>
    %8 = vector.broadcast %7 : vector<1x64xf32> to vector<128x64xf32>
    %9 = arith.mulf %6, %8 : vector<128x64xf32>
    %c0_9 = arith.constant 0 : index
    %c0_10 = arith.constant 0 : index
    %10 = vector.load %arg5[%c0_9, %c0_10] : memref<1x64xf32, #tpu.memory_space<vmem>>, vector<1x64xf32>
    %11 = vector.broadcast %10 : vector<1x64xf32> to vector<128x64xf32>
    %12 = arith.addf %9, %11 : vector<128x64xf32>
    %cst_11 = arith.constant 0.000000e+00 : f32
    %13 = vector.broadcast %cst_11 : f32 to vector<128x64xf32>
    %14 = arith.maximumf %12, %13 : vector<128x64xf32>
    %c0_12 = arith.constant 0 : index
    %c1 = arith.constant 1 : index
    %c0_13 = arith.constant 0 : index
    %c0_14 = arith.constant 0 : index
    %15 = vector.load %arg1[%c0_12, %c1, %c0_13, %c0_14] : memref<1x2x128x60xbf16, #tpu.memory_space<vmem>>, vector<1x1x128x60xbf16>
    %16 = vector.shape_cast %15 : vector<1x1x128x60xbf16> to vector<128x60xbf16>
    %c0_15 = arith.constant 0 : index
    %c0_16 = arith.constant 0 : index
    %17 = vector.load %arg2[%c0_15, %c0_16] : memref<60x64xbf16, #tpu.memory_space<vmem>>, vector<60x64xbf16>
    %cst_17 = arith.constant dense<0.000000e+00> : vector<128x64xf32>
    %18 = tpu.matmul %16, %17, %cst_17 {dimension_numbers = #tpu.dot_dimension_numbers<[1], [0], [0], [1], [0, 0, 1, 1], [], []>} : vector<128x60xbf16>, vector<60x64xbf16>, vector<128x64xf32> -> vector<128x64xf32>
    %c0_18 = arith.constant 0 : index
    %c0_19 = arith.constant 0 : index
    %19 = vector.load %arg3[%c0_18, %c0_19] : memref<1x64xf32, #tpu.memory_space<vmem>>, vector<1x64xf32>
    %20 = vector.broadcast %19 : vector<1x64xf32> to vector<128x64xf32>
    %21 = arith.addf %18, %20 : vector<128x64xf32>
    %c0_20 = arith.constant 0 : index
    %c0_21 = arith.constant 0 : index
    %22 = vector.load %arg4[%c0_20, %c0_21] : memref<1x64xf32, #tpu.memory_space<vmem>>, vector<1x64xf32>
    %23 = vector.broadcast %22 : vector<1x64xf32> to vector<128x64xf32>
    %24 = arith.mulf %21, %23 : vector<128x64xf32>
    %c0_22 = arith.constant 0 : index
    %c0_23 = arith.constant 0 : index
    %25 = vector.load %arg5[%c0_22, %c0_23] : memref<1x64xf32, #tpu.memory_space<vmem>>, vector<1x64xf32>
    %26 = vector.broadcast %25 : vector<1x64xf32> to vector<128x64xf32>
    %27 = arith.addf %24, %26 : vector<128x64xf32>
    %cst_24 = arith.constant 0.000000e+00 : f32
    %28 = vector.broadcast %cst_24 : f32 to vector<128x64xf32>
    %29 = arith.maximumf %27, %28 : vector<128x64xf32>
    %30 = arith.maximumf %14, %29 : vector<128x64xf32>
    %c0_25 = arith.constant 0 : index
    %c0_26 = arith.constant 0 : index
    %c0_27 = arith.constant 0 : index
    %31 = vector.load %arg6[%c0_25, %c0_26, %c0_27] : memref<1x128x64xf32, #tpu.memory_space<vmem>>, vector<1x128x64xf32>
    %32 = vector.shape_cast %31 : vector<1x128x64xf32> to vector<128x64xf32>
    %33 = vector.shape_cast %30 : vector<128x64xf32> to vector<1x128x64xf32>
    tpu.vector_store %arg6[%c0_25, %c0_26, %c0_27], %33 {strides = array<i32>} : memref<1x128x64xf32, #tpu.memory_space<vmem>>, vector<1x128x64xf32>,
    return
  }
  func.func @transform_0(%arg0: i32) -> (i32, i32, i32, i32) {
    %c0_i32 = arith.constant 0 : i32
    %c0_i32_0 = arith.constant 0 : i32
    %c0_i32_1 = arith.constant 0 : i32
    %c0_i32_2 = arith.constant 0 : i32
    return %arg0, %c0_i32, %c0_i32_0, %c0_i32_1 : i32, i32, i32, i32
  }
  func.func @transform_1(%arg0: i32) -> (i32, i32) {
    %c0_i32 = arith.constant 0 : i32
    %c0_i32_0 = arith.constant 0 : i32
    %c0_i32_1 = arith.constant 0 : i32
    return %c0_i32, %c0_i32_0 : i32, i32
  }
  func.func @transform_2(%arg0: i32) -> (i32, i32) {
    %c0_i32 = arith.constant 0 : i32
    %c0_i32_0 = arith.constant 0 : i32
    %c0_i32_1 = arith.constant 0 : i32
    return %c0_i32, %c0_i32_0 : i32, i32
  }
  func.func @transform_3(%arg0: i32) -> (i32, i32) {
    %c0_i32 = arith.constant 0 : i32
    %c0_i32_0 = arith.constant 0 : i32
    %c0_i32_1 = arith.constant 0 : i32
    return %c0_i32, %c0_i32_0 : i32, i32
  }
  func.func @transform_4(%arg0: i32) -> (i32, i32) {
    %c0_i32 = arith.constant 0 : i32
    %c0_i32_0 = arith.constant 0 : i32
    %c0_i32_1 = arith.constant 0 : i32
    return %c0_i32, %c0_i32_0 : i32, i32
  }
  func.func @transform_5(%arg0: i32) -> (i32, i32, i32) {
    %c0_i32 = arith.constant 0 : i32
    %c0_i32_0 = arith.constant 0 : i32
    %c0_i32_1 = arith.constant 0 : i32
    return %arg0, %c0_i32, %c0_i32_0 : i32, i32, i32
  }
}

module attributes {stable_mosaic.version = 11 : i64} {
  func.func @_conv_bn_relu_pool_kernel(%arg0: i32, %arg1: memref<1x4x32x320xbf16, #tpu.memory_space<vmem>>, %arg2: memref<320x72xbf16, #tpu.memory_space<vmem>>, %arg3: memref<1x72xf32, #tpu.memory_space<vmem>>, %arg4: memref<1x72xf32, #tpu.memory_space<vmem>>, %arg5: memref<1x72xf32, #tpu.memory_space<vmem>>, %arg6: memref<1x32x72xf32, #tpu.memory_space<vmem>>) attributes {dimension_semantics = [#tpu.dimension_semantics<parallel>], iteration_bounds = array<i64: 2>, scalar_prefetch = 0 : i64, scratch_operands = 0 : i64, tpu.core_type = #tpu.core_type<tc>, window_params = [{transform_indices = @transform_0, window_bounds = array<i64: 1, 4, 32, 320>}, {pipeline_mode = #tpu.pipeline_mode<synchronous>, transform_indices = @transform_1, window_bounds = array<i64: 320, 72>}, {pipeline_mode = #tpu.pipeline_mode<synchronous>, transform_indices = @transform_2, window_bounds = array<i64: 1, 72>}, {pipeline_mode = #tpu.pipeline_mode<synchronous>, transform_indices = @transform_3, window_bounds = array<i64: 1, 72>}, {pipeline_mode = #tpu.pipeline_mode<synchronous>, transform_indices = @transform_4, window_bounds = array<i64: 1, 72>}, {transform_indices = @transform_5, window_bounds = array<i64: 1, 32, 72>}]} {
    %c0 = arith.constant 0 : index
    %c0_0 = arith.constant 0 : index
    %c0_1 = arith.constant 0 : index
    %c0_2 = arith.constant 0 : index
    %0 = vector.load %arg1[%c0, %c0_0, %c0_1, %c0_2] : memref<1x4x32x320xbf16, #tpu.memory_space<vmem>>, vector<1x1x32x320xbf16>
    %1 = vector.shape_cast %0 : vector<1x1x32x320xbf16> to vector<32x320xbf16>
    %c0_3 = arith.constant 0 : index
    %c0_4 = arith.constant 0 : index
    %2 = vector.load %arg2[%c0_3, %c0_4] : memref<320x72xbf16, #tpu.memory_space<vmem>>, vector<320x72xbf16>
    %cst = arith.constant dense<0.000000e+00> : vector<32x72xf32>
    %3 = tpu.matmul %1, %2, %cst {dimension_numbers = #tpu.dot_dimension_numbers<[1], [0], [0], [1], [0, 0, 1, 1], [], []>} : vector<32x320xbf16>, vector<320x72xbf16>, vector<32x72xf32> -> vector<32x72xf32>
    %c0_5 = arith.constant 0 : index
    %c0_6 = arith.constant 0 : index
    %4 = vector.load %arg3[%c0_5, %c0_6] : memref<1x72xf32, #tpu.memory_space<vmem>>, vector<1x72xf32>
    %5 = vector.broadcast %4 : vector<1x72xf32> to vector<32x72xf32>
    %6 = arith.addf %3, %5 : vector<32x72xf32>
    %c0_7 = arith.constant 0 : index
    %c0_8 = arith.constant 0 : index
    %7 = vector.load %arg4[%c0_7, %c0_8] : memref<1x72xf32, #tpu.memory_space<vmem>>, vector<1x72xf32>
    %8 = vector.broadcast %7 : vector<1x72xf32> to vector<32x72xf32>
    %9 = arith.mulf %6, %8 : vector<32x72xf32>
    %c0_9 = arith.constant 0 : index
    %c0_10 = arith.constant 0 : index
    %10 = vector.load %arg5[%c0_9, %c0_10] : memref<1x72xf32, #tpu.memory_space<vmem>>, vector<1x72xf32>
    %11 = vector.broadcast %10 : vector<1x72xf32> to vector<32x72xf32>
    %12 = arith.addf %9, %11 : vector<32x72xf32>
    %cst_11 = arith.constant 0.000000e+00 : f32
    %13 = vector.broadcast %cst_11 : f32 to vector<32x72xf32>
    %14 = arith.maximumf %12, %13 : vector<32x72xf32>
    %c0_12 = arith.constant 0 : index
    %c1 = arith.constant 1 : index
    %c0_13 = arith.constant 0 : index
    %c0_14 = arith.constant 0 : index
    %15 = vector.load %arg1[%c0_12, %c1, %c0_13, %c0_14] : memref<1x4x32x320xbf16, #tpu.memory_space<vmem>>, vector<1x1x32x320xbf16>
    %16 = vector.shape_cast %15 : vector<1x1x32x320xbf16> to vector<32x320xbf16>
    %c0_15 = arith.constant 0 : index
    %c0_16 = arith.constant 0 : index
    %17 = vector.load %arg2[%c0_15, %c0_16] : memref<320x72xbf16, #tpu.memory_space<vmem>>, vector<320x72xbf16>
    %cst_17 = arith.constant dense<0.000000e+00> : vector<32x72xf32>
    %18 = tpu.matmul %16, %17, %cst_17 {dimension_numbers = #tpu.dot_dimension_numbers<[1], [0], [0], [1], [0, 0, 1, 1], [], []>} : vector<32x320xbf16>, vector<320x72xbf16>, vector<32x72xf32> -> vector<32x72xf32>
    %c0_18 = arith.constant 0 : index
    %c0_19 = arith.constant 0 : index
    %19 = vector.load %arg3[%c0_18, %c0_19] : memref<1x72xf32, #tpu.memory_space<vmem>>, vector<1x72xf32>
    %20 = vector.broadcast %19 : vector<1x72xf32> to vector<32x72xf32>
    %21 = arith.addf %18, %20 : vector<32x72xf32>
    %c0_20 = arith.constant 0 : index
    %c0_21 = arith.constant 0 : index
    %22 = vector.load %arg4[%c0_20, %c0_21] : memref<1x72xf32, #tpu.memory_space<vmem>>, vector<1x72xf32>
    %23 = vector.broadcast %22 : vector<1x72xf32> to vector<32x72xf32>
    %24 = arith.mulf %21, %23 : vector<32x72xf32>
    %c0_22 = arith.constant 0 : index
    %c0_23 = arith.constant 0 : index
    %25 = vector.load %arg5[%c0_22, %c0_23] : memref<1x72xf32, #tpu.memory_space<vmem>>, vector<1x72xf32>
    %26 = vector.broadcast %25 : vector<1x72xf32> to vector<32x72xf32>
    %27 = arith.addf %24, %26 : vector<32x72xf32>
    %cst_24 = arith.constant 0.000000e+00 : f32
    %28 = vector.broadcast %cst_24 : f32 to vector<32x72xf32>
    %29 = arith.maximumf %27, %28 : vector<32x72xf32>
    %30 = arith.maximumf %14, %29 : vector<32x72xf32>
    %c0_25 = arith.constant 0 : index
    %c2 = arith.constant 2 : index
    %c0_26 = arith.constant 0 : index
    %c0_27 = arith.constant 0 : index
    %31 = vector.load %arg1[%c0_25, %c2, %c0_26, %c0_27] : memref<1x4x32x320xbf16, #tpu.memory_space<vmem>>, vector<1x1x32x320xbf16>
    %32 = vector.shape_cast %31 : vector<1x1x32x320xbf16> to vector<32x320xbf16>
    %c0_28 = arith.constant 0 : index
    %c0_29 = arith.constant 0 : index
    %33 = vector.load %arg2[%c0_28, %c0_29] : memref<320x72xbf16, #tpu.memory_space<vmem>>, vector<320x72xbf16>
    %cst_30 = arith.constant dense<0.000000e+00> : vector<32x72xf32>
    %34 = tpu.matmul %32, %33, %cst_30 {dimension_numbers = #tpu.dot_dimension_numbers<[1], [0], [0], [1], [0, 0, 1, 1], [], []>} : vector<32x320xbf16>, vector<320x72xbf16>, vector<32x72xf32> -> vector<32x72xf32>
    %c0_31 = arith.constant 0 : index
    %c0_32 = arith.constant 0 : index
    %35 = vector.load %arg3[%c0_31, %c0_32] : memref<1x72xf32, #tpu.memory_space<vmem>>, vector<1x72xf32>
    %36 = vector.broadcast %35 : vector<1x72xf32> to vector<32x72xf32>
    %37 = arith.addf %34, %36 : vector<32x72xf32>
    %c0_33 = arith.constant 0 : index
    %c0_34 = arith.constant 0 : index
    %38 = vector.load %arg4[%c0_33, %c0_34] : memref<1x72xf32, #tpu.memory_space<vmem>>, vector<1x72xf32>
    %39 = vector.broadcast %38 : vector<1x72xf32> to vector<32x72xf32>
    %40 = arith.mulf %37, %39 : vector<32x72xf32>
    %c0_35 = arith.constant 0 : index
    %c0_36 = arith.constant 0 : index
    %41 = vector.load %arg5[%c0_35, %c0_36] : memref<1x72xf32, #tpu.memory_space<vmem>>, vector<1x72xf32>
    %42 = vector.broadcast %41 : vector<1x72xf32> to vector<32x72xf32>
    %43 = arith.addf %40, %42 : vector<32x72xf32>
    %cst_37 = arith.constant 0.000000e+00 : f32
    %44 = vector.broadcast %cst_37 : f32 to vector<32x72xf32>
    %45 = arith.maximumf %43, %44 : vector<32x72xf32>
    %46 = arith.maximumf %30, %45 : vector<32x72xf32>
    %c0_38 = arith.constant 0 : index
    %c3 = arith.constant 3 : index
    %c0_39 = arith.constant 0 : index
    %c0_40 = arith.constant 0 : index
    %47 = vector.load %arg1[%c0_38, %c3, %c0_39, %c0_40] : memref<1x4x32x320xbf16, #tpu.memory_space<vmem>>, vector<1x1x32x320xbf16>
    %48 = vector.shape_cast %47 : vector<1x1x32x320xbf16> to vector<32x320xbf16>
    %c0_41 = arith.constant 0 : index
    %c0_42 = arith.constant 0 : index
    %49 = vector.load %arg2[%c0_41, %c0_42] : memref<320x72xbf16, #tpu.memory_space<vmem>>, vector<320x72xbf16>
    %cst_43 = arith.constant dense<0.000000e+00> : vector<32x72xf32>
    %50 = tpu.matmul %48, %49, %cst_43 {dimension_numbers = #tpu.dot_dimension_numbers<[1], [0], [0], [1], [0, 0, 1, 1], [], []>} : vector<32x320xbf16>, vector<320x72xbf16>, vector<32x72xf32> -> vector<32x72xf32>
    %c0_44 = arith.constant 0 : index
    %c0_45 = arith.constant 0 : index
    %51 = vector.load %arg3[%c0_44, %c0_45] : memref<1x72xf32, #tpu.memory_space<vmem>>, vector<1x72xf32>
    %52 = vector.broadcast %51 : vector<1x72xf32> to vector<32x72xf32>
    %53 = arith.addf %50, %52 : vector<32x72xf32>
    %c0_46 = arith.constant 0 : index
    %c0_47 = arith.constant 0 : index
    %54 = vector.load %arg4[%c0_46, %c0_47] : memref<1x72xf32, #tpu.memory_space<vmem>>, vector<1x72xf32>
    %55 = vector.broadcast %54 : vector<1x72xf32> to vector<32x72xf32>
    %56 = arith.mulf %53, %55 : vector<32x72xf32>
    %c0_48 = arith.constant 0 : index
    %c0_49 = arith.constant 0 : index
    %57 = vector.load %arg5[%c0_48, %c0_49] : memref<1x72xf32, #tpu.memory_space<vmem>>, vector<1x72xf32>
    %58 = vector.broadcast %57 : vector<1x72xf32> to vector<32x72xf32>
    %59 = arith.addf %56, %58 : vector<32x72xf32>
    %cst_50 = arith.constant 0.000000e+00 : f32
    %60 = vector.broadcast %cst_50 : f32 to vector<32x72xf32>
    %61 = arith.maximumf %59, %60 : vector<32x72xf32>
    %62 = arith.maximumf %46, %61 : vector<32x72xf32>
    %c0_51 = arith.constant 0 : index
    %c0_52 = arith.constant 0 : index
    %c0_53 = arith.constant 0 : index
    %63 = vector.load %arg6[%c0_51, %c0_52, %c0_53] : memref<1x32x72xf32, #tpu.memory_space<vmem>>, vector<1x32x72xf32>
    %64 = vector.shape_cast %63 : vector<1x32x72xf32> to vector<32x72xf32>
    %65 = vector.shape_cast %62 : vector<32x72xf32> to vector<1x32x72xf32>
    tpu.vector_store %arg6[%c0_51, %c0_52, %c0_53], %65 {strides = array<i32>} : memref<1x32x72xf32, #tpu.memory_space<vmem>>, vector<1x32x72xf32>,
    return
  }
  func.func @transform_0(%arg0: i32) -> (i32, i32, i32, i32) {
    %c0_i32 = arith.constant 0 : i32
    %c0_i32_0 = arith.constant 0 : i32
    %c0_i32_1 = arith.constant 0 : i32
    %c0_i32_2 = arith.constant 0 : i32
    return %arg0, %c0_i32, %c0_i32_0, %c0_i32_1 : i32, i32, i32, i32
  }
  func.func @transform_1(%arg0: i32) -> (i32, i32) {
    %c0_i32 = arith.constant 0 : i32
    %c0_i32_0 = arith.constant 0 : i32
    %c0_i32_1 = arith.constant 0 : i32
    return %c0_i32, %c0_i32_0 : i32, i32
  }
  func.func @transform_2(%arg0: i32) -> (i32, i32) {
    %c0_i32 = arith.constant 0 : i32
    %c0_i32_0 = arith.constant 0 : i32
    %c0_i32_1 = arith.constant 0 : i32
    return %c0_i32, %c0_i32_0 : i32, i32
  }
  func.func @transform_3(%arg0: i32) -> (i32, i32) {
    %c0_i32 = arith.constant 0 : i32
    %c0_i32_0 = arith.constant 0 : i32
    %c0_i32_1 = arith.constant 0 : i32
    return %c0_i32, %c0_i32_0 : i32, i32
  }
  func.func @transform_4(%arg0: i32) -> (i32, i32) {
    %c0_i32 = arith.constant 0 : i32
    %c0_i32_0 = arith.constant 0 : i32
    %c0_i32_1 = arith.constant 0 : i32
    return %c0_i32, %c0_i32_0 : i32, i32
  }
  func.func @transform_5(%arg0: i32) -> (i32, i32, i32) {
    %c0_i32 = arith.constant 0 : i32
    %c0_i32_0 = arith.constant 0 : i32
    %c0_i32_1 = arith.constant 0 : i32
    return %arg0, %c0_i32, %c0_i32_0 : i32, i32, i32
  }
}

module attributes {stable_mosaic.version = 11 : i64} {
  func.func @_conv_bn_relu_pool_kernel(%arg0: i32, %arg1: memref<1x4x8x360xbf16, #tpu.memory_space<vmem>>, %arg2: memref<360x81xbf16, #tpu.memory_space<vmem>>, %arg3: memref<1x81xf32, #tpu.memory_space<vmem>>, %arg4: memref<1x81xf32, #tpu.memory_space<vmem>>, %arg5: memref<1x81xf32, #tpu.memory_space<vmem>>, %arg6: memref<1x8x81xf32, #tpu.memory_space<vmem>>) attributes {dimension_semantics = [#tpu.dimension_semantics<parallel>], iteration_bounds = array<i64: 2>, scalar_prefetch = 0 : i64, scratch_operands = 0 : i64, tpu.core_type = #tpu.core_type<tc>, window_params = [{transform_indices = @transform_0, window_bounds = array<i64: 1, 4, 8, 360>}, {pipeline_mode = #tpu.pipeline_mode<synchronous>, transform_indices = @transform_1, window_bounds = array<i64: 360, 81>}, {pipeline_mode = #tpu.pipeline_mode<synchronous>, transform_indices = @transform_2, window_bounds = array<i64: 1, 81>}, {pipeline_mode = #tpu.pipeline_mode<synchronous>, transform_indices = @transform_3, window_bounds = array<i64: 1, 81>}, {pipeline_mode = #tpu.pipeline_mode<synchronous>, transform_indices = @transform_4, window_bounds = array<i64: 1, 81>}, {transform_indices = @transform_5, window_bounds = array<i64: 1, 8, 81>}]} {
    %c0 = arith.constant 0 : index
    %c0_0 = arith.constant 0 : index
    %c0_1 = arith.constant 0 : index
    %c0_2 = arith.constant 0 : index
    %0 = vector.load %arg1[%c0, %c0_0, %c0_1, %c0_2] : memref<1x4x8x360xbf16, #tpu.memory_space<vmem>>, vector<1x1x8x360xbf16>
    %1 = vector.shape_cast %0 : vector<1x1x8x360xbf16> to vector<8x360xbf16>
    %c0_3 = arith.constant 0 : index
    %c0_4 = arith.constant 0 : index
    %2 = vector.load %arg2[%c0_3, %c0_4] : memref<360x81xbf16, #tpu.memory_space<vmem>>, vector<360x81xbf16>
    %cst = arith.constant dense<0.000000e+00> : vector<8x81xf32>
    %3 = tpu.matmul %1, %2, %cst {dimension_numbers = #tpu.dot_dimension_numbers<[1], [0], [0], [1], [0, 0, 1, 1], [], []>} : vector<8x360xbf16>, vector<360x81xbf16>, vector<8x81xf32> -> vector<8x81xf32>
    %c0_5 = arith.constant 0 : index
    %c0_6 = arith.constant 0 : index
    %4 = vector.load %arg3[%c0_5, %c0_6] : memref<1x81xf32, #tpu.memory_space<vmem>>, vector<1x81xf32>
    %5 = vector.broadcast %4 : vector<1x81xf32> to vector<8x81xf32>
    %6 = arith.addf %3, %5 : vector<8x81xf32>
    %c0_7 = arith.constant 0 : index
    %c0_8 = arith.constant 0 : index
    %7 = vector.load %arg4[%c0_7, %c0_8] : memref<1x81xf32, #tpu.memory_space<vmem>>, vector<1x81xf32>
    %8 = vector.broadcast %7 : vector<1x81xf32> to vector<8x81xf32>
    %9 = arith.mulf %6, %8 : vector<8x81xf32>
    %c0_9 = arith.constant 0 : index
    %c0_10 = arith.constant 0 : index
    %10 = vector.load %arg5[%c0_9, %c0_10] : memref<1x81xf32, #tpu.memory_space<vmem>>, vector<1x81xf32>
    %11 = vector.broadcast %10 : vector<1x81xf32> to vector<8x81xf32>
    %12 = arith.addf %9, %11 : vector<8x81xf32>
    %cst_11 = arith.constant 0.000000e+00 : f32
    %13 = vector.broadcast %cst_11 : f32 to vector<8x81xf32>
    %14 = arith.maximumf %12, %13 : vector<8x81xf32>
    %c0_12 = arith.constant 0 : index
    %c1 = arith.constant 1 : index
    %c0_13 = arith.constant 0 : index
    %c0_14 = arith.constant 0 : index
    %15 = vector.load %arg1[%c0_12, %c1, %c0_13, %c0_14] : memref<1x4x8x360xbf16, #tpu.memory_space<vmem>>, vector<1x1x8x360xbf16>
    %16 = vector.shape_cast %15 : vector<1x1x8x360xbf16> to vector<8x360xbf16>
    %c0_15 = arith.constant 0 : index
    %c0_16 = arith.constant 0 : index
    %17 = vector.load %arg2[%c0_15, %c0_16] : memref<360x81xbf16, #tpu.memory_space<vmem>>, vector<360x81xbf16>
    %cst_17 = arith.constant dense<0.000000e+00> : vector<8x81xf32>
    %18 = tpu.matmul %16, %17, %cst_17 {dimension_numbers = #tpu.dot_dimension_numbers<[1], [0], [0], [1], [0, 0, 1, 1], [], []>} : vector<8x360xbf16>, vector<360x81xbf16>, vector<8x81xf32> -> vector<8x81xf32>
    %c0_18 = arith.constant 0 : index
    %c0_19 = arith.constant 0 : index
    %19 = vector.load %arg3[%c0_18, %c0_19] : memref<1x81xf32, #tpu.memory_space<vmem>>, vector<1x81xf32>
    %20 = vector.broadcast %19 : vector<1x81xf32> to vector<8x81xf32>
    %21 = arith.addf %18, %20 : vector<8x81xf32>
    %c0_20 = arith.constant 0 : index
    %c0_21 = arith.constant 0 : index
    %22 = vector.load %arg4[%c0_20, %c0_21] : memref<1x81xf32, #tpu.memory_space<vmem>>, vector<1x81xf32>
    %23 = vector.broadcast %22 : vector<1x81xf32> to vector<8x81xf32>
    %24 = arith.mulf %21, %23 : vector<8x81xf32>
    %c0_22 = arith.constant 0 : index
    %c0_23 = arith.constant 0 : index
    %25 = vector.load %arg5[%c0_22, %c0_23] : memref<1x81xf32, #tpu.memory_space<vmem>>, vector<1x81xf32>
    %26 = vector.broadcast %25 : vector<1x81xf32> to vector<8x81xf32>
    %27 = arith.addf %24, %26 : vector<8x81xf32>
    %cst_24 = arith.constant 0.000000e+00 : f32
    %28 = vector.broadcast %cst_24 : f32 to vector<8x81xf32>
    %29 = arith.maximumf %27, %28 : vector<8x81xf32>
    %30 = arith.maximumf %14, %29 : vector<8x81xf32>
    %c0_25 = arith.constant 0 : index
    %c2 = arith.constant 2 : index
    %c0_26 = arith.constant 0 : index
    %c0_27 = arith.constant 0 : index
    %31 = vector.load %arg1[%c0_25, %c2, %c0_26, %c0_27] : memref<1x4x8x360xbf16, #tpu.memory_space<vmem>>, vector<1x1x8x360xbf16>
    %32 = vector.shape_cast %31 : vector<1x1x8x360xbf16> to vector<8x360xbf16>
    %c0_28 = arith.constant 0 : index
    %c0_29 = arith.constant 0 : index
    %33 = vector.load %arg2[%c0_28, %c0_29] : memref<360x81xbf16, #tpu.memory_space<vmem>>, vector<360x81xbf16>
    %cst_30 = arith.constant dense<0.000000e+00> : vector<8x81xf32>
    %34 = tpu.matmul %32, %33, %cst_30 {dimension_numbers = #tpu.dot_dimension_numbers<[1], [0], [0], [1], [0, 0, 1, 1], [], []>} : vector<8x360xbf16>, vector<360x81xbf16>, vector<8x81xf32> -> vector<8x81xf32>
    %c0_31 = arith.constant 0 : index
    %c0_32 = arith.constant 0 : index
    %35 = vector.load %arg3[%c0_31, %c0_32] : memref<1x81xf32, #tpu.memory_space<vmem>>, vector<1x81xf32>
    %36 = vector.broadcast %35 : vector<1x81xf32> to vector<8x81xf32>
    %37 = arith.addf %34, %36 : vector<8x81xf32>
    %c0_33 = arith.constant 0 : index
    %c0_34 = arith.constant 0 : index
    %38 = vector.load %arg4[%c0_33, %c0_34] : memref<1x81xf32, #tpu.memory_space<vmem>>, vector<1x81xf32>
    %39 = vector.broadcast %38 : vector<1x81xf32> to vector<8x81xf32>
    %40 = arith.mulf %37, %39 : vector<8x81xf32>
    %c0_35 = arith.constant 0 : index
    %c0_36 = arith.constant 0 : index
    %41 = vector.load %arg5[%c0_35, %c0_36] : memref<1x81xf32, #tpu.memory_space<vmem>>, vector<1x81xf32>
    %42 = vector.broadcast %41 : vector<1x81xf32> to vector<8x81xf32>
    %43 = arith.addf %40, %42 : vector<8x81xf32>
    %cst_37 = arith.constant 0.000000e+00 : f32
    %44 = vector.broadcast %cst_37 : f32 to vector<8x81xf32>
    %45 = arith.maximumf %43, %44 : vector<8x81xf32>
    %46 = arith.maximumf %30, %45 : vector<8x81xf32>
    %c0_38 = arith.constant 0 : index
    %c3 = arith.constant 3 : index
    %c0_39 = arith.constant 0 : index
    %c0_40 = arith.constant 0 : index
    %47 = vector.load %arg1[%c0_38, %c3, %c0_39, %c0_40] : memref<1x4x8x360xbf16, #tpu.memory_space<vmem>>, vector<1x1x8x360xbf16>
    %48 = vector.shape_cast %47 : vector<1x1x8x360xbf16> to vector<8x360xbf16>
    %c0_41 = arith.constant 0 : index
    %c0_42 = arith.constant 0 : index
    %49 = vector.load %arg2[%c0_41, %c0_42] : memref<360x81xbf16, #tpu.memory_space<vmem>>, vector<360x81xbf16>
    %cst_43 = arith.constant dense<0.000000e+00> : vector<8x81xf32>
    %50 = tpu.matmul %48, %49, %cst_43 {dimension_numbers = #tpu.dot_dimension_numbers<[1], [0], [0], [1], [0, 0, 1, 1], [], []>} : vector<8x360xbf16>, vector<360x81xbf16>, vector<8x81xf32> -> vector<8x81xf32>
    %c0_44 = arith.constant 0 : index
    %c0_45 = arith.constant 0 : index
    %51 = vector.load %arg3[%c0_44, %c0_45] : memref<1x81xf32, #tpu.memory_space<vmem>>, vector<1x81xf32>
    %52 = vector.broadcast %51 : vector<1x81xf32> to vector<8x81xf32>
    %53 = arith.addf %50, %52 : vector<8x81xf32>
    %c0_46 = arith.constant 0 : index
    %c0_47 = arith.constant 0 : index
    %54 = vector.load %arg4[%c0_46, %c0_47] : memref<1x81xf32, #tpu.memory_space<vmem>>, vector<1x81xf32>
    %55 = vector.broadcast %54 : vector<1x81xf32> to vector<8x81xf32>
    %56 = arith.mulf %53, %55 : vector<8x81xf32>
    %c0_48 = arith.constant 0 : index
    %c0_49 = arith.constant 0 : index
    %57 = vector.load %arg5[%c0_48, %c0_49] : memref<1x81xf32, #tpu.memory_space<vmem>>, vector<1x81xf32>
    %58 = vector.broadcast %57 : vector<1x81xf32> to vector<8x81xf32>
    %59 = arith.addf %56, %58 : vector<8x81xf32>
    %cst_50 = arith.constant 0.000000e+00 : f32
    %60 = vector.broadcast %cst_50 : f32 to vector<8x81xf32>
    %61 = arith.maximumf %59, %60 : vector<8x81xf32>
    %62 = arith.maximumf %46, %61 : vector<8x81xf32>
    %c0_51 = arith.constant 0 : index
    %c0_52 = arith.constant 0 : index
    %c0_53 = arith.constant 0 : index
    %63 = vector.load %arg6[%c0_51, %c0_52, %c0_53] : memref<1x8x81xf32, #tpu.memory_space<vmem>>, vector<1x8x81xf32>
    %64 = vector.shape_cast %63 : vector<1x8x81xf32> to vector<8x81xf32>
    %65 = vector.shape_cast %62 : vector<8x81xf32> to vector<1x8x81xf32>
    tpu.vector_store %arg6[%c0_51, %c0_52, %c0_53], %65 {strides = array<i32>} : memref<1x8x81xf32, #tpu.memory_space<vmem>>, vector<1x8x81xf32>,
    return
  }
  func.func @transform_0(%arg0: i32) -> (i32, i32, i32, i32) {
    %c0_i32 = arith.constant 0 : i32
    %c0_i32_0 = arith.constant 0 : i32
    %c0_i32_1 = arith.constant 0 : i32
    %c0_i32_2 = arith.constant 0 : i32
    return %arg0, %c0_i32, %c0_i32_0, %c0_i32_1 : i32, i32, i32, i32
  }
  func.func @transform_1(%arg0: i32) -> (i32, i32) {
    %c0_i32 = arith.constant 0 : i32
    %c0_i32_0 = arith.constant 0 : i32
    %c0_i32_1 = arith.constant 0 : i32
    return %c0_i32, %c0_i32_0 : i32, i32
  }
  func.func @transform_2(%arg0: i32) -> (i32, i32) {
    %c0_i32 = arith.constant 0 : i32
    %c0_i32_0 = arith.constant 0 : i32
    %c0_i32_1 = arith.constant 0 : i32
    return %c0_i32, %c0_i32_0 : i32, i32
  }
  func.func @transform_3(%arg0: i32) -> (i32, i32) {
    %c0_i32 = arith.constant 0 : i32
    %c0_i32_0 = arith.constant 0 : i32
    %c0_i32_1 = arith.constant 0 : i32
    return %c0_i32, %c0_i32_0 : i32, i32
  }
  func.func @transform_4(%arg0: i32) -> (i32, i32) {
    %c0_i32 = arith.constant 0 : i32
    %c0_i32_0 = arith.constant 0 : i32
    %c0_i32_1 = arith.constant 0 : i32
    return %c0_i32, %c0_i32_0 : i32, i32
  }
  func.func @transform_5(%arg0: i32) -> (i32, i32, i32) {
    %c0_i32 = arith.constant 0 : i32
    %c0_i32_0 = arith.constant 0 : i32
    %c0_i32_1 = arith.constant 0 : i32
    return %arg0, %c0_i32, %c0_i32_0 : i32, i32, i32
  }
}

module attributes {stable_mosaic.version = 11 : i64} {
  func.func @_conv_bn_relu_pool_kernel(%arg0: i32, %arg1: memref<1x4x2x405xbf16, #tpu.memory_space<vmem>>, %arg2: memref<405x91xbf16, #tpu.memory_space<vmem>>, %arg3: memref<1x91xf32, #tpu.memory_space<vmem>>, %arg4: memref<1x91xf32, #tpu.memory_space<vmem>>, %arg5: memref<1x91xf32, #tpu.memory_space<vmem>>, %arg6: memref<1x2x91xf32, #tpu.memory_space<vmem>>) attributes {dimension_semantics = [#tpu.dimension_semantics<parallel>], iteration_bounds = array<i64: 2>, scalar_prefetch = 0 : i64, scratch_operands = 0 : i64, tpu.core_type = #tpu.core_type<tc>, window_params = [{transform_indices = @transform_0, window_bounds = array<i64: 1, 4, 2, 405>}, {pipeline_mode = #tpu.pipeline_mode<synchronous>, transform_indices = @transform_1, window_bounds = array<i64: 405, 91>}, {pipeline_mode = #tpu.pipeline_mode<synchronous>, transform_indices = @transform_2, window_bounds = array<i64: 1, 91>}, {pipeline_mode = #tpu.pipeline_mode<synchronous>, transform_indices = @transform_3, window_bounds = array<i64: 1, 91>}, {pipeline_mode = #tpu.pipeline_mode<synchronous>, transform_indices = @transform_4, window_bounds = array<i64: 1, 91>}, {transform_indices = @transform_5, window_bounds = array<i64: 1, 2, 91>}]} {
    %c0 = arith.constant 0 : index
    %c0_0 = arith.constant 0 : index
    %c0_1 = arith.constant 0 : index
    %c0_2 = arith.constant 0 : index
    %0 = vector.load %arg1[%c0, %c0_0, %c0_1, %c0_2] : memref<1x4x2x405xbf16, #tpu.memory_space<vmem>>, vector<1x1x2x405xbf16>
    %1 = vector.shape_cast %0 : vector<1x1x2x405xbf16> to vector<2x405xbf16>
    %c0_3 = arith.constant 0 : index
    %c0_4 = arith.constant 0 : index
    %2 = vector.load %arg2[%c0_3, %c0_4] : memref<405x91xbf16, #tpu.memory_space<vmem>>, vector<405x91xbf16>
    %cst = arith.constant dense<0.000000e+00> : vector<2x91xf32>
    %3 = tpu.matmul %1, %2, %cst {dimension_numbers = #tpu.dot_dimension_numbers<[1], [0], [0], [1], [0, 0, 1, 1], [], []>} : vector<2x405xbf16>, vector<405x91xbf16>, vector<2x91xf32> -> vector<2x91xf32>
    %c0_5 = arith.constant 0 : index
    %c0_6 = arith.constant 0 : index
    %4 = vector.load %arg3[%c0_5, %c0_6] : memref<1x91xf32, #tpu.memory_space<vmem>>, vector<1x91xf32>
    %5 = vector.broadcast %4 : vector<1x91xf32> to vector<2x91xf32>
    %6 = arith.addf %3, %5 : vector<2x91xf32>
    %c0_7 = arith.constant 0 : index
    %c0_8 = arith.constant 0 : index
    %7 = vector.load %arg4[%c0_7, %c0_8] : memref<1x91xf32, #tpu.memory_space<vmem>>, vector<1x91xf32>
    %8 = vector.broadcast %7 : vector<1x91xf32> to vector<2x91xf32>
    %9 = arith.mulf %6, %8 : vector<2x91xf32>
    %c0_9 = arith.constant 0 : index
    %c0_10 = arith.constant 0 : index
    %10 = vector.load %arg5[%c0_9, %c0_10] : memref<1x91xf32, #tpu.memory_space<vmem>>, vector<1x91xf32>
    %11 = vector.broadcast %10 : vector<1x91xf32> to vector<2x91xf32>
    %12 = arith.addf %9, %11 : vector<2x91xf32>
    %cst_11 = arith.constant 0.000000e+00 : f32
    %13 = vector.broadcast %cst_11 : f32 to vector<2x91xf32>
    %14 = arith.maximumf %12, %13 : vector<2x91xf32>
    %c0_12 = arith.constant 0 : index
    %c1 = arith.constant 1 : index
    %c0_13 = arith.constant 0 : index
    %c0_14 = arith.constant 0 : index
    %15 = vector.load %arg1[%c0_12, %c1, %c0_13, %c0_14] : memref<1x4x2x405xbf16, #tpu.memory_space<vmem>>, vector<1x1x2x405xbf16>
    %16 = vector.shape_cast %15 : vector<1x1x2x405xbf16> to vector<2x405xbf16>
    %c0_15 = arith.constant 0 : index
    %c0_16 = arith.constant 0 : index
    %17 = vector.load %arg2[%c0_15, %c0_16] : memref<405x91xbf16, #tpu.memory_space<vmem>>, vector<405x91xbf16>
    %cst_17 = arith.constant dense<0.000000e+00> : vector<2x91xf32>
    %18 = tpu.matmul %16, %17, %cst_17 {dimension_numbers = #tpu.dot_dimension_numbers<[1], [0], [0], [1], [0, 0, 1, 1], [], []>} : vector<2x405xbf16>, vector<405x91xbf16>, vector<2x91xf32> -> vector<2x91xf32>
    %c0_18 = arith.constant 0 : index
    %c0_19 = arith.constant 0 : index
    %19 = vector.load %arg3[%c0_18, %c0_19] : memref<1x91xf32, #tpu.memory_space<vmem>>, vector<1x91xf32>
    %20 = vector.broadcast %19 : vector<1x91xf32> to vector<2x91xf32>
    %21 = arith.addf %18, %20 : vector<2x91xf32>
    %c0_20 = arith.constant 0 : index
    %c0_21 = arith.constant 0 : index
    %22 = vector.load %arg4[%c0_20, %c0_21] : memref<1x91xf32, #tpu.memory_space<vmem>>, vector<1x91xf32>
    %23 = vector.broadcast %22 : vector<1x91xf32> to vector<2x91xf32>
    %24 = arith.mulf %21, %23 : vector<2x91xf32>
    %c0_22 = arith.constant 0 : index
    %c0_23 = arith.constant 0 : index
    %25 = vector.load %arg5[%c0_22, %c0_23] : memref<1x91xf32, #tpu.memory_space<vmem>>, vector<1x91xf32>
    %26 = vector.broadcast %25 : vector<1x91xf32> to vector<2x91xf32>
    %27 = arith.addf %24, %26 : vector<2x91xf32>
    %cst_24 = arith.constant 0.000000e+00 : f32
    %28 = vector.broadcast %cst_24 : f32 to vector<2x91xf32>
    %29 = arith.maximumf %27, %28 : vector<2x91xf32>
    %30 = arith.maximumf %14, %29 : vector<2x91xf32>
    %c0_25 = arith.constant 0 : index
    %c2 = arith.constant 2 : index
    %c0_26 = arith.constant 0 : index
    %c0_27 = arith.constant 0 : index
    %31 = vector.load %arg1[%c0_25, %c2, %c0_26, %c0_27] : memref<1x4x2x405xbf16, #tpu.memory_space<vmem>>, vector<1x1x2x405xbf16>
    %32 = vector.shape_cast %31 : vector<1x1x2x405xbf16> to vector<2x405xbf16>
    %c0_28 = arith.constant 0 : index
    %c0_29 = arith.constant 0 : index
    %33 = vector.load %arg2[%c0_28, %c0_29] : memref<405x91xbf16, #tpu.memory_space<vmem>>, vector<405x91xbf16>
    %cst_30 = arith.constant dense<0.000000e+00> : vector<2x91xf32>
    %34 = tpu.matmul %32, %33, %cst_30 {dimension_numbers = #tpu.dot_dimension_numbers<[1], [0], [0], [1], [0, 0, 1, 1], [], []>} : vector<2x405xbf16>, vector<405x91xbf16>, vector<2x91xf32> -> vector<2x91xf32>
    %c0_31 = arith.constant 0 : index
    %c0_32 = arith.constant 0 : index
    %35 = vector.load %arg3[%c0_31, %c0_32] : memref<1x91xf32, #tpu.memory_space<vmem>>, vector<1x91xf32>
    %36 = vector.broadcast %35 : vector<1x91xf32> to vector<2x91xf32>
    %37 = arith.addf %34, %36 : vector<2x91xf32>
    %c0_33 = arith.constant 0 : index
    %c0_34 = arith.constant 0 : index
    %38 = vector.load %arg4[%c0_33, %c0_34] : memref<1x91xf32, #tpu.memory_space<vmem>>, vector<1x91xf32>
    %39 = vector.broadcast %38 : vector<1x91xf32> to vector<2x91xf32>
    %40 = arith.mulf %37, %39 : vector<2x91xf32>
    %c0_35 = arith.constant 0 : index
    %c0_36 = arith.constant 0 : index
    %41 = vector.load %arg5[%c0_35, %c0_36] : memref<1x91xf32, #tpu.memory_space<vmem>>, vector<1x91xf32>
    %42 = vector.broadcast %41 : vector<1x91xf32> to vector<2x91xf32>
    %43 = arith.addf %40, %42 : vector<2x91xf32>
    %cst_37 = arith.constant 0.000000e+00 : f32
    %44 = vector.broadcast %cst_37 : f32 to vector<2x91xf32>
    %45 = arith.maximumf %43, %44 : vector<2x91xf32>
    %46 = arith.maximumf %30, %45 : vector<2x91xf32>
    %c0_38 = arith.constant 0 : index
    %c3 = arith.constant 3 : index
    %c0_39 = arith.constant 0 : index
    %c0_40 = arith.constant 0 : index
    %47 = vector.load %arg1[%c0_38, %c3, %c0_39, %c0_40] : memref<1x4x2x405xbf16, #tpu.memory_space<vmem>>, vector<1x1x2x405xbf16>
    %48 = vector.shape_cast %47 : vector<1x1x2x405xbf16> to vector<2x405xbf16>
    %c0_41 = arith.constant 0 : index
    %c0_42 = arith.constant 0 : index
    %49 = vector.load %arg2[%c0_41, %c0_42] : memref<405x91xbf16, #tpu.memory_space<vmem>>, vector<405x91xbf16>
    %cst_43 = arith.constant dense<0.000000e+00> : vector<2x91xf32>
    %50 = tpu.matmul %48, %49, %cst_43 {dimension_numbers = #tpu.dot_dimension_numbers<[1], [0], [0], [1], [0, 0, 1, 1], [], []>} : vector<2x405xbf16>, vector<405x91xbf16>, vector<2x91xf32> -> vector<2x91xf32>
    %c0_44 = arith.constant 0 : index
    %c0_45 = arith.constant 0 : index
    %51 = vector.load %arg3[%c0_44, %c0_45] : memref<1x91xf32, #tpu.memory_space<vmem>>, vector<1x91xf32>
    %52 = vector.broadcast %51 : vector<1x91xf32> to vector<2x91xf32>
    %53 = arith.addf %50, %52 : vector<2x91xf32>
    %c0_46 = arith.constant 0 : index
    %c0_47 = arith.constant 0 : index
    %54 = vector.load %arg4[%c0_46, %c0_47] : memref<1x91xf32, #tpu.memory_space<vmem>>, vector<1x91xf32>
    %55 = vector.broadcast %54 : vector<1x91xf32> to vector<2x91xf32>
    %56 = arith.mulf %53, %55 : vector<2x91xf32>
    %c0_48 = arith.constant 0 : index
    %c0_49 = arith.constant 0 : index
    %57 = vector.load %arg5[%c0_48, %c0_49] : memref<1x91xf32, #tpu.memory_space<vmem>>, vector<1x91xf32>
    %58 = vector.broadcast %57 : vector<1x91xf32> to vector<2x91xf32>
    %59 = arith.addf %56, %58 : vector<2x91xf32>
    %cst_50 = arith.constant 0.000000e+00 : f32
    %60 = vector.broadcast %cst_50 : f32 to vector<2x91xf32>
    %61 = arith.maximumf %59, %60 : vector<2x91xf32>
    %62 = arith.maximumf %46, %61 : vector<2x91xf32>
    %c0_51 = arith.constant 0 : index
    %c0_52 = arith.constant 0 : index
    %c0_53 = arith.constant 0 : index
    %63 = vector.load %arg6[%c0_51, %c0_52, %c0_53] : memref<1x2x91xf32, #tpu.memory_space<vmem>>, vector<1x2x91xf32>
    %64 = vector.shape_cast %63 : vector<1x2x91xf32> to vector<2x91xf32>
    %65 = vector.shape_cast %62 : vector<2x91xf32> to vector<1x2x91xf32>
    tpu.vector_store %arg6[%c0_51, %c0_52, %c0_53], %65 {strides = array<i32>} : memref<1x2x91xf32, #tpu.memory_space<vmem>>, vector<1x2x91xf32>,
    return
  }
  func.func @transform_0(%arg0: i32) -> (i32, i32, i32, i32) {
    %c0_i32 = arith.constant 0 : i32
    %c0_i32_0 = arith.constant 0 : i32
    %c0_i32_1 = arith.constant 0 : i32
    %c0_i32_2 = arith.constant 0 : i32
    return %arg0, %c0_i32, %c0_i32_0, %c0_i32_1 : i32, i32, i32, i32
  }
  func.func @transform_1(%arg0: i32) -> (i32, i32) {
    %c0_i32 = arith.constant 0 : i32
    %c0_i32_0 = arith.constant 0 : i32
    %c0_i32_1 = arith.constant 0 : i32
    return %c0_i32, %c0_i32_0 : i32, i32
  }
  func.func @transform_2(%arg0: i32) -> (i32, i32) {
    %c0_i32 = arith.constant 0 : i32
    %c0_i32_0 = arith.constant 0 : i32
    %c0_i32_1 = arith.constant 0 : i32
    return %c0_i32, %c0_i32_0 : i32, i32
  }
  func.func @transform_3(%arg0: i32) -> (i32, i32) {
    %c0_i32 = arith.constant 0 : i32
    %c0_i32_0 = arith.constant 0 : i32
    %c0_i32_1 = arith.constant 0 : i32
    return %c0_i32, %c0_i32_0 : i32, i32
  }
  func.func @transform_4(%arg0: i32) -> (i32, i32) {
    %c0_i32 = arith.constant 0 : i32
    %c0_i32_0 = arith.constant 0 : i32
    %c0_i32_1 = arith.constant 0 : i32
    return %c0_i32, %c0_i32_0 : i32, i32
  }
  func.func @transform_5(%arg0: i32) -> (i32, i32, i32) {
    %c0_i32 = arith.constant 0 : i32
    %c0_i32_0 = arith.constant 0 : i32
    %c0_i32_1 = arith.constant 0 : i32
    return %arg0, %c0_i32, %c0_i32_0 : i32, i32, i32
  }
}

module attributes {stable_mosaic.version = 11 : i64} {
  func.func @_dense_block_pred_kernel(%arg0: i32, %arg1: memref<4x91xf32, #tpu.memory_space<vmem>>, %arg2: memref<4x1xf32, #tpu.memory_space<vmem>>, %arg3: memref<4x1xf32, #tpu.memory_space<vmem>>, %arg4: memref<7x384x64xbf16, #tpu.memory_space<vmem>>, %arg5: memref<7x384xf32, #tpu.memory_space<vmem>>, %arg6: memref<7x384xf32, #tpu.memory_space<vmem>>, %arg7: memref<7x64x96xbf16, #tpu.memory_space<vmem>>, %arg8: memref<7x64xf32, #tpu.memory_space<vmem>>, %arg9: memref<7x64xf32, #tpu.memory_space<vmem>>, %arg10: memref<384x64xbf16, #tpu.memory_space<vmem>>, %arg11: memref<1x64xf32, #tpu.memory_space<vmem>>, %arg12: memref<2x64xf32, #tpu.memory_space<vmem>>, %arg13: memref<4x384xf32, #tpu.memory_space<vmem>>) attributes {dimension_semantics = [#tpu.dimension_semantics<arbitrary>], iteration_bounds = array<i64: 1>, scalar_prefetch = 0 : i64, scratch_operands = 1 : i64, tpu.core_type = #tpu.core_type<tc>, window_params = [{pipeline_mode = #tpu.pipeline_mode<synchronous>, transform_indices = @transform_0, window_bounds = array<i64: 4, 91>}, {pipeline_mode = #tpu.pipeline_mode<synchronous>, transform_indices = @transform_1, window_bounds = array<i64: 4, 1>}, {pipeline_mode = #tpu.pipeline_mode<synchronous>, transform_indices = @transform_2, window_bounds = array<i64: 4, 1>}, {pipeline_mode = #tpu.pipeline_mode<synchronous>, transform_indices = @transform_3, window_bounds = array<i64: 7, 384, 64>}, {pipeline_mode = #tpu.pipeline_mode<synchronous>, transform_indices = @transform_4, window_bounds = array<i64: 7, 384>}, {pipeline_mode = #tpu.pipeline_mode<synchronous>, transform_indices = @transform_5, window_bounds = array<i64: 7, 384>}, {pipeline_mode = #tpu.pipeline_mode<synchronous>, transform_indices = @transform_6, window_bounds = array<i64: 7, 64, 96>}, {pipeline_mode = #tpu.pipeline_mode<synchronous>, transform_indices = @transform_7, window_bounds = array<i64: 7, 64>}, {pipeline_mode = #tpu.pipeline_mode<synchronous>, transform_indices = @transform_8, window_bounds = array<i64: 7, 64>}, {pipeline_mode = #tpu.pipeline_mode<synchronous>, transform_indices = @transform_9, window_bounds = array<i64: 384, 64>}, {pipeline_mode = #tpu.pipeline_mode<synchronous>, transform_indices = @transform_10, window_bounds = array<i64: 1, 64>}, {pipeline_mode = #tpu.pipeline_mode<synchronous>, transform_indices = @transform_11, window_bounds = array<i64: 2, 64>}]} {
    %cst = arith.constant 0.000000e+00 : f32
    %0 = vector.broadcast %cst : f32 to vector<4x384xf32>
    %c0 = arith.constant 0 : index
    %c0_0 = arith.constant 0 : index
    %1 = vector.load %arg13[%c0, %c0_0] : memref<4x384xf32, #tpu.memory_space<vmem>>, vector<4x384xf32>
    tpu.vector_store %arg13[%c0, %c0_0], %0 {strides = array<i32>} : memref<4x384xf32, #tpu.memory_space<vmem>>, vector<4x384xf32>,
    %c0_1 = arith.constant 0 : index
    %c0_2 = arith.constant 0 : index
    %2 = vector.load %arg1[%c0_1, %c0_2] : memref<4x91xf32, #tpu.memory_space<vmem>>, vector<4x91xf32>
    %c0_3 = arith.constant 0 : index
    %c0_4 = arith.constant 0 : index
    %3 = vector.load %arg13[%c0_3, %c0_4] : memref<4x384xf32, #tpu.memory_space<vmem>>, vector<4x91xf32>
    tpu.vector_store %arg13[%c0_3, %c0_4], %2 {strides = array<i32>} : memref<4x384xf32, #tpu.memory_space<vmem>>, vector<4x91xf32>,
    %c0_5 = arith.constant 0 : index
    %c0_6 = arith.constant 0 : index
    %4 = vector.load %arg2[%c0_5, %c0_6] : memref<4x1xf32, #tpu.memory_space<vmem>>, vector<4x1xf32>
    %c0_7 = arith.constant 0 : index
    %c0_8 = arith.constant 0 : index
    %5 = vector.load %arg3[%c0_7, %c0_8] : memref<4x1xf32, #tpu.memory_space<vmem>>, vector<4x1xf32>
    %cst_9 = arith.constant 0.000000e+00 : f32
    %6 = vector.broadcast %cst_9 : f32 to vector<1x32xf32>
    %c0_10 = arith.constant 0 : index
    %c0_11 = arith.constant 0 : index
    %7 = vector.load %arg13[%c0_10, %c0_11] : memref<4x384xf32, #tpu.memory_space<vmem>>, vector<4x384xf32>
    %c0_12 = arith.constant 0 : index
    %c0_13 = arith.constant 0 : index
    %8 = vector.load %arg5[%c0_12, %c0_13] : memref<7x384xf32, #tpu.memory_space<vmem>>, vector<1x384xf32>
    %9 = vector.broadcast %8 : vector<1x384xf32> to vector<4x384xf32>
    %10 = arith.mulf %7, %9 : vector<4x384xf32>
    %c0_14 = arith.constant 0 : index
    %c0_15 = arith.constant 0 : index
    %11 = vector.load %arg6[%c0_14, %c0_15] : memref<7x384xf32, #tpu.memory_space<vmem>>, vector<1x384xf32>
    %12 = vector.broadcast %11 : vector<1x384xf32> to vector<4x384xf32>
    %13 = arith.addf %10, %12 : vector<4x384xf32>
    %cst_16 = arith.constant 0.000000e+00 : f32
    %14 = vector.broadcast %cst_16 : f32 to vector<4x384xf32>
    %15 = arith.maximumf %13, %14 : vector<4x384xf32>
    %16 = arith.truncf %15 : vector<4x384xf32> to vector<4x384xbf16>
    %c0_17 = arith.constant 0 : index
    %c0_18 = arith.constant 0 : index
    %c0_19 = arith.constant 0 : index
    %17 = vector.load %arg4[%c0_17, %c0_18, %c0_19] : memref<7x384x64xbf16, #tpu.memory_space<vmem>>, vector<1x384x64xbf16>
    %18 = vector.shape_cast %17 : vector<1x384x64xbf16> to vector<384x64xbf16>
    %cst_20 = arith.constant dense<0.000000e+00> : vector<4x64xf32>
    %19 = tpu.matmul %16, %18, %cst_20 {dimension_numbers = #tpu.dot_dimension_numbers<[1], [0], [0], [1], [0, 0, 1, 1], [], []>} : vector<4x384xbf16>, vector<384x64xbf16>, vector<4x64xf32> -> vector<4x64xf32>
    %c0_21 = arith.constant 0 : index
    %c0_22 = arith.constant 0 : index
    %20 = vector.load %arg8[%c0_21, %c0_22] : memref<7x64xf32, #tpu.memory_space<vmem>>, vector<1x64xf32>
    %21 = vector.broadcast %20 : vector<1x64xf32> to vector<4x64xf32>
    %22 = arith.mulf %19, %21 : vector<4x64xf32>
    %c0_23 = arith.constant 0 : index
    %c0_24 = arith.constant 0 : index
    %23 = vector.load %arg9[%c0_23, %c0_24] : memref<7x64xf32, #tpu.memory_space<vmem>>, vector<1x64xf32>
    %24 = vector.broadcast %23 : vector<1x64xf32> to vector<4x64xf32>
    %25 = arith.addf %22, %24 : vector<4x64xf32>
    %cst_25 = arith.constant 0.000000e+00 : f32
    %26 = vector.broadcast %cst_25 : f32 to vector<4x64xf32>
    %27 = arith.maximumf %25, %26 : vector<4x64xf32>
    %28 = arith.truncf %27 : vector<4x64xf32> to vector<4x64xbf16>
    %c0_26 = arith.constant 0 : index
    %c0_27 = arith.constant 0 : index
    %c0_28 = arith.constant 0 : index
    %29 = vector.load %arg7[%c0_26, %c0_27, %c0_28] : memref<7x64x96xbf16, #tpu.memory_space<vmem>>, vector<1x64x96xbf16>
    %30 = vector.shape_cast %29 : vector<1x64x96xbf16> to vector<64x96xbf16>
    %cst_29 = arith.constant dense<0.000000e+00> : vector<4x96xf32>
    %31 = tpu.matmul %28, %30, %cst_29 {dimension_numbers = #tpu.dot_dimension_numbers<[1], [0], [0], [1], [0, 0, 1, 1], [], []>} : vector<4x64xbf16>, vector<64x96xbf16>, vector<4x96xf32> -> vector<4x96xf32>
    %32 = vector.extract_strided_slice %31 {offsets = [0, 0], sizes = [4, 32], strides = [1, 1]} : vector<4x96xf32> to vector<4x32xf32>
    %33 = vector.extract_strided_slice %31 {offsets = [0, 32], sizes = [4, 32], strides = [1, 1]} : vector<4x96xf32> to vector<4x32xf32>
    %34 = vector.extract_strided_slice %31 {offsets = [0, 64], sizes = [4, 32], strides = [1, 1]} : vector<4x96xf32> to vector<4x32xf32>
    %35 = vector.extract_strided_slice %32 {offsets = [0, 0], sizes = [3, 32], strides = [1, 1]} : vector<4x32xf32> to vector<3x32xf32>
    %36 = tpu.concatenate %6, %35 in 0 : vector<1x32xf32>, vector<3x32xf32> -> vector<4x32xf32>
    %37 = vector.broadcast %4 : vector<4x1xf32> to vector<4x32xf32>
    %38 = arith.mulf %36, %37 : vector<4x32xf32>
    %39 = vector.extract_strided_slice %34 {offsets = [1, 0], sizes = [3, 32], strides = [1, 1]} : vector<4x32xf32> to vector<3x32xf32>
    %40 = tpu.concatenate %39, %6 in 0 : vector<3x32xf32>, vector<1x32xf32> -> vector<4x32xf32>
    %41 = vector.broadcast %5 : vector<4x1xf32> to vector<4x32xf32>
    %42 = arith.mulf %40, %41 : vector<4x32xf32>
    %43 = arith.addf %33, %38 : vector<4x32xf32>
    %44 = arith.addf %43, %42 : vector<4x32xf32>
    %c0_30 = arith.constant 0 : index
    %c91 = arith.constant 91 : index
    %45 = vector.load %arg13[%c0_30, %c91] : memref<4x384xf32, #tpu.memory_space<vmem>>, vector<4x32xf32>
    tpu.vector_store %arg13[%c0_30, %c91], %44 {strides = array<i32>} : memref<4x384xf32, #tpu.memory_space<vmem>>, vector<4x32xf32>,
    %c0_31 = arith.constant 0 : index
    %c0_32 = arith.constant 0 : index
    %46 = vector.load %arg13[%c0_31, %c0_32] : memref<4x384xf32, #tpu.memory_space<vmem>>, vector<4x384xf32>
    %c1 = arith.constant 1 : index
    %c0_33 = arith.constant 0 : index
    %47 = vector.load %arg5[%c1, %c0_33] : memref<7x384xf32, #tpu.memory_space<vmem>>, vector<1x384xf32>
    %48 = vector.broadcast %47 : vector<1x384xf32> to vector<4x384xf32>
    %49 = arith.mulf %46, %48 : vector<4x384xf32>
    %c1_34 = arith.constant 1 : index
    %c0_35 = arith.constant 0 : index
    %50 = vector.load %arg6[%c1_34, %c0_35] : memref<7x384xf32, #tpu.memory_space<vmem>>, vector<1x384xf32>
    %51 = vector.broadcast %50 : vector<1x384xf32> to vector<4x384xf32>
    %52 = arith.addf %49, %51 : vector<4x384xf32>
    %cst_36 = arith.constant 0.000000e+00 : f32
    %53 = vector.broadcast %cst_36 : f32 to vector<4x384xf32>
    %54 = arith.maximumf %52, %53 : vector<4x384xf32>
    %55 = arith.truncf %54 : vector<4x384xf32> to vector<4x384xbf16>
    %c1_37 = arith.constant 1 : index
    %c0_38 = arith.constant 0 : index
    %c0_39 = arith.constant 0 : index
    %56 = vector.load %arg4[%c1_37, %c0_38, %c0_39] : memref<7x384x64xbf16, #tpu.memory_space<vmem>>, vector<1x384x64xbf16>
    %57 = vector.shape_cast %56 : vector<1x384x64xbf16> to vector<384x64xbf16>
    %cst_40 = arith.constant dense<0.000000e+00> : vector<4x64xf32>
    %58 = tpu.matmul %55, %57, %cst_40 {dimension_numbers = #tpu.dot_dimension_numbers<[1], [0], [0], [1], [0, 0, 1, 1], [], []>} : vector<4x384xbf16>, vector<384x64xbf16>, vector<4x64xf32> -> vector<4x64xf32>
    %c1_41 = arith.constant 1 : index
    %c0_42 = arith.constant 0 : index
    %59 = vector.load %arg8[%c1_41, %c0_42] : memref<7x64xf32, #tpu.memory_space<vmem>>, vector<1x64xf32>
    %60 = vector.broadcast %59 : vector<1x64xf32> to vector<4x64xf32>
    %61 = arith.mulf %58, %60 : vector<4x64xf32>
    %c1_43 = arith.constant 1 : index
    %c0_44 = arith.constant 0 : index
    %62 = vector.load %arg9[%c1_43, %c0_44] : memref<7x64xf32, #tpu.memory_space<vmem>>, vector<1x64xf32>
    %63 = vector.broadcast %62 : vector<1x64xf32> to vector<4x64xf32>
    %64 = arith.addf %61, %63 : vector<4x64xf32>
    %cst_45 = arith.constant 0.000000e+00 : f32
    %65 = vector.broadcast %cst_45 : f32 to vector<4x64xf32>
    %66 = arith.maximumf %64, %65 : vector<4x64xf32>
    %67 = arith.truncf %66 : vector<4x64xf32> to vector<4x64xbf16>
    %c1_46 = arith.constant 1 : index
    %c0_47 = arith.constant 0 : index
    %c0_48 = arith.constant 0 : index
    %68 = vector.load %arg7[%c1_46, %c0_47, %c0_48] : memref<7x64x96xbf16, #tpu.memory_space<vmem>>, vector<1x64x96xbf16>
    %69 = vector.shape_cast %68 : vector<1x64x96xbf16> to vector<64x96xbf16>
    %cst_49 = arith.constant dense<0.000000e+00> : vector<4x96xf32>
    %70 = tpu.matmul %67, %69, %cst_49 {dimension_numbers = #tpu.dot_dimension_numbers<[1], [0], [0], [1], [0, 0, 1, 1], [], []>} : vector<4x64xbf16>, vector<64x96xbf16>, vector<4x96xf32> -> vector<4x96xf32>
    %71 = vector.extract_strided_slice %70 {offsets = [0, 0], sizes = [4, 32], strides = [1, 1]} : vector<4x96xf32> to vector<4x32xf32>
    %72 = vector.extract_strided_slice %70 {offsets = [0, 32], sizes = [4, 32], strides = [1, 1]} : vector<4x96xf32> to vector<4x32xf32>
    %73 = vector.extract_strided_slice %70 {offsets = [0, 64], sizes = [4, 32], strides = [1, 1]} : vector<4x96xf32> to vector<4x32xf32>
    %74 = vector.extract_strided_slice %71 {offsets = [0, 0], sizes = [3, 32], strides = [1, 1]} : vector<4x32xf32> to vector<3x32xf32>
    %75 = tpu.concatenate %6, %74 in 0 : vector<1x32xf32>, vector<3x32xf32> -> vector<4x32xf32>
    %76 = vector.broadcast %4 : vector<4x1xf32> to vector<4x32xf32>
    %77 = arith.mulf %75, %76 : vector<4x32xf32>
    %78 = vector.extract_strided_slice %73 {offsets = [1, 0], sizes = [3, 32], strides = [1, 1]} : vector<4x32xf32> to vector<3x32xf32>
    %79 = tpu.concatenate %78, %6 in 0 : vector<3x32xf32>, vector<1x32xf32> -> vector<4x32xf32>
    %80 = vector.broadcast %5 : vector<4x1xf32> to vector<4x32xf32>
    %81 = arith.mulf %79, %80 : vector<4x32xf32>
    %82 = arith.addf %72, %77 : vector<4x32xf32>
    %83 = arith.addf %82, %81 : vector<4x32xf32>
    %c0_50 = arith.constant 0 : index
    %c123 = arith.constant 123 : index
    %84 = vector.load %arg13[%c0_50, %c123] : memref<4x384xf32, #tpu.memory_space<vmem>>, vector<4x32xf32>
    tpu.vector_store %arg13[%c0_50, %c123], %83 {strides = array<i32>} : memref<4x384xf32, #tpu.memory_space<vmem>>, vector<4x32xf32>,
    %c0_51 = arith.constant 0 : index
    %c0_52 = arith.constant 0 : index
    %85 = vector.load %arg13[%c0_51, %c0_52] : memref<4x384xf32, #tpu.memory_space<vmem>>, vector<4x384xf32>
    %c2 = arith.constant 2 : index
    %c0_53 = arith.constant 0 : index
    %86 = vector.load %arg5[%c2, %c0_53] : memref<7x384xf32, #tpu.memory_space<vmem>>, vector<1x384xf32>
    %87 = vector.broadcast %86 : vector<1x384xf32> to vector<4x384xf32>
    %88 = arith.mulf %85, %87 : vector<4x384xf32>
    %c2_54 = arith.constant 2 : index
    %c0_55 = arith.constant 0 : index
    %89 = vector.load %arg6[%c2_54, %c0_55] : memref<7x384xf32, #tpu.memory_space<vmem>>, vector<1x384xf32>
    %90 = vector.broadcast %89 : vector<1x384xf32> to vector<4x384xf32>
    %91 = arith.addf %88, %90 : vector<4x384xf32>
    %cst_56 = arith.constant 0.000000e+00 : f32
    %92 = vector.broadcast %cst_56 : f32 to vector<4x384xf32>
    %93 = arith.maximumf %91, %92 : vector<4x384xf32>
    %94 = arith.truncf %93 : vector<4x384xf32> to vector<4x384xbf16>
    %c2_57 = arith.constant 2 : index
    %c0_58 = arith.constant 0 : index
    %c0_59 = arith.constant 0 : index
    %95 = vector.load %arg4[%c2_57, %c0_58, %c0_59] : memref<7x384x64xbf16, #tpu.memory_space<vmem>>, vector<1x384x64xbf16>
    %96 = vector.shape_cast %95 : vector<1x384x64xbf16> to vector<384x64xbf16>
    %cst_60 = arith.constant dense<0.000000e+00> : vector<4x64xf32>
    %97 = tpu.matmul %94, %96, %cst_60 {dimension_numbers = #tpu.dot_dimension_numbers<[1], [0], [0], [1], [0, 0, 1, 1], [], []>} : vector<4x384xbf16>, vector<384x64xbf16>, vector<4x64xf32> -> vector<4x64xf32>
    %c2_61 = arith.constant 2 : index
    %c0_62 = arith.constant 0 : index
    %98 = vector.load %arg8[%c2_61, %c0_62] : memref<7x64xf32, #tpu.memory_space<vmem>>, vector<1x64xf32>
    %99 = vector.broadcast %98 : vector<1x64xf32> to vector<4x64xf32>
    %100 = arith.mulf %97, %99 : vector<4x64xf32>
    %c2_63 = arith.constant 2 : index
    %c0_64 = arith.constant 0 : index
    %101 = vector.load %arg9[%c2_63, %c0_64] : memref<7x64xf32, #tpu.memory_space<vmem>>, vector<1x64xf32>
    %102 = vector.broadcast %101 : vector<1x64xf32> to vector<4x64xf32>
    %103 = arith.addf %100, %102 : vector<4x64xf32>
    %cst_65 = arith.constant 0.000000e+00 : f32
    %104 = vector.broadcast %cst_65 : f32 to vector<4x64xf32>
    %105 = arith.maximumf %103, %104 : vector<4x64xf32>
    %106 = arith.truncf %105 : vector<4x64xf32> to vector<4x64xbf16>
    %c2_66 = arith.constant 2 : index
    %c0_67 = arith.constant 0 : index
    %c0_68 = arith.constant 0 : index
    %107 = vector.load %arg7[%c2_66, %c0_67, %c0_68] : memref<7x64x96xbf16, #tpu.memory_space<vmem>>, vector<1x64x96xbf16>
    %108 = vector.shape_cast %107 : vector<1x64x96xbf16> to vector<64x96xbf16>
    %cst_69 = arith.constant dense<0.000000e+00> : vector<4x96xf32>
    %109 = tpu.matmul %106, %108, %cst_69 {dimension_numbers = #tpu.dot_dimension_numbers<[1], [0], [0], [1], [0, 0, 1, 1], [], []>} : vector<4x64xbf16>, vector<64x96xbf16>, vector<4x96xf32> -> vector<4x96xf32>
    %110 = vector.extract_strided_slice %109 {offsets = [0, 0], sizes = [4, 32], strides = [1, 1]} : vector<4x96xf32> to vector<4x32xf32>
    %111 = vector.extract_strided_slice %109 {offsets = [0, 32], sizes = [4, 32], strides = [1, 1]} : vector<4x96xf32> to vector<4x32xf32>
    %112 = vector.extract_strided_slice %109 {offsets = [0, 64], sizes = [4, 32], strides = [1, 1]} : vector<4x96xf32> to vector<4x32xf32>
    %113 = vector.extract_strided_slice %110 {offsets = [0, 0], sizes = [3, 32], strides = [1, 1]} : vector<4x32xf32> to vector<3x32xf32>
    %114 = tpu.concatenate %6, %113 in 0 : vector<1x32xf32>, vector<3x32xf32> -> vector<4x32xf32>
    %115 = vector.broadcast %4 : vector<4x1xf32> to vector<4x32xf32>
    %116 = arith.mulf %114, %115 : vector<4x32xf32>
    %117 = vector.extract_strided_slice %112 {offsets = [1, 0], sizes = [3, 32], strides = [1, 1]} : vector<4x32xf32> to vector<3x32xf32>
    %118 = tpu.concatenate %117, %6 in 0 : vector<3x32xf32>, vector<1x32xf32> -> vector<4x32xf32>
    %119 = vector.broadcast %5 : vector<4x1xf32> to vector<4x32xf32>
    %120 = arith.mulf %118, %119 : vector<4x32xf32>
    %121 = arith.addf %111, %116 : vector<4x32xf32>
    %122 = arith.addf %121, %120 : vector<4x32xf32>
    %c0_70 = arith.constant 0 : index
    %c155 = arith.constant 155 : index
    %123 = vector.load %arg13[%c0_70, %c155] : memref<4x384xf32, #tpu.memory_space<vmem>>, vector<4x32xf32>
    tpu.vector_store %arg13[%c0_70, %c155], %122 {strides = array<i32>} : memref<4x384xf32, #tpu.memory_space<vmem>>, vector<4x32xf32>,
    %c0_71 = arith.constant 0 : index
    %c0_72 = arith.constant 0 : index
    %124 = vector.load %arg13[%c0_71, %c0_72] : memref<4x384xf32, #tpu.memory_space<vmem>>, vector<4x384xf32>
    %c3 = arith.constant 3 : index
    %c0_73 = arith.constant 0 : index
    %125 = vector.load %arg5[%c3, %c0_73] : memref<7x384xf32, #tpu.memory_space<vmem>>, vector<1x384xf32>
    %126 = vector.broadcast %125 : vector<1x384xf32> to vector<4x384xf32>
    %127 = arith.mulf %124, %126 : vector<4x384xf32>
    %c3_74 = arith.constant 3 : index
    %c0_75 = arith.constant 0 : index
    %128 = vector.load %arg6[%c3_74, %c0_75] : memref<7x384xf32, #tpu.memory_space<vmem>>, vector<1x384xf32>
    %129 = vector.broadcast %128 : vector<1x384xf32> to vector<4x384xf32>
    %130 = arith.addf %127, %129 : vector<4x384xf32>
    %cst_76 = arith.constant 0.000000e+00 : f32
    %131 = vector.broadcast %cst_76 : f32 to vector<4x384xf32>
    %132 = arith.maximumf %130, %131 : vector<4x384xf32>
    %133 = arith.truncf %132 : vector<4x384xf32> to vector<4x384xbf16>
    %c3_77 = arith.constant 3 : index
    %c0_78 = arith.constant 0 : index
    %c0_79 = arith.constant 0 : index
    %134 = vector.load %arg4[%c3_77, %c0_78, %c0_79] : memref<7x384x64xbf16, #tpu.memory_space<vmem>>, vector<1x384x64xbf16>
    %135 = vector.shape_cast %134 : vector<1x384x64xbf16> to vector<384x64xbf16>
    %cst_80 = arith.constant dense<0.000000e+00> : vector<4x64xf32>
    %136 = tpu.matmul %133, %135, %cst_80 {dimension_numbers = #tpu.dot_dimension_numbers<[1], [0], [0], [1], [0, 0, 1, 1], [], []>} : vector<4x384xbf16>, vector<384x64xbf16>, vector<4x64xf32> -> vector<4x64xf32>
    %c3_81 = arith.constant 3 : index
    %c0_82 = arith.constant 0 : index
    %137 = vector.load %arg8[%c3_81, %c0_82] : memref<7x64xf32, #tpu.memory_space<vmem>>, vector<1x64xf32>
    %138 = vector.broadcast %137 : vector<1x64xf32> to vector<4x64xf32>
    %139 = arith.mulf %136, %138 : vector<4x64xf32>
    %c3_83 = arith.constant 3 : index
    %c0_84 = arith.constant 0 : index
    %140 = vector.load %arg9[%c3_83, %c0_84] : memref<7x64xf32, #tpu.memory_space<vmem>>, vector<1x64xf32>
    %141 = vector.broadcast %140 : vector<1x64xf32> to vector<4x64xf32>
    %142 = arith.addf %139, %141 : vector<4x64xf32>
    %cst_85 = arith.constant 0.000000e+00 : f32
    %143 = vector.broadcast %cst_85 : f32 to vector<4x64xf32>
    %144 = arith.maximumf %142, %143 : vector<4x64xf32>
    %145 = arith.truncf %144 : vector<4x64xf32> to vector<4x64xbf16>
    %c3_86 = arith.constant 3 : index
    %c0_87 = arith.constant 0 : index
    %c0_88 = arith.constant 0 : index
    %146 = vector.load %arg7[%c3_86, %c0_87, %c0_88] : memref<7x64x96xbf16, #tpu.memory_space<vmem>>, vector<1x64x96xbf16>
    %147 = vector.shape_cast %146 : vector<1x64x96xbf16> to vector<64x96xbf16>
    %cst_89 = arith.constant dense<0.000000e+00> : vector<4x96xf32>
    %148 = tpu.matmul %145, %147, %cst_89 {dimension_numbers = #tpu.dot_dimension_numbers<[1], [0], [0], [1], [0, 0, 1, 1], [], []>} : vector<4x64xbf16>, vector<64x96xbf16>, vector<4x96xf32> -> vector<4x96xf32>
    %149 = vector.extract_strided_slice %148 {offsets = [0, 0], sizes = [4, 32], strides = [1, 1]} : vector<4x96xf32> to vector<4x32xf32>
    %150 = vector.extract_strided_slice %148 {offsets = [0, 32], sizes = [4, 32], strides = [1, 1]} : vector<4x96xf32> to vector<4x32xf32>
    %151 = vector.extract_strided_slice %148 {offsets = [0, 64], sizes = [4, 32], strides = [1, 1]} : vector<4x96xf32> to vector<4x32xf32>
    %152 = vector.extract_strided_slice %149 {offsets = [0, 0], sizes = [3, 32], strides = [1, 1]} : vector<4x32xf32> to vector<3x32xf32>
    %153 = tpu.concatenate %6, %152 in 0 : vector<1x32xf32>, vector<3x32xf32> -> vector<4x32xf32>
    %154 = vector.broadcast %4 : vector<4x1xf32> to vector<4x32xf32>
    %155 = arith.mulf %153, %154 : vector<4x32xf32>
    %156 = vector.extract_strided_slice %151 {offsets = [1, 0], sizes = [3, 32], strides = [1, 1]} : vector<4x32xf32> to vector<3x32xf32>
    %157 = tpu.concatenate %156, %6 in 0 : vector<3x32xf32>, vector<1x32xf32> -> vector<4x32xf32>
    %158 = vector.broadcast %5 : vector<4x1xf32> to vector<4x32xf32>
    %159 = arith.mulf %157, %158 : vector<4x32xf32>
    %160 = arith.addf %150, %155 : vector<4x32xf32>
    %161 = arith.addf %160, %159 : vector<4x32xf32>
    %c0_90 = arith.constant 0 : index
    %c187 = arith.constant 187 : index
    %162 = vector.load %arg13[%c0_90, %c187] : memref<4x384xf32, #tpu.memory_space<vmem>>, vector<4x32xf32>
    tpu.vector_store %arg13[%c0_90, %c187], %161 {strides = array<i32>} : memref<4x384xf32, #tpu.memory_space<vmem>>, vector<4x32xf32>,
    %c0_91 = arith.constant 0 : index
    %c0_92 = arith.constant 0 : index
    %163 = vector.load %arg13[%c0_91, %c0_92] : memref<4x384xf32, #tpu.memory_space<vmem>>, vector<4x384xf32>
    %c4 = arith.constant 4 : index
    %c0_93 = arith.constant 0 : index
    %164 = vector.load %arg5[%c4, %c0_93] : memref<7x384xf32, #tpu.memory_space<vmem>>, vector<1x384xf32>
    %165 = vector.broadcast %164 : vector<1x384xf32> to vector<4x384xf32>
    %166 = arith.mulf %163, %165 : vector<4x384xf32>
    %c4_94 = arith.constant 4 : index
    %c0_95 = arith.constant 0 : index
    %167 = vector.load %arg6[%c4_94, %c0_95] : memref<7x384xf32, #tpu.memory_space<vmem>>, vector<1x384xf32>
    %168 = vector.broadcast %167 : vector<1x384xf32> to vector<4x384xf32>
    %169 = arith.addf %166, %168 : vector<4x384xf32>
    %cst_96 = arith.constant 0.000000e+00 : f32
    %170 = vector.broadcast %cst_96 : f32 to vector<4x384xf32>
    %171 = arith.maximumf %169, %170 : vector<4x384xf32>
    %172 = arith.truncf %171 : vector<4x384xf32> to vector<4x384xbf16>
    %c4_97 = arith.constant 4 : index
    %c0_98 = arith.constant 0 : index
    %c0_99 = arith.constant 0 : index
    %173 = vector.load %arg4[%c4_97, %c0_98, %c0_99] : memref<7x384x64xbf16, #tpu.memory_space<vmem>>, vector<1x384x64xbf16>
    %174 = vector.shape_cast %173 : vector<1x384x64xbf16> to vector<384x64xbf16>
    %cst_100 = arith.constant dense<0.000000e+00> : vector<4x64xf32>
    %175 = tpu.matmul %172, %174, %cst_100 {dimension_numbers = #tpu.dot_dimension_numbers<[1], [0], [0], [1], [0, 0, 1, 1], [], []>} : vector<4x384xbf16>, vector<384x64xbf16>, vector<4x64xf32> -> vector<4x64xf32>
    %c4_101 = arith.constant 4 : index
    %c0_102 = arith.constant 0 : index
    %176 = vector.load %arg8[%c4_101, %c0_102] : memref<7x64xf32, #tpu.memory_space<vmem>>, vector<1x64xf32>
    %177 = vector.broadcast %176 : vector<1x64xf32> to vector<4x64xf32>
    %178 = arith.mulf %175, %177 : vector<4x64xf32>
    %c4_103 = arith.constant 4 : index
    %c0_104 = arith.constant 0 : index
    %179 = vector.load %arg9[%c4_103, %c0_104] : memref<7x64xf32, #tpu.memory_space<vmem>>, vector<1x64xf32>
    %180 = vector.broadcast %179 : vector<1x64xf32> to vector<4x64xf32>
    %181 = arith.addf %178, %180 : vector<4x64xf32>
    %cst_105 = arith.constant 0.000000e+00 : f32
    %182 = vector.broadcast %cst_105 : f32 to vector<4x64xf32>
    %183 = arith.maximumf %181, %182 : vector<4x64xf32>
    %184 = arith.truncf %183 : vector<4x64xf32> to vector<4x64xbf16>
    %c4_106 = arith.constant 4 : index
    %c0_107 = arith.constant 0 : index
    %c0_108 = arith.constant 0 : index
    %185 = vector.load %arg7[%c4_106, %c0_107, %c0_108] : memref<7x64x96xbf16, #tpu.memory_space<vmem>>, vector<1x64x96xbf16>
    %186 = vector.shape_cast %185 : vector<1x64x96xbf16> to vector<64x96xbf16>
    %cst_109 = arith.constant dense<0.000000e+00> : vector<4x96xf32>
    %187 = tpu.matmul %184, %186, %cst_109 {dimension_numbers = #tpu.dot_dimension_numbers<[1], [0], [0], [1], [0, 0, 1, 1], [], []>} : vector<4x64xbf16>, vector<64x96xbf16>, vector<4x96xf32> -> vector<4x96xf32>
    %188 = vector.extract_strided_slice %187 {offsets = [0, 0], sizes = [4, 32], strides = [1, 1]} : vector<4x96xf32> to vector<4x32xf32>
    %189 = vector.extract_strided_slice %187 {offsets = [0, 32], sizes = [4, 32], strides = [1, 1]} : vector<4x96xf32> to vector<4x32xf32>
    %190 = vector.extract_strided_slice %187 {offsets = [0, 64], sizes = [4, 32], strides = [1, 1]} : vector<4x96xf32> to vector<4x32xf32>
    %191 = vector.extract_strided_slice %188 {offsets = [0, 0], sizes = [3, 32], strides = [1, 1]} : vector<4x32xf32> to vector<3x32xf32>
    %192 = tpu.concatenate %6, %191 in 0 : vector<1x32xf32>, vector<3x32xf32> -> vector<4x32xf32>
    %193 = vector.broadcast %4 : vector<4x1xf32> to vector<4x32xf32>
    %194 = arith.mulf %192, %193 : vector<4x32xf32>
    %195 = vector.extract_strided_slice %190 {offsets = [1, 0], sizes = [3, 32], strides = [1, 1]} : vector<4x32xf32> to vector<3x32xf32>
    %196 = tpu.concatenate %195, %6 in 0 : vector<3x32xf32>, vector<1x32xf32> -> vector<4x32xf32>
    %197 = vector.broadcast %5 : vector<4x1xf32> to vector<4x32xf32>
    %198 = arith.mulf %196, %197 : vector<4x32xf32>
    %199 = arith.addf %189, %194 : vector<4x32xf32>
    %200 = arith.addf %199, %198 : vector<4x32xf32>
    %c0_110 = arith.constant 0 : index
    %c219 = arith.constant 219 : index
    %201 = vector.load %arg13[%c0_110, %c219] : memref<4x384xf32, #tpu.memory_space<vmem>>, vector<4x32xf32>
    tpu.vector_store %arg13[%c0_110, %c219], %200 {strides = array<i32>} : memref<4x384xf32, #tpu.memory_space<vmem>>, vector<4x32xf32>,
    %c0_111 = arith.constant 0 : index
    %c0_112 = arith.constant 0 : index
    %202 = vector.load %arg13[%c0_111, %c0_112] : memref<4x384xf32, #tpu.memory_space<vmem>>, vector<4x384xf32>
    %c5 = arith.constant 5 : index
    %c0_113 = arith.constant 0 : index
    %203 = vector.load %arg5[%c5, %c0_113] : memref<7x384xf32, #tpu.memory_space<vmem>>, vector<1x384xf32>
    %204 = vector.broadcast %203 : vector<1x384xf32> to vector<4x384xf32>
    %205 = arith.mulf %202, %204 : vector<4x384xf32>
    %c5_114 = arith.constant 5 : index
    %c0_115 = arith.constant 0 : index
    %206 = vector.load %arg6[%c5_114, %c0_115] : memref<7x384xf32, #tpu.memory_space<vmem>>, vector<1x384xf32>
    %207 = vector.broadcast %206 : vector<1x384xf32> to vector<4x384xf32>
    %208 = arith.addf %205, %207 : vector<4x384xf32>
    %cst_116 = arith.constant 0.000000e+00 : f32
    %209 = vector.broadcast %cst_116 : f32 to vector<4x384xf32>
    %210 = arith.maximumf %208, %209 : vector<4x384xf32>
    %211 = arith.truncf %210 : vector<4x384xf32> to vector<4x384xbf16>
    %c5_117 = arith.constant 5 : index
    %c0_118 = arith.constant 0 : index
    %c0_119 = arith.constant 0 : index
    %212 = vector.load %arg4[%c5_117, %c0_118, %c0_119] : memref<7x384x64xbf16, #tpu.memory_space<vmem>>, vector<1x384x64xbf16>
    %213 = vector.shape_cast %212 : vector<1x384x64xbf16> to vector<384x64xbf16>
    %cst_120 = arith.constant dense<0.000000e+00> : vector<4x64xf32>
    %214 = tpu.matmul %211, %213, %cst_120 {dimension_numbers = #tpu.dot_dimension_numbers<[1], [0], [0], [1], [0, 0, 1, 1], [], []>} : vector<4x384xbf16>, vector<384x64xbf16>, vector<4x64xf32> -> vector<4x64xf32>
    %c5_121 = arith.constant 5 : index
    %c0_122 = arith.constant 0 : index
    %215 = vector.load %arg8[%c5_121, %c0_122] : memref<7x64xf32, #tpu.memory_space<vmem>>, vector<1x64xf32>
    %216 = vector.broadcast %215 : vector<1x64xf32> to vector<4x64xf32>
    %217 = arith.mulf %214, %216 : vector<4x64xf32>
    %c5_123 = arith.constant 5 : index
    %c0_124 = arith.constant 0 : index
    %218 = vector.load %arg9[%c5_123, %c0_124] : memref<7x64xf32, #tpu.memory_space<vmem>>, vector<1x64xf32>
    %219 = vector.broadcast %218 : vector<1x64xf32> to vector<4x64xf32>
    %220 = arith.addf %217, %219 : vector<4x64xf32>
    %cst_125 = arith.constant 0.000000e+00 : f32
    %221 = vector.broadcast %cst_125 : f32 to vector<4x64xf32>
    %222 = arith.maximumf %220, %221 : vector<4x64xf32>
    %223 = arith.truncf %222 : vector<4x64xf32> to vector<4x64xbf16>
    %c5_126 = arith.constant 5 : index
    %c0_127 = arith.constant 0 : index
    %c0_128 = arith.constant 0 : index
    %224 = vector.load %arg7[%c5_126, %c0_127, %c0_128] : memref<7x64x96xbf16, #tpu.memory_space<vmem>>, vector<1x64x96xbf16>
    %225 = vector.shape_cast %224 : vector<1x64x96xbf16> to vector<64x96xbf16>
    %cst_129 = arith.constant dense<0.000000e+00> : vector<4x96xf32>
    %226 = tpu.matmul %223, %225, %cst_129 {dimension_numbers = #tpu.dot_dimension_numbers<[1], [0], [0], [1], [0, 0, 1, 1], [], []>} : vector<4x64xbf16>, vector<64x96xbf16>, vector<4x96xf32> -> vector<4x96xf32>
    %227 = vector.extract_strided_slice %226 {offsets = [0, 0], sizes = [4, 32], strides = [1, 1]} : vector<4x96xf32> to vector<4x32xf32>
    %228 = vector.extract_strided_slice %226 {offsets = [0, 32], sizes = [4, 32], strides = [1, 1]} : vector<4x96xf32> to vector<4x32xf32>
    %229 = vector.extract_strided_slice %226 {offsets = [0, 64], sizes = [4, 32], strides = [1, 1]} : vector<4x96xf32> to vector<4x32xf32>
    %230 = vector.extract_strided_slice %227 {offsets = [0, 0], sizes = [3, 32], strides = [1, 1]} : vector<4x32xf32> to vector<3x32xf32>
    %231 = tpu.concatenate %6, %230 in 0 : vector<1x32xf32>, vector<3x32xf32> -> vector<4x32xf32>
    %232 = vector.broadcast %4 : vector<4x1xf32> to vector<4x32xf32>
    %233 = arith.mulf %231, %232 : vector<4x32xf32>
    %234 = vector.extract_strided_slice %229 {offsets = [1, 0], sizes = [3, 32], strides = [1, 1]} : vector<4x32xf32> to vector<3x32xf32>
    %235 = tpu.concatenate %234, %6 in 0 : vector<3x32xf32>, vector<1x32xf32> -> vector<4x32xf32>
    %236 = vector.broadcast %5 : vector<4x1xf32> to vector<4x32xf32>
    %237 = arith.mulf %235, %236 : vector<4x32xf32>
    %238 = arith.addf %228, %233 : vector<4x32xf32>
    %239 = arith.addf %238, %237 : vector<4x32xf32>
    %c0_130 = arith.constant 0 : index
    %c251 = arith.constant 251 : index
    %240 = vector.load %arg13[%c0_130, %c251] : memref<4x384xf32, #tpu.memory_space<vmem>>, vector<4x32xf32>
    tpu.vector_store %arg13[%c0_130, %c251], %239 {strides = array<i32>} : memref<4x384xf32, #tpu.memory_space<vmem>>, vector<4x32xf32>,
    %c0_131 = arith.constant 0 : index
    %c0_132 = arith.constant 0 : index
    %241 = vector.load %arg13[%c0_131, %c0_132] : memref<4x384xf32, #tpu.memory_space<vmem>>, vector<4x384xf32>
    %c6 = arith.constant 6 : index
    %c0_133 = arith.constant 0 : index
    %242 = vector.load %arg5[%c6, %c0_133] : memref<7x384xf32, #tpu.memory_space<vmem>>, vector<1x384xf32>
    %243 = vector.broadcast %242 : vector<1x384xf32> to vector<4x384xf32>
    %244 = arith.mulf %241, %243 : vector<4x384xf32>
    %c6_134 = arith.constant 6 : index
    %c0_135 = arith.constant 0 : index
    %245 = vector.load %arg6[%c6_134, %c0_135] : memref<7x384xf32, #tpu.memory_space<vmem>>, vector<1x384xf32>
    %246 = vector.broadcast %245 : vector<1x384xf32> to vector<4x384xf32>
    %247 = arith.addf %244, %246 : vector<4x384xf32>
    %cst_136 = arith.constant 0.000000e+00 : f32
    %248 = vector.broadcast %cst_136 : f32 to vector<4x384xf32>
    %249 = arith.maximumf %247, %248 : vector<4x384xf32>
    %250 = arith.truncf %249 : vector<4x384xf32> to vector<4x384xbf16>
    %c6_137 = arith.constant 6 : index
    %c0_138 = arith.constant 0 : index
    %c0_139 = arith.constant 0 : index
    %251 = vector.load %arg4[%c6_137, %c0_138, %c0_139] : memref<7x384x64xbf16, #tpu.memory_space<vmem>>, vector<1x384x64xbf16>
    %252 = vector.shape_cast %251 : vector<1x384x64xbf16> to vector<384x64xbf16>
    %cst_140 = arith.constant dense<0.000000e+00> : vector<4x64xf32>
    %253 = tpu.matmul %250, %252, %cst_140 {dimension_numbers = #tpu.dot_dimension_numbers<[1], [0], [0], [1], [0, 0, 1, 1], [], []>} : vector<4x384xbf16>, vector<384x64xbf16>, vector<4x64xf32> -> vector<4x64xf32>
    %c6_141 = arith.constant 6 : index
    %c0_142 = arith.constant 0 : index
    %254 = vector.load %arg8[%c6_141, %c0_142] : memref<7x64xf32, #tpu.memory_space<vmem>>, vector<1x64xf32>
    %255 = vector.broadcast %254 : vector<1x64xf32> to vector<4x64xf32>
    %256 = arith.mulf %253, %255 : vector<4x64xf32>
    %c6_143 = arith.constant 6 : index
    %c0_144 = arith.constant 0 : index
    %257 = vector.load %arg9[%c6_143, %c0_144] : memref<7x64xf32, #tpu.memory_space<vmem>>, vector<1x64xf32>
    %258 = vector.broadcast %257 : vector<1x64xf32> to vector<4x64xf32>
    %259 = arith.addf %256, %258 : vector<4x64xf32>
    %cst_145 = arith.constant 0.000000e+00 : f32
    %260 = vector.broadcast %cst_145 : f32 to vector<4x64xf32>
    %261 = arith.maximumf %259, %260 : vector<4x64xf32>
    %262 = arith.truncf %261 : vector<4x64xf32> to vector<4x64xbf16>
    %c6_146 = arith.constant 6 : index
    %c0_147 = arith.constant 0 : index
    %c0_148 = arith.constant 0 : index
    %263 = vector.load %arg7[%c6_146, %c0_147, %c0_148] : memref<7x64x96xbf16, #tpu.memory_space<vmem>>, vector<1x64x96xbf16>
    %264 = vector.shape_cast %263 : vector<1x64x96xbf16> to vector<64x96xbf16>
    %cst_149 = arith.constant dense<0.000000e+00> : vector<4x96xf32>
    %265 = tpu.matmul %262, %264, %cst_149 {dimension_numbers = #tpu.dot_dimension_numbers<[1], [0], [0], [1], [0, 0, 1, 1], [], []>} : vector<4x64xbf16>, vector<64x96xbf16>, vector<4x96xf32> -> vector<4x96xf32>
    %266 = vector.extract_strided_slice %265 {offsets = [0, 0], sizes = [4, 32], strides = [1, 1]} : vector<4x96xf32> to vector<4x32xf32>
    %267 = vector.extract_strided_slice %265 {offsets = [0, 32], sizes = [4, 32], strides = [1, 1]} : vector<4x96xf32> to vector<4x32xf32>
    %268 = vector.extract_strided_slice %265 {offsets = [0, 64], sizes = [4, 32], strides = [1, 1]} : vector<4x96xf32> to vector<4x32xf32>
    %269 = vector.extract_strided_slice %266 {offsets = [0, 0], sizes = [3, 32], strides = [1, 1]} : vector<4x32xf32> to vector<3x32xf32>
    %270 = tpu.concatenate %6, %269 in 0 : vector<1x32xf32>, vector<3x32xf32> -> vector<4x32xf32>
    %271 = vector.broadcast %4 : vector<4x1xf32> to vector<4x32xf32>
    %272 = arith.mulf %270, %271 : vector<4x32xf32>
    %273 = vector.extract_strided_slice %268 {offsets = [1, 0], sizes = [3, 32], strides = [1, 1]} : vector<4x32xf32> to vector<3x32xf32>
    %274 = tpu.concatenate %273, %6 in 0 : vector<3x32xf32>, vector<1x32xf32> -> vector<4x32xf32>
    %275 = vector.broadcast %5 : vector<4x1xf32> to vector<4x32xf32>
    %276 = arith.mulf %274, %275 : vector<4x32xf32>
    %277 = arith.addf %267, %272 : vector<4x32xf32>
    %278 = arith.addf %277, %276 : vector<4x32xf32>
    %c0_150 = arith.constant 0 : index
    %c283 = arith.constant 283 : index
    %279 = vector.load %arg13[%c0_150, %c283] : memref<4x384xf32, #tpu.memory_space<vmem>>, vector<4x32xf32>
    tpu.vector_store %arg13[%c0_150, %c283], %278 {strides = array<i32>} : memref<4x384xf32, #tpu.memory_space<vmem>>, vector<4x32xf32>,
    %c0_151 = arith.constant 0 : index
    %c0_152 = arith.constant 0 : index
    %280 = vector.load %arg13[%c0_151, %c0_152] : memref<4x384xf32, #tpu.memory_space<vmem>>, vector<4x384xf32>
    %281 = vector.extract_strided_slice %280 {offsets = [0, 0], sizes = [2, 384], strides = [1, 1]} : vector<4x384xf32> to vector<2x384xf32>
    %cst_153 = arith.constant dense<0xFF800000> : vector<384xf32>
    %282 = vector.multi_reduction <maximumf>, %281, %cst_153 [0] : vector<2x384xf32> to vector<384xf32>
    %283 = vector.shape_cast %282 : vector<384xf32> to vector<1x384xf32>
    %284 = vector.extract_strided_slice %280 {offsets = [2, 0], sizes = [2, 384], strides = [1, 1]} : vector<4x384xf32> to vector<2x384xf32>
    %cst_154 = arith.constant dense<0xFF800000> : vector<384xf32>
    %285 = vector.multi_reduction <maximumf>, %284, %cst_154 [0] : vector<2x384xf32> to vector<384xf32>
    %286 = vector.shape_cast %285 : vector<384xf32> to vector<1x384xf32>
    %287 = tpu.concatenate %283, %286 in 0 : vector<1x384xf32>, vector<1x384xf32> -> vector<2x384xf32>
    %288 = arith.truncf %287 : vector<2x384xf32> to vector<2x384xbf16>
    %c0_155 = arith.constant 0 : index
    %c0_156 = arith.constant 0 : index
    %289 = vector.load %arg10[%c0_155, %c0_156] : memref<384x64xbf16, #tpu.memory_space<vmem>>, vector<384x64xbf16>
    %cst_157 = arith.constant dense<0.000000e+00> : vector<2x64xf32>
    %290 = tpu.matmul %288, %289, %cst_157 {dimension_numbers = #tpu.dot_dimension_numbers<[1], [0], [0], [1], [0, 0, 1, 1], [], []>} : vector<2x384xbf16>, vector<384x64xbf16>, vector<2x64xf32> -> vector<2x64xf32>
    %c0_158 = arith.constant 0 : index
    %c0_159 = arith.constant 0 : index
    %291 = vector.load %arg11[%c0_158, %c0_159] : memref<1x64xf32, #tpu.memory_space<vmem>>, vector<1x64xf32>
    %292 = vector.broadcast %291 : vector<1x64xf32> to vector<2x64xf32>
    %293 = arith.addf %290, %292 : vector<2x64xf32>
    %cst_160 = arith.constant 0.000000e+00 : f32
    %294 = vector.broadcast %cst_160 : f32 to vector<2x64xf32>
    %295 = arith.subf %294, %293 : vector<2x64xf32>
    %296 = math.exp %295 : vector<2x64xf32>
    %cst_161 = arith.constant 1.000000e+00 : f32
    %297 = vector.broadcast %cst_161 : f32 to vector<2x64xf32>
    %298 = arith.addf %297, %296 : vector<2x64xf32>
    %cst_162 = arith.constant 1.000000e+00 : f32
    %299 = vector.broadcast %cst_162 : f32 to vector<2x64xf32>
    %300 = arith.divf %299, %298 : vector<2x64xf32>
    %c0_163 = arith.constant 0 : index
    %c0_164 = arith.constant 0 : index
    %301 = vector.load %arg12[%c0_163, %c0_164] : memref<2x64xf32, #tpu.memory_space<vmem>>, vector<2x64xf32>
    tpu.vector_store %arg12[%c0_163, %c0_164], %300 {strides = array<i32>} : memref<2x64xf32, #tpu.memory_space<vmem>>, vector<2x64xf32>,
    return
  }
  func.func @transform_0(%arg0: i32) -> (i32, i32) {
    %c0_i32 = arith.constant 0 : i32
    %c0_i32_0 = arith.constant 0 : i32
    %c0_i32_1 = arith.constant 0 : i32
    return %c0_i32, %c0_i32_0 : i32, i32
  }
  func.func @transform_1(%arg0: i32) -> (i32, i32) {
    %c0_i32 = arith.constant 0 : i32
    %c0_i32_0 = arith.constant 0 : i32
    %c0_i32_1 = arith.constant 0 : i32
    return %c0_i32, %c0_i32_0 : i32, i32
  }
  func.func @transform_2(%arg0: i32) -> (i32, i32) {
    %c0_i32 = arith.constant 0 : i32
    %c0_i32_0 = arith.constant 0 : i32
    %c0_i32_1 = arith.constant 0 : i32
    return %c0_i32, %c0_i32_0 : i32, i32
  }
  func.func @transform_3(%arg0: i32) -> (i32, i32, i32) {
    %c0_i32 = arith.constant 0 : i32
    %c0_i32_0 = arith.constant 0 : i32
    %c0_i32_1 = arith.constant 0 : i32
    %c0_i32_2 = arith.constant 0 : i32
    return %c0_i32, %c0_i32_0, %c0_i32_1 : i32, i32, i32
  }
  func.func @transform_4(%arg0: i32) -> (i32, i32) {
    %c0_i32 = arith.constant 0 : i32
    %c0_i32_0 = arith.constant 0 : i32
    %c0_i32_1 = arith.constant 0 : i32
    return %c0_i32, %c0_i32_0 : i32, i32
  }
  func.func @transform_5(%arg0: i32) -> (i32, i32) {
    %c0_i32 = arith.constant 0 : i32
    %c0_i32_0 = arith.constant 0 : i32
    %c0_i32_1 = arith.constant 0 : i32
    return %c0_i32, %c0_i32_0 : i32, i32
  }
  func.func @transform_6(%arg0: i32) -> (i32, i32, i32) {
    %c0_i32 = arith.constant 0 : i32
    %c0_i32_0 = arith.constant 0 : i32
    %c0_i32_1 = arith.constant 0 : i32
    %c0_i32_2 = arith.constant 0 : i32
    return %c0_i32, %c0_i32_0, %c0_i32_1 : i32, i32, i32
  }
  func.func @transform_7(%arg0: i32) -> (i32, i32) {
    %c0_i32 = arith.constant 0 : i32
    %c0_i32_0 = arith.constant 0 : i32
    %c0_i32_1 = arith.constant 0 : i32
    return %c0_i32, %c0_i32_0 : i32, i32
  }
  func.func @transform_8(%arg0: i32) -> (i32, i32) {
    %c0_i32 = arith.constant 0 : i32
    %c0_i32_0 = arith.constant 0 : i32
    %c0_i32_1 = arith.constant 0 : i32
    return %c0_i32, %c0_i32_0 : i32, i32
  }
  func.func @transform_9(%arg0: i32) -> (i32, i32) {
    %c0_i32 = arith.constant 0 : i32
    %c0_i32_0 = arith.constant 0 : i32
    %c0_i32_1 = arith.constant 0 : i32
    return %c0_i32, %c0_i32_0 : i32, i32
  }
  func.func @transform_10(%arg0: i32) -> (i32, i32) {
    %c0_i32 = arith.constant 0 : i32
    %c0_i32_0 = arith.constant 0 : i32
    %c0_i32_1 = arith.constant 0 : i32
    return %c0_i32, %c0_i32_0 : i32, i32
  }
  func.func @transform_11(%arg0: i32) -> (i32, i32) {
    %c0_i32 = arith.constant 0 : i32
    %c0_i32_0 = arith.constant 0 : i32
    %c0_i32_1 = arith.constant 0 : i32
    return %c0_i32, %c0_i32_0 : i32, i32
  }
}

</mosaic_0001>

<bundles_post_ra>
// kernel: basenji_v1_forward.5
= control target key start
LH: loop header
LB: loop body
LE: loop exit
PB: predicated region body
PF: predicated region fallthrough
CT: control target
= control target key end

     0   :  { %s1030_s18 = smov 0   ;;  %s1245_s0 = inlined_call_operand.vmem [shape: bf16[2,2,128,60], index: 0, kind: input, shape index: {}]   ;;  %s1246_s1 = inlined_call_operand.vmem [shape: bf16[60,64], index: 1, kind: input, shape index: {}]   ;;  %s1247_s2 = inlined_call_operand.vmem [shape: f32[1,64], index: 2, kind: input, shape index: {}]   ;;  %s1248_s3 = inlined_call_operand.vmem [shape: f32[1,64], index: 3, kind: input, shape index: {}]   ;;  %s1249_s4 = inlined_call_operand.vmem [shape: f32[1,64], index: 4, kind: input, shape index: {}]   ;;  %s1250_s5 = inlined_call_operand.vmem [shape: f32[2,128,64], index: 5, kind: output, shape index: {}]  }
   0x1 LB: > { %s822_s19 = sadd.s32 4294967295, %s998_s18   ;;  %p826_p0 = scmp.ge.s32.totalorder %s998_s18, 1  ;;  %s998_s18 = sphi %s1030_s18, %s15_s18  }
   0x2   : > { %p187_p1 = scmp.lt.s32.totalorder %s998_s18, 3 }
   0x4   : > { %p188_p2 = pnand %p826_p0, %p187_p1 }
   0x5   : > { %v972_v0 = vld [vmem:[%s1246_s1] sm:$0xff] (!%p188_p2)   ;;  %v973_v1 = vld [vmem:[%s1246_s1 + $0x8] sm:$0xff] (!%p188_p2)   ;;  %p215_p3 = scmp.lt.s32.totalorder (!%p188_p2), %s822_s19, 1  ;;  %v974_v2 = vld [vmem:[%s1246_s1 + $0x10] sm:$0xff] (!%p188_p2)   ;;  %vm320_vm0 = vcmask (!%p188_p2), 490496   ;;  %vm345_vm1 = vcmask (!%p188_p2), 1045504  }
   0x6   : > { %191 = sbr.rel (%p188_p2) target bundleno = 277 (0x115), region = 40  ;;  %914 = vmatprep.subr.bf16.mxu0 (!%p188_p2), %v972_v0  ;;  %938 = vmatprep.subr.bf16.mxu1 (!%p188_p2), %v972_v0  ;;  %v975_v3 = vld [vmem:[%s1246_s1 + $0x18] sm:$0x3f] (!%p188_p2)   ;;  %v1095_v21 = vld [vmem:[%s1247_s2] ss:$0 sm:$0xff] (!%p188_p2)  ;;  %vm750_vm2 = vcmask (!%p188_p2), 523264  }
   0x7   : > { %915 = vmatpush3.bf16.msra.mxu0 (!%p188_p2), %v972_v0  ;;  %939 = vmatpush3.bf16.msra.mxu1 (!%p188_p2), %v972_v0  ;;  %v347_v6 = vsel (!%p188_p2), %vm345_vm1, %v975_v3, 0  ;;  %v1100_v23 = vld [vmem:[%s1248_s3] ss:$0 sm:$0xff] (!%p188_p2) }
   0x8   : > { %916 = vmatprep.subr.bf16.mxu0 (!%p188_p2), %v973_v1  ;;  %940 = vmatprep.subr.bf16.mxu1 (!%p188_p2), %v973_v1  ;;  %v1107_v29 = vld [vmem:[%s1249_s4] ss:$0 sm:$0xff] (!%p188_p2) }
   0xb   : > { %917 = vmatpush3.bf16.msra.mxu0 (!%p188_p2), %v973_v1  ;;  %941 = vmatpush3.bf16.msra.mxu1 (!%p188_p2), %v973_v1 }
   0xc   : > { %918 = vmatprep.subr.bf16.mxu0 (!%p188_p2), %v974_v2  ;;  %942 = vmatprep.subr.bf16.mxu1 (!%p188_p2), %v974_v2 }
   0xd   : > { %s1252_s19 = smov (!%p215_p3, %s822_s19), 1 }
   0xe   : > { %s888_s26 = sshll.u32 %s1252_s19, 7 }
   0xf   : > { %s1058_s6 = scalar_lea.vmem %s1245_s0, %s888_s26  ;;  %919 = vmatpush3.bf16.msra.mxu0 %v974_v2  ;;  %943 = vmatpush3.bf16.msra.mxu1 %v974_v2  ;;  %s1134_s15 = scalar_lea.vmem %s1250_s5, %s888_s26 }
  0x10   : > { %v976_v4 = vld [vmem:[%s1058_s6] sm:$0xff]   ;;  %962 = vmatprep.subr.msk.bf16.mxu0 %vm345_vm1, %v975_v3  ;;  %963 = vmatprep.subr.msk.bf16.mxu1 %vm345_vm1, %v975_v3  ;;  %v978_v7 = vld [vmem:[%s1058_s6 + $0x8] sm:$0xff]   ;;  %v980_v9 = vld [vmem:[%s1058_s6 + $0x10] sm:$0xff]  }
  0x11   : > { %v977_v5 = vld [vmem:[%s1058_s6 + $0x40] sm:$0xff]   ;;  %922 = vmatprep.mubr.msk.bf16.mxu0 %vm320_vm0, %v976_v4  ;;  %v979_v8 = vld [vmem:[%s1058_s6 + $0x48] sm:$0xff]   ;;  %v981_v10 = vld [vmem:[%s1058_s6 + $0x50] sm:$0xff]  }
  0x12   : > { %946 = vmatprep.mubr.msk.bf16.mxu1 %vm320_vm0, %v977_v5  ;;  %v982_v11 = vld [vmem:[%s1058_s6 + $0x18] sm:$0xff]   ;;  %v984_v13 = vld [vmem:[%s1058_s6 + $0x20] sm:$0xff]   ;;  %v986_v15 = vld [vmem:[%s1058_s6 + $0x28] sm:$0xff]  }
  0x13   : > { %921 = vmatpush3.bf16.msra.mxu0 %v347_v6  ;;  %945 = vmatpush3.bf16.msra.mxu1 %v347_v6  ;;  %v983_v12 = vld [vmem:[%s1058_s6 + $0x58] sm:$0xff]   ;;  %v985_v14 = vld [vmem:[%s1058_s6 + $0x60] sm:$0xff]   ;;  %v987_v16 = vld [vmem:[%s1058_s6 + $0x68] sm:$0xff]  }
  0x14   : > { %v988_v17 = vld [vmem:[%s1058_s6 + $0x30] sm:$0xff]   ;;  %v990_v19 = vld [vmem:[%s1058_s6 + $0x38] sm:$0xff]  }
  0x15   : > { %v989_v18 = vld [vmem:[%s1058_s6 + $0x70] sm:$0xff]   ;;  %v991_v20 = vld [vmem:[%s1058_s6 + $0x78] sm:$0xff]  }
  0x16   : > { %923 = vmatmul.mubr.msk.bf16.vlgmr.msra.gmra.mrb[0].mxu0 %vm320_vm0, %v978_v7  ;;  %947 = vmatmul.mubr.msk.bf16.vlgmr.msra.gmra.mrb[0].mxu1 %vm320_vm0, %v979_v8 }
  0x17   : > { %926 = vmatprep.mubr.msk.bf16.mxu0 %vm320_vm0, %v980_v9  ;;  %950 = vmatprep.mubr.msk.bf16.mxu1 %vm320_vm0, %v981_v10 }
  0x1e   : > { %927 = vmatmul.mubr.msk.bf16.gmra.mrb[4].mxu0 %vm320_vm0, %v982_v11  ;;  %951 = vmatmul.mubr.msk.bf16.gmra.mrb[4].mxu1 %vm320_vm0, %v983_v12 }
  0x1f   : > { %930 = vmatprep.mubr.msk.bf16.mxu0 %vm320_vm0, %v984_v13  ;;  %954 = vmatprep.mubr.msk.bf16.mxu1 %vm320_vm0, %v985_v14 }
  0x26   : > { %931 = vmatmul.mubr.msk.bf16.gmra.mrb[8].mxu0 %vm320_vm0, %v986_v15  ;;  %955 = vmatmul.mubr.msk.bf16.gmra.mrb[8].mxu1 %vm320_vm0, %v987_v16 }
  0x27   : > { %934 = vmatprep.mubr.msk.bf16.mxu0 %vm320_vm0, %v988_v17  ;;  %958 = vmatprep.mubr.msk.bf16.mxu1 %vm320_vm0, %v989_v18 }
  0x2e   : > { %935 = vmatmul.mubr.msk.bf16.gmra.mrb[12].mxu0 %vm320_vm0, %v990_v19  ;;  %959 = vmatmul.mubr.msk.bf16.gmra.mrb[12].mxu1 %vm320_vm0, %v991_v20 }
  0xe9   : > { %v924_v22 = vpop.f32.mrb[0].mxu0  ;;  %v948_v24 = vpop.f32.mrb[0].mxu1 }
  0xea   : > { %v392_v25 = vadd.f32 %v924_v22, %v1095_v21  ;;  %v632_v26 = vadd.f32 %v948_v24, %v1095_v21  ;;  %v383_v27 = vpop.f32.mrb[1].mxu0  ;;  %v623_v28 = vpop.f32.mrb[1].mxu1 }
  0xeb   : > { %v384_v30 = vadd.f32 %v1095_v21, %v383_v27  ;;  %v624_v31 = vadd.f32 %v1095_v21, %v623_v28  ;;  %v925_v32 = vpop.f32.mrb[2].mxu0  ;;  %v949_v33 = vpop.f32.mrb[2].mxu1 }
  0xec   : > { %v455_v34 = vmul.f32 %v1100_v23, %v392_v25  ;;  %v688_v35 = vmul.f32 %v1100_v23, %v632_v26  ;;  %v395_v36 = vadd.f32 %v925_v32, %v1095_v21  ;;  %v635_v37 = vadd.f32 %v949_v33, %v1095_v21  ;;  %v386_v38 = vpop.f32.mrb[3].mxu0  ;;  %v626_v39 = vpop.f32.mrb[3].mxu1 }
  0xed   : > { %v453_v40 = vmul.f32 %v1100_v23, %v384_v30  ;;  %v686_v41 = vmul.f32 %v1100_v23, %v624_v31  ;;  %v387_v42 = vadd.f32 %v1095_v21, %v386_v38  ;;  %v627_v43 = vadd.f32 %v1095_v21, %v626_v39 }
  0xee   : > { %v478_v44 = vadd.f32 %v1107_v29, %v455_v34  ;;  %v704_v45 = vadd.f32 %v1107_v29, %v688_v35  ;;  %v456_v46 = vmul.f32 %v1100_v23, %v395_v36  ;;  %v689_v47 = vmul.f32 %v1100_v23, %v635_v37 }
  0xef   : > { %v476_v48 = vadd.f32 %v1107_v29, %v453_v40  ;;  %v702_v49 = vadd.f32 %v1107_v29, %v686_v41  ;;  %v454_v50 = vmul.f32 %v1100_v23, %v387_v42  ;;  %v687_v51 = vmul.f32 %v1100_v23, %v627_v43 }
  0xf0   : > { %v494_v52 = vmax.f32 %v478_v44, 0.0  ;;  %v720_v53 = vmax.f32 %v704_v45, 0.0  ;;  %v479_v54 = vadd.f32 %v1107_v29, %v456_v46  ;;  %v705_v55 = vadd.f32 %v1107_v29, %v689_v47 }
  0xf1   : > { %v492_v56 = vmax.f32 %v476_v48, 0.0  ;;  %v718_v57 = vmax.f32 %v702_v49, 0.0  ;;  %v477_v58 = vadd.f32 %v1107_v29, %v454_v50  ;;  %v703_v59 = vadd.f32 %v1107_v29, %v687_v51  ;;  %v928_v60 = vpop.f32.mrb[4].mxu0  ;;  %v952_v61 = vpop.f32.mrb[4].mxu1 }
  0xf2   : > { %v736_v62 = vmax.f32 %v494_v52, %v720_v53  ;;  %v495_v63 = vmax.f32 %v479_v54, 0.0  ;;  %v721_v0 = vmax.f32 %v705_v55, 0.0  ;;  %v408_v1 = vadd.f32 %v928_v60, %v1095_v21  ;;  %v399_v2 = vpop.f32.mrb[5].mxu0  ;;  %v639_v3 = vpop.f32.mrb[5].mxu1 }
  0xf3   : > { %v734_v4 = vmax.f32 %v492_v56, %v718_v57  ;;  %v493_v5 = vmax.f32 %v477_v58, 0.0  ;;  %v719_v6 = vmax.f32 %v703_v59, 0.0  ;;  %v648_v7 = vadd.f32 %v952_v61, %v1095_v21  ;;  %v929_v8 = vpop.f32.mrb[6].mxu0  ;;  %v953_v9 = vpop.f32.mrb[6].mxu1 }
  0xf4   : > { %753 = vst.msk [vmem:[%s1134_s15 + $0x10] sm:$0xff] %vm750_vm2, %v736_v62  ;;  %v737_v10 = vmax.f32 %v495_v63, %v721_v0  ;;  %v459_v11 = vmul.f32 %v1100_v23, %v408_v1  ;;  %v400_v12 = vadd.f32 %v1095_v21, %v399_v2  ;;  %v640_v13 = vadd.f32 %v1095_v21, %v639_v3  ;;  %v402_v14 = vpop.f32.mrb[7].mxu0  ;;  %v642_v15 = vpop.f32.mrb[7].mxu1 }
  0xf5   : > { %751 = vst.msk [vmem:[%s1134_s15] sm:$0xff] %vm750_vm2, %v734_v4  ;;  %v735_v16 = vmax.f32 %v493_v5, %v719_v6  ;;  %v692_v17 = vmul.f32 %v1100_v23, %v648_v7  ;;  %v411_v18 = vadd.f32 %v929_v8, %v1095_v21  ;;  %v651_v19 = vadd.f32 %v953_v9, %v1095_v21 }
  0xf6   : > { %754 = vst.msk [vmem:[%s1134_s15 + $0x18] sm:$0xff] %vm750_vm2, %v737_v10  ;;  %v482_v20 = vadd.f32 %v1107_v29, %v459_v11  ;;  %v457_v22 = vmul.f32 %v1100_v23, %v400_v12  ;;  %v690_v24 = vmul.f32 %v1100_v23, %v640_v13  ;;  %v403_v25 = vadd.f32 %v1095_v21, %v402_v14 }
  0xf7   : > { %752 = vst.msk [vmem:[%s1134_s15 + $0x8] sm:$0xff] %vm750_vm2, %v735_v16  ;;  %v708_v26 = vadd.f32 %v1107_v29, %v692_v17  ;;  %v460_v27 = vmul.f32 %v1100_v23, %v411_v18  ;;  %v693_v28 = vmul.f32 %v1100_v23, %v651_v19  ;;  %v643_v30 = vadd.f32 %v1095_v21, %v642_v15 }
  0xf8   : > { %v498_v31 = vmax.f32 %v482_v20, 0.0  ;;  %v480_v32 = vadd.f32 %v1107_v29, %v457_v22  ;;  %v706_v33 = vadd.f32 %v1107_v29, %v690_v24  ;;  %v458_v34 = vmul.f32 %v1100_v23, %v403_v25 }
  0xf9   : > { %v724_v35 = vmax.f32 %v708_v26, 0.0  ;;  %v483_v36 = vadd.f32 %v1107_v29, %v460_v27  ;;  %v709_v37 = vadd.f32 %v1107_v29, %v693_v28  ;;  %v691_v38 = vmul.f32 %v1100_v23, %v643_v30  ;;  %v932_v39 = vpop.f32.mrb[8].mxu0  ;;  %v956_v40 = vpop.f32.mrb[8].mxu1 }
  0xfa   : > { %v496_v41 = vmax.f32 %v480_v32, 0.0  ;;  %v722_v42 = vmax.f32 %v706_v33, 0.0  ;;  %v481_v43 = vadd.f32 %v1107_v29, %v458_v34  ;;  %v424_v44 = vadd.f32 %v932_v39, %v1095_v21  ;;  %v415_v45 = vpop.f32.mrb[9].mxu0  ;;  %v655_v46 = vpop.f32.mrb[9].mxu1 }
  0xfb   : > { %v740_v47 = vmax.f32 %v498_v31, %v724_v35  ;;  %v499_v48 = vmax.f32 %v483_v36, 0.0  ;;  %v725_v49 = vmax.f32 %v709_v37, 0.0  ;;  %v707_v50 = vadd.f32 %v1107_v29, %v691_v38  ;;  %v933_v51 = vpop.f32.mrb[10].mxu0  ;;  %v957_v52 = vpop.f32.mrb[10].mxu1 }
  0xfc   : > { %v738_v53 = vmax.f32 %v496_v41, %v722_v42  ;;  %v497_v54 = vmax.f32 %v481_v43, 0.0  ;;  %v463_v55 = vmul.f32 %v1100_v23, %v424_v44  ;;  %v664_v56 = vadd.f32 %v956_v40, %v1095_v21  ;;  %v418_v57 = vpop.f32.mrb[11].mxu0  ;;  %v658_v58 = vpop.f32.mrb[11].mxu1 }
  0xfd   : > { %757 = vst.msk [vmem:[%s1134_s15 + $0x30] sm:$0xff] %vm750_vm2, %v740_v47  ;;  %v741_v59 = vmax.f32 %v499_v48, %v725_v49  ;;  %v723_v60 = vmax.f32 %v707_v50, 0.0  ;;  %v416_v61 = vadd.f32 %v1095_v21, %v415_v45  ;;  %v656_v62 = vadd.f32 %v1095_v21, %v655_v46 }
  0xfe   : > { %755 = vst.msk [vmem:[%s1134_s15 + $0x20] sm:$0xff] %vm750_vm2, %v738_v53  ;;  %v486_v63 = vadd.f32 %v1107_v29, %v463_v55  ;;  %v696_v0 = vmul.f32 %v1100_v23, %v664_v56  ;;  %v427_v1 = vadd.f32 %v933_v51, %v1095_v21  ;;  %v667_v2 = vadd.f32 %v957_v52, %v1095_v21 }
  0xff   : > { %758 = vst.msk [vmem:[%s1134_s15 + $0x38] sm:$0xff] %vm750_vm2, %v741_v59  ;;  %v739_v3 = vmax.f32 %v497_v54, %v723_v60  ;;  %v461_v4 = vmul.f32 %v1100_v23, %v416_v61  ;;  %v694_v5 = vmul.f32 %v1100_v23, %v656_v62  ;;  %v419_v6 = vadd.f32 %v1095_v21, %v418_v57 }
 0x100   : > { %v502_v7 = vmax.f32 %v486_v63, 0.0  ;;  %v712_v8 = vadd.f32 %v1107_v29, %v696_v0  ;;  %v464_v9 = vmul.f32 %v1100_v23, %v427_v1  ;;  %v697_v10 = vmul.f32 %v1100_v23, %v667_v2 }
 0x101   : > { %756 = vst.msk [vmem:[%s1134_s15 + $0x28] sm:$0xff] %vm750_vm2, %v739_v3  ;;  %v484_v11 = vadd.f32 %v1107_v29, %v461_v4  ;;  %v710_v12 = vadd.f32 %v1107_v29, %v694_v5  ;;  %v462_v13 = vmul.f32 %v1100_v23, %v419_v6  ;;  %v659_v14 = vadd.f32 %v1095_v21, %v658_v58  ;;  %v936_v15 = vpop.f32.mrb[12].mxu0  ;;  %v960_v16 = vpop.f32.mrb[12].mxu1 }
 0x102   : > { %v728_v17 = vmax.f32 %v712_v8, 0.0  ;;  %v487_v18 = vadd.f32 %v1107_v29, %v464_v9  ;;  %v713_v19 = vadd.f32 %v1107_v29, %v697_v10  ;;  %v440_v20 = vadd.f32 %v936_v15, %v1095_v21  ;;  %v431_v22 = vpop.f32.mrb[13].mxu0  ;;  %v671_v24 = vpop.f32.mrb[13].mxu1 }
 0x103   : > { %v500_v25 = vmax.f32 %v484_v11, 0.0  ;;  %v726_v26 = vmax.f32 %v710_v12, 0.0  ;;  %v485_v27 = vadd.f32 %v1107_v29, %v462_v13  ;;  %v695_v28 = vmul.f32 %v1100_v23, %v659_v14  ;;  %v937_v30 = vpop.f32.mrb[14].mxu0  ;;  %v961_v31 = vpop.f32.mrb[14].mxu1 }
 0x104   : > { %v744_v32 = vmax.f32 %v502_v7, %v728_v17  ;;  %v503_v33 = vmax.f32 %v487_v18, 0.0  ;;  %v729_v34 = vmax.f32 %v713_v19, 0.0  ;;  %v467_v35 = vmul.f32 %v1100_v23, %v440_v20  ;;  %v434_v36 = vpop.f32.mrb[15].mxu0  ;;  %v674_v37 = vpop.f32.mrb[15].mxu1 }
 0x105   : > { %v742_v38 = vmax.f32 %v500_v25, %v726_v26  ;;  %v501_v39 = vmax.f32 %v485_v27, 0.0  ;;  %v711_v40 = vadd.f32 %v1107_v29, %v695_v28  ;;  %v680_v41 = vadd.f32 %v960_v16, %v1095_v21 }
 0x106   : > { %761 = vst.msk [vmem:[%s1134_s15 + $0x50] sm:$0xff] %vm750_vm2, %v744_v32  ;;  %v745_v42 = vmax.f32 %v503_v33, %v729_v34  ;;  %v490_v43 = vadd.f32 %v1107_v29, %v467_v35  ;;  %v432_v44 = vadd.f32 %v1095_v21, %v431_v22  ;;  %v672_v45 = vadd.f32 %v1095_v21, %v671_v24 }
 0x107   : > { %759 = vst.msk [vmem:[%s1134_s15 + $0x40] sm:$0xff] %vm750_vm2, %v742_v38  ;;  %v727_v46 = vmax.f32 %v711_v40, 0.0  ;;  %v700_v47 = vmul.f32 %v1100_v23, %v680_v41  ;;  %v443_v48 = vadd.f32 %v937_v30, %v1095_v21  ;;  %v683_v49 = vadd.f32 %v961_v31, %v1095_v21 }
 0x108   : > { %762 = vst.msk [vmem:[%s1134_s15 + $0x58] sm:$0xff] %vm750_vm2, %v745_v42  ;;  %v506_v50 = vmax.f32 %v490_v43, 0.0  ;;  %v465_v51 = vmul.f32 %v1100_v23, %v432_v44  ;;  %v698_v52 = vmul.f32 %v1100_v23, %v672_v45  ;;  %v435_v53 = vadd.f32 %v1095_v21, %v434_v36 }
 0x109   : > { %v743_v54 = vmax.f32 %v501_v39, %v727_v46  ;;  %v716_v55 = vadd.f32 %v1107_v29, %v700_v47  ;;  %v468_v56 = vmul.f32 %v1100_v23, %v443_v48  ;;  %v701_v57 = vmul.f32 %v1100_v23, %v683_v49 }
 0x10a   : > { %v488_v58 = vadd.f32 %v1107_v29, %v465_v51  ;;  %v714_v59 = vadd.f32 %v1107_v29, %v698_v52  ;;  %v466_v60 = vmul.f32 %v1100_v23, %v435_v53  ;;  %v675_v61 = vadd.f32 %v1095_v21, %v674_v37 }
 0x10b   : > { %760 = vst.msk [vmem:[%s1134_s15 + $0x48] sm:$0xff] %vm750_vm2, %v743_v54  ;;  %v732_v62 = vmax.f32 %v716_v55, 0.0  ;;  %v491_v63 = vadd.f32 %v1107_v29, %v468_v56  ;;  %v717_v0 = vadd.f32 %v1107_v29, %v701_v57 }
 0x10c   : > { %v504_v1 = vmax.f32 %v488_v58, 0.0  ;;  %v730_v2 = vmax.f32 %v714_v59, 0.0  ;;  %v489_v3 = vadd.f32 %v1107_v29, %v466_v60  ;;  %v699_v4 = vmul.f32 %v1100_v23, %v675_v61 }
 0x10d   : > { %v748_v5 = vmax.f32 %v506_v50, %v732_v62  ;;  %v507_v6 = vmax.f32 %v491_v63, 0.0  ;;  %v733_v7 = vmax.f32 %v717_v0, 0.0 }
 0x10e   : > { %v746_v21 = vmax.f32 %v504_v1, %v730_v2  ;;  %v505_v8 = vmax.f32 %v489_v3, 0.0  ;;  %v715_v9 = vadd.f32 %v1107_v29, %v699_v4 }
 0x10f   : > { %765 = vst.msk [vmem:[%s1134_s15 + $0x70] sm:$0xff] %vm750_vm2, %v748_v5  ;;  %v749_v10 = vmax.f32 %v507_v6, %v733_v7 }
 0x110   : > { %763 = vst.msk [vmem:[%s1134_s15 + $0x60] sm:$0xff] %vm750_vm2, %v746_v21  ;;  %v731_v11 = vmax.f32 %v715_v9, 0.0 }
 0x111   : > { %766 = vst.msk [vmem:[%s1134_s15 + $0x78] sm:$0xff] %vm750_vm2, %v749_v10 }
 0x112   : > { %v747_v12 = vmax.f32 %v505_v8, %v731_v11 }
 0x114   : > { %764 = vst.msk [vmem:[%s1134_s15 + $0x68] sm:$0xff] %vm750_vm2, %v747_v12 }
 0x115 PF: > { %s15_s18 = sadd.s32 1, %s998_s18  }
 0x116   : > { %p12_p4 = scmp.ge.s32.totalorder %s15_s18, 4  }
 0x118   :  { %14 = sbr.rel (!%p12_p4) target bundleno = 1 (0x1), region = 71 }

// kernel: basenji_v1_forward.6
= control target key start
LH: loop header
LB: loop body
LE: loop exit
PB: predicated region body
PF: predicated region fallthrough
CT: control target
= control target key end

     0   :  { %s1472_s18 = smov 0   ;;  %s1790_s0 = inlined_call_operand.vmem [shape: bf16[2,4,32,320], index: 0, kind: input, shape index: {}]   ;;  %s1791_s1 = inlined_call_operand.vmem [shape: bf16[320,72], index: 1, kind: input, shape index: {}]   ;;  %s1792_s2 = inlined_call_operand.vmem [shape: f32[1,72], index: 2, kind: input, shape index: {}]   ;;  %s1793_s3 = inlined_call_operand.vmem [shape: f32[1,72], index: 3, kind: input, shape index: {}]   ;;  %s1794_s4 = inlined_call_operand.vmem [shape: f32[1,72], index: 4, kind: input, shape index: {}]   ;;  %s1795_s5 = inlined_call_operand.vmem [shape: f32[2,32,72], index: 5, kind: output, shape index: {}]  }
   0x1 LB: > { %s1099_s19 = sadd.s32 4294967295, %s1440_s18   ;;  %p1103_p0 = scmp.ge.s32.totalorder %s1440_s18, 1  ;;  %s1440_s18 = sphi %s1472_s18, %s15_s18  }
   0x2   : > { %p187_p1 = scmp.lt.s32.totalorder %s1440_s18, 3 }
   0x4   : > { %p188_p2 = pnand %p1103_p0, %p187_p1 }
   0x5   : > { %v1483_v0 = vld [vmem:[%s1791_s1 + $0x40] sm:$0xff] (!%p188_p2)   ;;  %p215_p3 = scmp.lt.s32.totalorder (!%p188_p2), %s1099_s19, 1  ;;  %v1502_v3 = vld [vmem:[%s1791_s1 + $0x48] sm:$0xff] (!%p188_p2)   ;;  %v1522_v6 = vld [vmem:[%s1791_s1 + $0x50] sm:$0xff] (!%p188_p2)   ;;  %vm431_vm0 = vcmask (!%p188_p2), 523264   ;;  %vm1039_vm1 = vcmask (!%p188_p2), 588800  }
   0x6   : > { %191 = sbr.rel (%p188_p2) target bundleno = 341 (0x155), region = 40  ;;  %v1488_v1 = vld [vmem:[%s1791_s1 + $0x80] sm:$0xff] (!%p188_p2)   ;;  %1189 = vmatprep.subr.bf16.mxu0 (!%p188_p2), %v1483_v0  ;;  %v1509_v4 = vld [vmem:[%s1791_s1 + $0x88] sm:$0xff] (!%p188_p2)   ;;  %v1527_v7 = vld [vmem:[%s1791_s1 + $0x90] sm:$0xff] (!%p188_p2)  }
   0x7   : > { %v1494_v2 = vld [vmem:[%s1791_s1] sm:$0xff] (!%p188_p2)   ;;  %1325 = vmatprep.subr.bf16.mxu1 (!%p188_p2), %v1488_v1  ;;  %v1515_v5 = vld [vmem:[%s1791_s1 + $0x8] sm:$0xff] (!%p188_p2)   ;;  %v1534_v8 = vld [vmem:[%s1791_s1 + $0x10] sm:$0xff] (!%p188_p2)  }
   0x8   : > { %1190 = vmatpush3.bf16.msra.mxu0 (!%p188_p2), %v1494_v2  ;;  %1326 = vmatpush3.bf16.msra.mxu1 (!%p188_p2), %v1488_v1  ;;  %v1541_v9 = vld [vmem:[%s1791_s1 + $0x58] sm:$0xff] (!%p188_p2)   ;;  %v1566_v13 = vld [vmem:[%s1791_s1 + $0x60] sm:$0xff] (!%p188_p2)   ;;  %v1582_v16 = vld [vmem:[%s1791_s1 + $0x68] sm:$0xff] (!%p188_p2)  }
   0x9   : > { %1191 = vmatprep.subr.bf16.mxu0 (!%p188_p2), %v1502_v3  ;;  %1327 = vmatprep.subr.bf16.mxu1 (!%p188_p2), %v1509_v4  ;;  %v1551_v10 = vld [vmem:[%s1791_s1 + $0x98] sm:$0xff] (!%p188_p2)   ;;  %v1575_v15 = vld [vmem:[%s1791_s1 + $0x20] sm:$0xff] (!%p188_p2)   ;;  %v1590_v17 = vld [vmem:[%s1791_s1 + $0x28] sm:$0xff] (!%p188_p2)  }
   0xa   : > { %v1556_v11 = vld [vmem:[%s1791_s1 + $0x18] sm:$0xff] (!%p188_p2)   ;;  %v1597_v18 = vld [vmem:[%s1791_s1 + $0x70] sm:$0xff] (!%p188_p2)   ;;  %v1719_v49 = vld [vmem:[%s1792_s2] ss:$0 sm:$0xff] (!%p188_p2) }
   0xb   : > { %v1605_v20 = vld [vmem:[%s1791_s1 + $0x30] sm:$0xff] (!%p188_p2)   ;;  %v1612_v21 = vld [vmem:[%s1791_s1 + $0x78] sm:$0xff] (!%p188_p2)  }
   0xc   : > { %1192 = vmatpush3.bf16.msra.mxu0 (!%p188_p2), %v1515_v5  ;;  %1328 = vmatpush3.bf16.msra.mxu1 (!%p188_p2), %v1509_v4  ;;  %v1620_v23 = vld [vmem:[%s1791_s1 + $0x38] sm:$0xff] (!%p188_p2)  }
   0xd   : > { %s1797_s19 = smov (!%p215_p3, %s1099_s19), 1  ;;  %1193 = vmatprep.subr.bf16.mxu0 %v1522_v6  ;;  %1329 = vmatprep.subr.bf16.mxu1 %v1527_v7 }
   0xe   : > { %s1373_s7 = smul.u32 192, %s1797_s19  ;;  %s1188_s24 = sshll.u32 %s1797_s19, 5 }
   0xf   : > { %s224_s27 = scalar_lea.vmem %s1795_s5, %s1188_s24 }
  0x10   : > { %s1546_s20 = scalar_lea.vmem %s1790_s0, %s1373_s7  ;;  %1194 = vmatpush3.bf16.msra.mxu0 %v1534_v8  ;;  %1330 = vmatpush3.bf16.msra.mxu1 %v1527_v7 }
  0x11   : > { %v1394_v12 = vld [vmem:[%s1546_s20 + $0x8] ss:$12 sps:$4 sm:$0xff]   ;;  %1195 = vmatprep.subr.bf16.mxu0 %v1541_v9  ;;  %1331 = vmatprep.subr.bf16.mxu1 %v1551_v10  ;;  %v1396_v14 = vld [vmem:[%s1546_s20 + $0x20] ss:$12 sps:$4 sm:$0xff]   ;;  %v1406_v19 = vld [vmem:[%s1546_s20 + $0x4] ss:$12 sps:$4 sm:$0xff]  }
  0x12   : > { %1333 = vmatprep.mubr.msk.bf16.mxu1 %vm431_vm0, %v1394_v12  ;;  %v1412_v22 = vld [vmem:[%s1546_s20 + $0x34] ss:$12 sps:$4 sm:$0xff]   ;;  %470 = vmatprep.mubr.bf16.mxu0 %v1406_v19  ;;  %v1407_v25 = vld [vmem:[%s1546_s20 + $0x1c] ss:$12 sps:$4 sm:$0xff]   ;;  %v1409_v26 = vld [vmem:[%s1546_s20 + $0x18] ss:$12 sps:$4 sm:$0xff]  }
  0x13   : > { %v1404_v24 = vld [vmem:[%s1546_s20] ss:$12 sps:$4 sm:$0xff]   ;;  %v1413_v27 = vld [vmem:[%s1546_s20 + $0x38] ss:$12 sps:$4 sm:$0xff]   ;;  %v1410_v28 = vld [vmem:[%s1546_s20 + $0x30] ss:$12 sps:$4 sm:$0xff]  }
  0x14   : > { %1196 = vmatpush3.bf16.msra.mxu0 %v1556_v11  ;;  %1332 = vmatpush3.bf16.msra.mxu1 %v1551_v10  ;;  %v1414_v29 = vld [vmem:[%s1546_s20 + $0x50] ss:$12 sps:$4 sm:$0xff]   ;;  %v1415_v30 = vld [vmem:[%s1546_s20 + $0x4c] ss:$12 sps:$4 sm:$0xff]   ;;  %v1417_v32 = vld [vmem:[%s1546_s20 + $0x48] ss:$12 sps:$4 sm:$0xff]  }
  0x15   : > { %1197 = vmatprep.subr.bf16.mxu0 %v1566_v13  ;;  %1223 = vmatprep.subr.bf16.mxu1 %v1483_v0  ;;  %v1422_v31 = vld [vmem:[%s1546_s20 + $0x64] ss:$12 sps:$4 sm:$0xff]   ;;  %v1418_v33 = vld [vmem:[%s1546_s20 + $0x68] ss:$12 sps:$4 sm:$0xff]   ;;  %v1419_v34 = vld [vmem:[%s1546_s20 + $0x80] ss:$12 sps:$4 sm:$0xff]  }
  0x16   : > { %v1428_v35 = vld [vmem:[%s1546_s20 + $0x94] ss:$12 sps:$4 sm:$0xff]   ;;  %v1423_v37 = vld [vmem:[%s1546_s20 + $0x7c] ss:$12 sps:$4 sm:$0xff]   ;;  %v1425_v38 = vld [vmem:[%s1546_s20 + $0x78] ss:$12 sps:$4 sm:$0xff]  }
  0x17   : > { %1334 = vmatmul.mubr.msk.bf16.vlgmr.msra.gmra.mrb[0].mxu1 %vm431_vm0, %v1396_v14  ;;  %v1420_v36 = vld [vmem:[%s1546_s20 + $0x60] ss:$12 sps:$4 sm:$0xff]   ;;  %v1429_v39 = vld [vmem:[%s1546_s20 + $0x98] ss:$12 sps:$4 sm:$0xff]   ;;  %v1426_v40 = vld [vmem:[%s1546_s20 + $0x90] ss:$12 sps:$4 sm:$0xff]  }
  0x18   : > { %1198 = vmatpush3.bf16.msra.mxu0 %v1575_v15  ;;  %1224 = vmatpush3.bf16.msra.mxu1 %v1494_v2  ;;  %v1430_v41 = vld [vmem:[%s1546_s20 + $0xb0] ss:$12 sps:$4 sm:$0xff]   ;;  %v1431_v42 = vld [vmem:[%s1546_s20 + $0xac] ss:$12 sps:$4 sm:$0xff]   ;;  %v1433_v43 = vld [vmem:[%s1546_s20 + $0xa8] ss:$12 sps:$4 sm:$0xff]  }
  0x19   : > { %1199 = vmatprep.subr.bf16.mxu0 %v1582_v16  ;;  %1225 = vmatprep.subr.bf16.mxu1 %v1502_v3 }
  0x1a   : > { %639 = vmatprep.mubr.bf16.mxu1 %v1412_v22 }
  0x1c   : > { %1200 = vmatpush3.bf16.msra.mxu0 %v1590_v17  ;;  %1226 = vmatpush3.bf16.msra.mxu1 %v1515_v5 }
  0x1d   : > { %1201 = vmatprep.subr.bf16.mxu0 %v1597_v18  ;;  %1227 = vmatprep.subr.bf16.mxu1 %v1522_v6 }
  0x20   : > { %1202 = vmatpush3.bf16.msra.mxu0 %v1605_v20  ;;  %1228 = vmatpush3.bf16.msra.mxu1 %v1534_v8 }
  0x21   : > { %1203 = vmatprep.subr.bf16.mxu0 %v1612_v21  ;;  %1229 = vmatprep.subr.bf16.mxu1 %v1541_v9 }
  0x24   : > { %1204 = vmatpush3.bf16.msra.mxu0 %v1620_v23  ;;  %1230 = vmatpush3.bf16.msra.mxu1 %v1556_v11 }
  0x25   : > { %1231 = vmatprep.subr.bf16.mxu1 %v1566_v13  ;;  %1337 = vmatprep.subr.bf16.mxu0 %v1488_v1 }
  0x27   : > { %471 = vmatmul.mubr.bf16.vlgmr.msra.gmra.mrb[0].mxu0 %v1404_v24 }
  0x28   : > { %1232 = vmatpush3.bf16.msra.mxu1 %v1575_v15  ;;  %1338 = vmatpush3.bf16.msra.mxu0 %v1488_v1 }
  0x29   : > { %1233 = vmatprep.subr.bf16.mxu1 %v1582_v16  ;;  %1339 = vmatprep.subr.bf16.mxu0 %v1509_v4 }
  0x2a   : > { %478 = vmatprep.mubr.bf16.mxu0 %v1407_v25 }
  0x2c   : > { %1234 = vmatpush3.bf16.msra.mxu1 %v1590_v17  ;;  %1340 = vmatpush3.bf16.msra.mxu0 %v1509_v4 }
  0x2d   : > { %1235 = vmatprep.subr.bf16.mxu1 %v1597_v18  ;;  %1341 = vmatprep.subr.bf16.mxu0 %v1527_v7 }
  0x2f   : > { %479 = vmatmul.mubr.bf16.gmra.mrb[4].mxu0 %v1409_v26 }
  0x30   : > { %1236 = vmatpush3.bf16.msra.mxu1 %v1605_v20  ;;  %1342 = vmatpush3.bf16.msra.mxu0 %v1527_v7 }
  0x31   : > { %1237 = vmatprep.subr.bf16.mxu1 %v1612_v21  ;;  %1343 = vmatprep.subr.bf16.mxu0 %v1551_v10 }
  0x32   : > { %1345 = vmatprep.mubr.msk.bf16.mxu0 %vm431_vm0, %v1413_v27 }
  0x34   : > { %1238 = vmatpush3.bf16.msra.mxu1 %v1620_v23  ;;  %1344 = vmatpush3.bf16.msra.mxu0 %v1551_v10 }
  0x35   : > { %1257 = vmatprep.subr.bf16.mxu0 %v1483_v0  ;;  %1349 = vmatprep.subr.bf16.mxu1 %v1488_v1 }
  0x37   : > { %640 = vmatmul.mubr.bf16.vlgmr.msra.gmra.mrb[4].mxu1 %v1410_v28  ;;  %1346 = vmatmul.mubr.msk.bf16.vlgmr.msra.gmra.mrb[8].mxu0 %vm431_vm0, %v1414_v29 }
  0x38   : > { %1258 = vmatpush3.bf16.msra.mxu0 %v1494_v2  ;;  %1350 = vmatpush3.bf16.msra.mxu1 %v1488_v1 }
  0x39   : > { %1259 = vmatprep.subr.bf16.mxu0 %v1502_v3  ;;  %1351 = vmatprep.subr.bf16.mxu1 %v1509_v4 }
  0x3a   : > { %647 = vmatprep.mubr.bf16.mxu1 %v1415_v30  ;;  %798 = vmatprep.mubr.bf16.mxu0 %v1422_v31 }
  0x3c   : > { %1260 = vmatpush3.bf16.msra.mxu0 %v1515_v5  ;;  %1352 = vmatpush3.bf16.msra.mxu1 %v1509_v4 }
  0x3d   : > { %1261 = vmatprep.subr.bf16.mxu0 %v1522_v6  ;;  %1353 = vmatprep.subr.bf16.mxu1 %v1527_v7 }
  0x3f   : > { %648 = vmatmul.mubr.bf16.gmra.mrb[8].mxu1 %v1417_v32 }
  0x40   : > { %1262 = vmatpush3.bf16.msra.mxu0 %v1534_v8  ;;  %1354 = vmatpush3.bf16.msra.mxu1 %v1527_v7 }
  0x41   : > { %1263 = vmatprep.subr.bf16.mxu0 %v1541_v9  ;;  %1355 = vmatprep.subr.bf16.mxu1 %v1551_v10 }
  0x42   : > { %1357 = vmatprep.mubr.msk.bf16.mxu1 %vm431_vm0, %v1418_v33 }
  0x44   : > { %1264 = vmatpush3.bf16.msra.mxu0 %v1556_v11  ;;  %1356 = vmatpush3.bf16.msra.mxu1 %v1551_v10 }
  0x45   : > { %1265 = vmatprep.subr.bf16.mxu0 %v1566_v13  ;;  %1291 = vmatprep.subr.bf16.mxu1 %v1483_v0 }
  0x47   : > { %1358 = vmatmul.mubr.msk.bf16.vlgmr.msra.gmra.mrb[12].mxu1 %vm431_vm0, %v1419_v34 }
  0x48   : > { %1266 = vmatpush3.bf16.msra.mxu0 %v1575_v15  ;;  %1292 = vmatpush3.bf16.msra.mxu1 %v1494_v2 }
  0x49   : > { %1267 = vmatprep.subr.bf16.mxu0 %v1582_v16  ;;  %1293 = vmatprep.subr.bf16.mxu1 %v1502_v3 }
  0x4a   : > { %957 = vmatprep.mubr.bf16.mxu1 %v1428_v35 }
  0x4c   : > { %1268 = vmatpush3.bf16.msra.mxu0 %v1590_v17  ;;  %1294 = vmatpush3.bf16.msra.mxu1 %v1515_v5 }
  0x4d   : > { %1269 = vmatprep.subr.bf16.mxu0 %v1597_v18  ;;  %1295 = vmatprep.subr.bf16.mxu1 %v1522_v6 }
  0x50   : > { %1270 = vmatpush3.bf16.msra.mxu0 %v1605_v20  ;;  %1296 = vmatpush3.bf16.msra.mxu1 %v1534_v8 }
  0x51   : > { %1271 = vmatprep.subr.bf16.mxu0 %v1612_v21  ;;  %1297 = vmatprep.subr.bf16.mxu1 %v1541_v9 }
  0x54   : > { %1272 = vmatpush3.bf16.msra.mxu0 %v1620_v23  ;;  %1298 = vmatpush3.bf16.msra.mxu1 %v1556_v11 }
  0x55   : > { %1299 = vmatprep.subr.bf16.mxu1 %v1566_v13  ;;  %1361 = vmatprep.subr.bf16.mxu0 %v1488_v1 }
  0x57   : > { %799 = vmatmul.mubr.bf16.vlgmr.msra.gmra.mrb[12].mxu0 %v1420_v36 }
  0x58   : > { %1300 = vmatpush3.bf16.msra.mxu1 %v1575_v15  ;;  %1362 = vmatpush3.bf16.msra.mxu0 %v1488_v1 }
  0x59   : > { %1301 = vmatprep.subr.bf16.mxu1 %v1582_v16  ;;  %806 = vmatprep.mubr.bf16.mxu0 %v1423_v37  ;;  %v1734_v16 = vld [vmem:[%s1794_s4] ss:$0 sm:$0xff] }
  0x5a   : > { %1363 = vmatprep.subr.bf16.mxu0 %v1509_v4 }
  0x5c   : > { %1302 = vmatpush3.bf16.msra.mxu1 %v1590_v17  ;;  %1364 = vmatpush3.bf16.msra.mxu0 %v1509_v4  ;;  %v1728_v4 = vld [vmem:[%s1793_s3] ss:$0 sm:$0xff] }
  0x5d   : > { %1303 = vmatprep.subr.bf16.mxu1 %v1597_v18  ;;  %1365 = vmatprep.subr.bf16.mxu0 %v1527_v7 }
  0x5f   : > { %807 = vmatmul.mubr.bf16.gmra.mrb[16].mxu0 %v1425_v38 }
  0x60   : > { %1304 = vmatpush3.bf16.msra.mxu1 %v1605_v20  ;;  %1366 = vmatpush3.bf16.msra.mxu0 %v1527_v7 }
  0x61   : > { %1305 = vmatprep.subr.bf16.mxu1 %v1612_v21  ;;  %1367 = vmatprep.subr.bf16.mxu0 %v1551_v10 }
  0x62   : > { %1369 = vmatprep.mubr.msk.bf16.mxu0 %vm431_vm0, %v1429_v39 }
  0x64   : > { %1306 = vmatpush3.bf16.msra.mxu1 %v1620_v23  ;;  %1368 = vmatpush3.bf16.msra.mxu0 %v1551_v10 }
  0x67   : > { %958 = vmatmul.mubr.bf16.vlgmr.msra.gmra.mrb[16].mxu1 %v1426_v40  ;;  %1370 = vmatmul.mubr.msk.bf16.vlgmr.msra.gmra.mrb[20].mxu0 %vm431_vm0, %v1430_v41 }
  0x68   : > { %965 = vmatprep.mubr.bf16.mxu1 %v1431_v42 }
  0x6f   : > { %966 = vmatmul.mubr.bf16.gmra.mrb[20].mxu1 %v1433_v43 }
  0xea   : > { %v1335_v44 = vpop.f32.mrb[0].mxu1 }
  0xeb   : > { %v521_v45 = vpop.f32.mrb[1].mxu1 }
  0xec   : > { %v1336_v46 = vpop.f32.mrb[2].mxu1 }
  0xed   : > { %v524_v47 = vpop.f32.mrb[3].mxu1 }
  0xfa   : > { %v1205_v48 = vpop.f32.mrb[0].mxu0 }
  0xfb   : > { %v1206_v50 = vpop.f32.mrb[1].mxu0 }
  0xfc   : > { %v1207_v51 = vadd.f32 %v1206_v50, %v1205_v48  ;;  %v1208_v52 = vpop.f32.mrb[2].mxu0 }
  0xfd   : > { %v1209_v53 = vpop.f32.mrb[3].mxu0 }
  0xfe   : > { %v473_v54 = vadd.f32 %v1207_v51, %v1719_v49  ;;  %v1210_v55 = vadd.f32 %v1209_v53, %v1208_v52 }
 0x100   : > { %v522_v56 = vadd.f32 %v521_v45, %v473_v54  ;;  %v476_v57 = vadd.f32 %v1210_v55, %v1719_v49 }
 0x102   : > { %v525_v58 = vadd.f32 %v524_v47, %v476_v57  ;;  %v1211_v59 = vpop.f32.mrb[4].mxu0  ;;  %v543_v13 = vmul.f32 %v1728_v4, %v522_v56 }
 0x103   : > { %v1212_v60 = vpop.f32.mrb[5].mxu0 }
 0x104   : > { %v1213_v61 = vadd.f32 %v1212_v60, %v1211_v59  ;;  %v1214_v62 = vpop.f32.mrb[6].mxu0  ;;  %v544_v19 = vmul.f32 %v1728_v4, %v525_v58  ;;  %v554_v22 = vadd.f32 %v1734_v16, %v543_v13 }
 0x105   : > { %v1215_v63 = vpop.f32.mrb[7].mxu0 }
 0x106   : > { %v481_v0 = vadd.f32 %v1213_v61, %v1719_v49  ;;  %v1216_v1 = vadd.f32 %v1215_v63, %v1214_v62  ;;  %v555_v26 = vadd.f32 %v1734_v16, %v544_v19  ;;  %v558_v33 = vmax.f32 %v554_v22, 0.0 }
 0x108   : > { %v530_v2 = vadd.f32 %v1335_v44, %v481_v0  ;;  %v484_v3 = vadd.f32 %v1216_v1, %v1719_v49  ;;  %v559_v40 = vmax.f32 %v555_v26, 0.0 }
 0x10a   : > { %v533_v5 = vadd.f32 %v1336_v46, %v484_v3  ;;  %v1239_v6 = vpop.f32.mrb[4].mxu1  ;;  %v1347_v7 = vpop.f32.mrb[8].mxu0  ;;  %v545_v32 = vmul.f32 %v1728_v4, %v530_v2 }
 0x10b   : > { %v1240_v8 = vpop.f32.mrb[5].mxu1  ;;  %v690_v9 = vpop.f32.mrb[9].mxu0 }
 0x10c   : > { %v1241_v10 = vadd.f32 %v1240_v8, %v1239_v6  ;;  %v1242_v11 = vpop.f32.mrb[6].mxu1  ;;  %v1348_v12 = vpop.f32.mrb[10].mxu0  ;;  %v546_v39 = vmul.f32 %v1728_v4, %v533_v5  ;;  %v556_v45 = vadd.f32 %v1734_v16, %v545_v32 }
 0x10d   : > { %v1243_v14 = vpop.f32.mrb[7].mxu1  ;;  %v693_v15 = vpop.f32.mrb[11].mxu0 }
 0x10e   : > { %v1244_v17 = vadd.f32 %v1243_v14, %v1242_v11  ;;  %v642_v18 = vadd.f32 %v1241_v10, %v1719_v49  ;;  %v557_v52 = vadd.f32 %v1734_v16, %v546_v39  ;;  %v560_v57 = vmax.f32 %v556_v45, 0.0 }
 0x110   : > { %v691_v20 = vadd.f32 %v690_v9, %v642_v18  ;;  %v645_v21 = vadd.f32 %v1244_v17, %v1719_v49  ;;  %v561_v60 = vmax.f32 %v557_v52, 0.0 }
 0x112   : > { %v705_v23 = vmul.f32 %v1728_v4, %v691_v20  ;;  %v694_v24 = vadd.f32 %v693_v15, %v645_v21  ;;  %v1245_v25 = vpop.f32.mrb[8].mxu1 }
 0x113   : > { %v1246_v27 = vpop.f32.mrb[9].mxu1 }
 0x114   : > { %v709_v28 = vadd.f32 %v1734_v16, %v705_v23  ;;  %v706_v29 = vmul.f32 %v1728_v4, %v694_v24  ;;  %v1247_v30 = vadd.f32 %v1246_v27, %v1245_v25  ;;  %v1248_v31 = vpop.f32.mrb[10].mxu1 }
 0x115   : > { %v1249_v34 = vpop.f32.mrb[11].mxu1 }
 0x116   : > { %v713_v35 = vmax.f32 %v709_v28, 0.0  ;;  %v710_v36 = vadd.f32 %v1734_v16, %v706_v29  ;;  %v650_v37 = vadd.f32 %v1247_v30, %v1719_v49  ;;  %v1250_v38 = vadd.f32 %v1249_v34, %v1248_v31 }
 0x118   : > { %v717_v41 = vmax.f32 %v558_v33, %v713_v35  ;;  %v714_v42 = vmax.f32 %v710_v36, 0.0  ;;  %v699_v43 = vadd.f32 %v1347_v7, %v650_v37  ;;  %v653_v44 = vadd.f32 %v1250_v38, %v1719_v49 }
 0x11a   : > { %v718_v46 = vmax.f32 %v559_v40, %v714_v42  ;;  %v707_v47 = vmul.f32 %v1728_v4, %v699_v43  ;;  %v702_v48 = vadd.f32 %v1348_v12, %v653_v44  ;;  %v1359_v50 = vpop.f32.mrb[12].mxu1 }
 0x11b   : > { %v849_v51 = vpop.f32.mrb[13].mxu1 }
 0x11c   : > { %v711_v53 = vadd.f32 %v1734_v16, %v707_v47  ;;  %v708_v54 = vmul.f32 %v1728_v4, %v702_v48  ;;  %v1360_v55 = vpop.f32.mrb[14].mxu1 }
 0x11d   : > { %v852_v56 = vpop.f32.mrb[15].mxu1 }
 0x11e   : > { %v715_v58 = vmax.f32 %v711_v53, 0.0  ;;  %v712_v59 = vadd.f32 %v1734_v16, %v708_v54 }
 0x120   : > { %v719_v61 = vmax.f32 %v560_v57, %v715_v58  ;;  %v716_v62 = vmax.f32 %v712_v59, 0.0 }
 0x122   : > { %v720_v63 = vmax.f32 %v561_v60, %v716_v62 }
 0x12a   : > { %v1273_v0 = vpop.f32.mrb[12].mxu0 }
 0x12b   : > { %v1274_v1 = vpop.f32.mrb[13].mxu0 }
 0x12c   : > { %v1275_v2 = vadd.f32 %v1274_v1, %v1273_v0  ;;  %v1276_v3 = vpop.f32.mrb[14].mxu0 }
 0x12d   : > { %v1277_v5 = vpop.f32.mrb[15].mxu0 }
 0x12e   : > { %v801_v6 = vadd.f32 %v1275_v2, %v1719_v49  ;;  %v1278_v7 = vadd.f32 %v1277_v5, %v1276_v3 }
 0x130   : > { %v850_v8 = vadd.f32 %v849_v51, %v801_v6  ;;  %v804_v9 = vadd.f32 %v1278_v7, %v1719_v49 }
 0x132   : > { %v864_v10 = vmul.f32 %v1728_v4, %v850_v8  ;;  %v853_v11 = vadd.f32 %v852_v56, %v804_v9  ;;  %v1279_v12 = vpop.f32.mrb[16].mxu0 }
 0x133   : > { %v1280_v13 = vpop.f32.mrb[17].mxu0 }
 0x134   : > { %v868_v14 = vadd.f32 %v1734_v16, %v864_v10  ;;  %v865_v15 = vmul.f32 %v1728_v4, %v853_v11  ;;  %v1281_v17 = vadd.f32 %v1280_v13, %v1279_v12  ;;  %v1282_v18 = vpop.f32.mrb[18].mxu0 }
 0x135   : > { %v1283_v19 = vpop.f32.mrb[19].mxu0 }
 0x136   : > { %v872_v20 = vmax.f32 %v868_v14, 0.0  ;;  %v869_v21 = vadd.f32 %v1734_v16, %v865_v15  ;;  %v809_v22 = vadd.f32 %v1281_v17, %v1719_v49  ;;  %v1284_v23 = vadd.f32 %v1283_v19, %v1282_v18 }
 0x138   : > { %v873_v24 = vmax.f32 %v869_v21, 0.0  ;;  %v858_v25 = vadd.f32 %v1359_v50, %v809_v22  ;;  %v812_v26 = vadd.f32 %v1284_v23, %v1719_v49  ;;  %v876_v27 = vmax.f32 %v717_v41, %v872_v20 }
 0x13a   : > { %v866_v28 = vmul.f32 %v1728_v4, %v858_v25  ;;  %v861_v29 = vadd.f32 %v1360_v55, %v812_v26  ;;  %v1307_v30 = vpop.f32.mrb[16].mxu1  ;;  %v1371_v31 = vpop.f32.mrb[20].mxu0  ;;  %v877_v32 = vmax.f32 %v718_v46, %v873_v24 }
 0x13b   : > { %v1308_v33 = vpop.f32.mrb[17].mxu1  ;;  %v1008_v34 = vpop.f32.mrb[21].mxu0 }
 0x13c   : > { %v870_v35 = vadd.f32 %v1734_v16, %v866_v28  ;;  %v867_v36 = vmul.f32 %v1728_v4, %v861_v29  ;;  %v1309_v37 = vadd.f32 %v1308_v33, %v1307_v30  ;;  %v1310_v38 = vpop.f32.mrb[18].mxu1  ;;  %v1372_v39 = vpop.f32.mrb[22].mxu0 }
 0x13d   : > { %v1311_v40 = vpop.f32.mrb[19].mxu1  ;;  %v1011_v42 = vpop.f32.mrb[23].mxu0 }
 0x13e   : > { %v874_v43 = vmax.f32 %v870_v35, 0.0  ;;  %v871_v41 = vadd.f32 %v1734_v16, %v867_v36  ;;  %v1312_v44 = vadd.f32 %v1311_v40, %v1310_v38  ;;  %v960_v45 = vadd.f32 %v1309_v37, %v1719_v49 }
 0x140   : > { %v878_v47 = vmax.f32 %v719_v61, %v874_v43  ;;  %v875_v46 = vmax.f32 %v871_v41, 0.0  ;;  %v1009_v48 = vadd.f32 %v1008_v34, %v960_v45  ;;  %v963_v50 = vadd.f32 %v1312_v44, %v1719_v49 }
 0x142   : > { %v879_v51 = vmax.f32 %v720_v63, %v875_v46  ;;  %v1023_v52 = vmul.f32 %v1728_v4, %v1009_v48  ;;  %v1012_v53 = vadd.f32 %v1011_v42, %v963_v50  ;;  %v1313_v54 = vpop.f32.mrb[20].mxu1 }
 0x143   : > { %v1314_v55 = vpop.f32.mrb[21].mxu1 }
 0x144   : > { %v1027_v56 = vadd.f32 %v1734_v16, %v1023_v52  ;;  %v1024_v57 = vmul.f32 %v1728_v4, %v1012_v53  ;;  %v1315_v58 = vadd.f32 %v1314_v55, %v1313_v54  ;;  %v1316_v59 = vpop.f32.mrb[22].mxu1 }
 0x145   : > { %v1317_v60 = vpop.f32.mrb[23].mxu1 }
 0x146   : > { %v1031_v62 = vmax.f32 %v1027_v56, 0.0  ;;  %v1028_v61 = vadd.f32 %v1734_v16, %v1024_v57  ;;  %v968_v0 = vadd.f32 %v1315_v58, %v1719_v49  ;;  %v1318_v1 = vadd.f32 %v1317_v60, %v1316_v59 }
 0x148   : > { %v1035_v63 = vmax.f32 %v876_v27, %v1031_v62  ;;  %v1032_v2 = vmax.f32 %v1028_v61, 0.0  ;;  %v1017_v3 = vadd.f32 %v1371_v31, %v968_v0  ;;  %v971_v5 = vadd.f32 %v1318_v1, %v1719_v49 }
 0x14a   : > { %1040 = vst.msk [vmem:[%s224_s27] sm:$0xff] %vm1039_vm1, %v1035_v63  ;;  %v1036_v6 = vmax.f32 %v877_v32, %v1032_v2  ;;  %v1025_v7 = vmul.f32 %v1728_v4, %v1017_v3  ;;  %v1020_v8 = vadd.f32 %v1372_v39, %v971_v5 }
 0x14c   : > { %1041 = vst.msk [vmem:[%s224_s27 + $0x8] sm:$0xff] %vm1039_vm1, %v1036_v6  ;;  %v1029_v9 = vadd.f32 %v1734_v16, %v1025_v7  ;;  %v1026_v10 = vmul.f32 %v1728_v4, %v1020_v8 }
 0x14e   : > { %v1033_v11 = vmax.f32 %v1029_v9, 0.0  ;;  %v1030_v12 = vadd.f32 %v1734_v16, %v1026_v10 }
 0x150   : > { %v1037_v13 = vmax.f32 %v878_v47, %v1033_v11  ;;  %v1034_v14 = vmax.f32 %v1030_v12, 0.0 }
 0x152   : > { %1042 = vst.msk [vmem:[%s224_s27 + $0x10] sm:$0xff] %vm1039_vm1, %v1037_v13  ;;  %v1038_v49 = vmax.f32 %v879_v51, %v1034_v14 }
 0x154   : > { %1043 = vst.msk [vmem:[%s224_s27 + $0x18] sm:$0xff] %vm1039_vm1, %v1038_v49 }
 0x155 PF: > { %s15_s18 = sadd.s32 1, %s1440_s18  }
 0x156   : > { %p12_p4 = scmp.ge.s32.totalorder %s15_s18, 4  }
 0x158   :  { %14 = sbr.rel (!%p12_p4) target bundleno = 1 (0x1), region = 73 }

// kernel: basenji_v1_forward.7
= control target key start
LH: loop header
LB: loop body
LE: loop exit
PB: predicated region body
PF: predicated region fallthrough
CT: control target
= control target key end

     0   :  { %s1218_s18 = smov 0   ;;  %s1509_s0 = inlined_call_operand.vmem [shape: bf16[2,4,8,360], index: 0, kind: input, shape index: {}]   ;;  %s1510_s1 = inlined_call_operand.vmem [shape: bf16[360,81], index: 1, kind: input, shape index: {}]   ;;  %s1511_s2 = inlined_call_operand.vmem [shape: f32[1,81], index: 2, kind: input, shape index: {}]   ;;  %s1512_s3 = inlined_call_operand.vmem [shape: f32[1,81], index: 3, kind: input, shape index: {}]   ;;  %s1513_s4 = inlined_call_operand.vmem [shape: f32[1,81], index: 4, kind: input, shape index: {}]   ;;  %s1514_s5 = inlined_call_operand.vmem [shape: f32[2,8,81], index: 5, kind: output, shape index: {}]  }
   0x1 LB: > { %s883_s19 = sadd.s32 4294967295, %s1184_s18   ;;  %p887_p0 = scmp.ge.s32.totalorder %s1184_s18, 1  ;;  %s1184_s18 = sphi %s1218_s18, %s15_s18  }
   0x2   : > { %p187_p1 = scmp.lt.s32.totalorder %s1184_s18, 3 }
   0x4   : > { %p188_p2 = pnand %p887_p0, %p187_p1 }
   0x5   : > { %v1229_v0 = vld [vmem:[%s1510_s1 + $0x40] sm:$0xff] (!%p188_p2)   ;;  %v1186_v1 = vmov (!%p188_p2), 0.0   ;;  %v1247_v4 = vld [vmem:[%s1510_s1 + $0x48] sm:$0xff] (!%p188_p2)   ;;  %vm1187_vm0 = vmmov (!%p188_p2), 0   ;;  %v1267_v7 = vld [vmem:[%s1510_s1 + $0x50] sm:$0xff] (!%p188_p2)   ;;  %p214_p3 = scmp.lt.s32.totalorder (!%p188_p2), %s883_s19, 1 }
   0x6   : > { %191 = sbr.rel (%p188_p2) target bundleno = 354 (0x162), region = 40  ;;  %1060 = vmatprep.subr.bf16.mxu1 (!%p188_p2), %v1186_v1  ;;  %v1235_v2 = vld [vmem:[%s1510_s1 + $0x80] sm:$0xff] (!%p188_p2)   ;;  %940 = vmatprep.subr.bf16.mxu0 (!%p188_p2), %v1229_v0  ;;  %v1256_v5 = vld [vmem:[%s1510_s1 + $0x88] sm:$0xff] (!%p188_p2)   ;;  %v1273_v8 = vld [vmem:[%s1510_s1 + $0x90] sm:$0xff] (!%p188_p2)   ;;  %vm427_vm1 = vcmask (!%p188_p2), 1043456   ;;  %vm423_vm2 = vcmask (!%p188_p2), 850944  }
   0x7   : > { %v1241_v3 = vld [vmem:[%s1510_s1] sm:$0xff] (!%p188_p2)   ;;  %1061 = vmatpush3.bf16.msra.mxu1 (!%p188_p2), %v1235_v2  ;;  %1074 = vmatprep.mubr.msk.bf16.mxu1 (!%p188_p2), %vm1187_vm0, %v1186_v1  ;;  %v1262_v6 = vld [vmem:[%s1510_s1 + $0x8] sm:$0xff] (!%p188_p2)   ;;  %v1282_v9 = vld [vmem:[%s1510_s1 + $0x10] sm:$0xff] (!%p188_p2)   ;;  %vm828_vm3 = vcmask (!%p188_p2), 662528  }
   0x8   : > { %941 = vmatpush3.bf16.msra.mxu0 (!%p188_p2), %v1241_v3  ;;  %1062 = vmatprep.subr.bf16.mxu1 (!%p188_p2), %v1186_v1  ;;  %v1288_v10 = vld [vmem:[%s1510_s1 + $0x58] sm:$0xff] (!%p188_p2)   ;;  %v1311_v13 = vld [vmem:[%s1510_s1 + $0x60] sm:$0xff] (!%p188_p2)   ;;  %v1331_v16 = vld [vmem:[%s1510_s1 + $0x68] sm:$0xff] (!%p188_p2)  }
   0x9   : > { %942 = vmatprep.subr.bf16.mxu0 (!%p188_p2), %v1247_v4  ;;  %v1294_v11 = vld [vmem:[%s1510_s1 + $0x98] sm:$0xff] (!%p188_p2)   ;;  %v1317_v14 = vld [vmem:[%s1510_s1 + $0xa0] sm:$0xff] (!%p188_p2)   ;;  %v1336_v17 = vld [vmem:[%s1510_s1 + $0xa8] sm:$0xff] (!%p188_p2)  }
   0xa   : > { %v1305_v12 = vld [vmem:[%s1510_s1 + $0x18] sm:$0xff] (!%p188_p2)   ;;  %v1325_v15 = vld [vmem:[%s1510_s1 + $0x20] sm:$0xff] (!%p188_p2)   ;;  %v1342_v18 = vld [vmem:[%s1510_s1 + $0x28] sm:$0xff] (!%p188_p2)  }
   0xb   : > { %1063 = vmatpush3.bf16.msra.mxu1 (!%p188_p2), %v1256_v5  ;;  %v1162_v19 = vld [vmem:[%s1510_s1 + $0xb0] ss:$0 sps:$4 sm:$0xff] (!%p188_p2)   ;;  %v1376_v26 = vld [vmem:[%s1510_s1 + $0x78] sm:$0xff] (!%p188_p2)   ;;  %v890_v46 = vld [vmem:[%s1511_s2] ss:$0 sm:$0xff] (!%p188_p2) }
   0xc   : > { %943 = vmatpush3.bf16.msra.mxu0 (!%p188_p2), %v1262_v6  ;;  %1064 = vmatprep.subr.bf16.mxu1 (!%p188_p2), %v1186_v1  ;;  %v1358_v20 = vld [vmem:[%s1510_s1 + $0x70] sm:$0xff] (!%p188_p2)   ;;  %v1369_v23 = vsel (!%p188_p2), %vm427_vm1, %v1162_v19, 0  ;;  %v1385_v29 = vld [vmem:[%s1510_s1 + $0x38] sm:$0xff] (!%p188_p2)   ;;  %v918_v54 = vld [vmem:[%s1512_s3] ss:$0 sm:$0xff] (!%p188_p2) }
   0xd   : > { %944 = vmatprep.subr.bf16.mxu0 %v1267_v7  ;;  %s1516_s19 = smov (!%p214_p3, %s883_s19), 1  ;;  %v1364_v21 = vld [vmem:[%s1510_s1 + $0x30] sm:$0xff]  }
   0xe   : > { %s1132_s25 = smul.u32 48, %s1516_s19  ;;  %s889_s30 = sshll.u32 %s1516_s19, 3 }
   0xf   : > { %1065 = vmatpush3.bf16.msra.mxu1 %v1273_v8  ;;  %s222_s8 = scalar_lea.vmem %s1514_s5, %s889_s30 }
  0x10   : > { %945 = vmatpush3.bf16.msra.mxu0 %v1282_v9  ;;  %1066 = vmatprep.subr.bf16.mxu1 %v1186_v1  ;;  %s1347_s11 = scalar_lea.vmem %s1509_s0, %s1132_s25 }
  0x11   : > { %946 = vmatprep.subr.bf16.mxu0 %v1288_v10  ;;  %v224_v22 = vld [vmem:[%s1347_s11] sm:$0xff]  ;;  %v920_v25 = vld [vmem:[%s1347_s11 + $0xc] sm:$0xff]  ;;  %v1164_v27 = vld [vmem:[%s1347_s11 + $0x8] ss:$0 sps:$4 sm:$0xff]  }
  0x12   : > { %v892_v24 = vcombine.high %v224_v22, %v224_v22  ;;  %v923_v28 = vcombine.high %v920_v25, %v920_v25  ;;  %v891_v30 = vcombine.low %v224_v22, %v224_v22  ;;  %v922_v31 = vcombine.low %v920_v25, %v920_v25  ;;  %v1171_v32 = vld [vmem:[%s1347_s11 + $0x14] ss:$0 sps:$4 sm:$0xff]   ;;  %v926_v33 = vld [vmem:[%s1347_s11 + $0x18] sm:$0xff]  ;;  %v932_v35 = vld [vmem:[%s1347_s11 + $0x24] sm:$0xff] }
  0x13   : > { %1067 = vmatpush3.bf16.msra.mxu1 %v1294_v11  ;;  %v929_v34 = vcombine.high %v926_v33, %v926_v33  ;;  %v1172_v36 = vld [vmem:[%s1347_s11 + $0x20] ss:$0 sps:$4 sm:$0xff]   ;;  %v935_v37 = vcombine.high %v932_v35, %v932_v35  ;;  %v928_v38 = vcombine.low %v926_v33, %v926_v33  ;;  %v934_v39 = vcombine.low %v932_v35, %v932_v35  ;;  %v1177_v40 = vld [vmem:[%s1347_s11 + $0x2c] ss:$0 sps:$4 sm:$0xff]  }
  0x14   : > { %947 = vmatpush3.bf16.msra.mxu0 %v1305_v12  ;;  %1068 = vmatprep.subr.bf16.mxu1 %v1186_v1 }
  0x15   : > { %948 = vmatprep.subr.bf16.mxu0 %v1311_v13  ;;  %463 = vmatprep.mubr.bf16.mxu0 %v892_v24 }
  0x17   : > { %1069 = vmatpush3.bf16.msra.mxu1 %v1317_v14 }
  0x18   : > { %949 = vmatpush3.bf16.msra.mxu0 %v1325_v15  ;;  %1070 = vmatprep.subr.bf16.mxu1 %v1186_v1 }
  0x19   : > { %950 = vmatprep.subr.bf16.mxu0 %v1331_v16 }
  0x1b   : > { %1071 = vmatpush3.bf16.msra.mxu1 %v1336_v17 }
  0x1c   : > { %951 = vmatpush3.bf16.msra.mxu0 %v1342_v18  ;;  %1072 = vmatprep.subr.bf16.mxu1 %v1186_v1 }
  0x1d   : > { %952 = vmatprep.subr.bf16.mxu0 %v1358_v20 }
  0x1f   : > { %1073 = vmatpush3.bf16.msra.mxu1 %v1369_v23 }
  0x20   : > { %953 = vmatpush3.bf16.msra.mxu0 %v1364_v21  ;;  %970 = vmatprep.subr.bf16.mxu1 %v1229_v0 }
  0x21   : > { %954 = vmatprep.subr.bf16.mxu0 %v1376_v26 }
  0x22   : > { %1075 = vmatmul.mubr.msk.bf16.vlgmr.msra.gmra.mrb[0].mxu1 %vm423_vm2, %v1164_v27 }
  0x23   : > { %971 = vmatpush3.bf16.msra.mxu1 %v1241_v3  ;;  %576 = vmatprep.mubr.bf16.mxu1 %v923_v28 }
  0x24   : > { %955 = vmatpush3.bf16.msra.mxu0 %v1385_v29  ;;  %972 = vmatprep.subr.bf16.mxu1 %v1247_v4 }
  0x25   : > { %1078 = vmatprep.subr.bf16.mxu0 %v1186_v1 }
  0x27   : > { %464 = vmatmul.mubr.bf16.vlgmr.msra.gmra.mrb[0].mxu0 %v891_v30  ;;  %973 = vmatpush3.bf16.msra.mxu1 %v1262_v6 }
  0x28   : > { %1079 = vmatpush3.bf16.msra.mxu0 %v1235_v2  ;;  %974 = vmatprep.subr.bf16.mxu1 %v1267_v7 }
  0x29   : > { %1080 = vmatprep.subr.bf16.mxu0 %v1186_v1  ;;  %1092 = vmatprep.mubr.msk.bf16.mxu0 %vm1187_vm0, %v1186_v1 }
  0x2b   : > { %975 = vmatpush3.bf16.msra.mxu1 %v1282_v9 }
  0x2c   : > { %1081 = vmatpush3.bf16.msra.mxu0 %v1256_v5  ;;  %976 = vmatprep.subr.bf16.mxu1 %v1288_v10 }
  0x2d   : > { %1082 = vmatprep.subr.bf16.mxu0 %v1186_v1 }
  0x2f   : > { %977 = vmatpush3.bf16.msra.mxu1 %v1305_v12 }
  0x30   : > { %1083 = vmatpush3.bf16.msra.mxu0 %v1273_v8  ;;  %978 = vmatprep.subr.bf16.mxu1 %v1311_v13 }
  0x31   : > { %1084 = vmatprep.subr.bf16.mxu0 %v1186_v1 }
  0x33   : > { %979 = vmatpush3.bf16.msra.mxu1 %v1325_v15 }
  0x34   : > { %1085 = vmatpush3.bf16.msra.mxu0 %v1294_v11  ;;  %980 = vmatprep.subr.bf16.mxu1 %v1331_v16 }
  0x35   : > { %1086 = vmatprep.subr.bf16.mxu0 %v1186_v1 }
  0x37   : > { %981 = vmatpush3.bf16.msra.mxu1 %v1342_v18 }
  0x38   : > { %1087 = vmatpush3.bf16.msra.mxu0 %v1317_v14  ;;  %982 = vmatprep.subr.bf16.mxu1 %v1358_v20 }
  0x39   : > { %1088 = vmatprep.subr.bf16.mxu0 %v1186_v1 }
  0x3b   : > { %983 = vmatpush3.bf16.msra.mxu1 %v1364_v21 }
  0x3c   : > { %1089 = vmatpush3.bf16.msra.mxu0 %v1336_v17  ;;  %984 = vmatprep.subr.bf16.mxu1 %v1376_v26 }
  0x3d   : > { %1090 = vmatprep.subr.bf16.mxu0 %v1186_v1 }
  0x3f   : > { %985 = vmatpush3.bf16.msra.mxu1 %v1385_v29 }
  0x40   : > { %1091 = vmatpush3.bf16.msra.mxu0 %v1369_v23  ;;  %1096 = vmatprep.subr.bf16.mxu1 %v1186_v1 }
  0x41   : > { %1000 = vmatprep.subr.bf16.mxu0 %v1229_v0 }
  0x42   : > { %577 = vmatmul.mubr.bf16.vlgmr.msra.gmra.mrb[4].mxu1 %v922_v31 }
  0x43   : > { %1097 = vmatpush3.bf16.msra.mxu1 %v1235_v2  ;;  %1093 = vmatmul.mubr.msk.bf16.vlgmr.msra.gmra.mrb[4].mxu0 %vm423_vm2, %v1171_v32 }
  0x44   : > { %1001 = vmatpush3.bf16.msra.mxu0 %v1241_v3  ;;  %1098 = vmatprep.subr.bf16.mxu1 %v1186_v1 }
  0x45   : > { %1002 = vmatprep.subr.bf16.mxu0 %v1247_v4  ;;  %1110 = vmatprep.mubr.msk.bf16.mxu1 %vm1187_vm0, %v1186_v1 }
  0x46   : > { %676 = vmatprep.mubr.bf16.mxu0 %v929_v34 }
  0x47   : > { %1099 = vmatpush3.bf16.msra.mxu1 %v1256_v5 }
  0x48   : > { %1003 = vmatpush3.bf16.msra.mxu0 %v1262_v6  ;;  %1100 = vmatprep.subr.bf16.mxu1 %v1186_v1 }
  0x49   : > { %1004 = vmatprep.subr.bf16.mxu0 %v1267_v7 }
  0x4b   : > { %1101 = vmatpush3.bf16.msra.mxu1 %v1273_v8 }
  0x4c   : > { %1005 = vmatpush3.bf16.msra.mxu0 %v1282_v9  ;;  %1102 = vmatprep.subr.bf16.mxu1 %v1186_v1 }
  0x4d   : > { %1006 = vmatprep.subr.bf16.mxu0 %v1288_v10 }
  0x4f   : > { %1103 = vmatpush3.bf16.msra.mxu1 %v1294_v11 }
  0x50   : > { %1007 = vmatpush3.bf16.msra.mxu0 %v1305_v12  ;;  %1104 = vmatprep.subr.bf16.mxu1 %v1186_v1 }
  0x51   : > { %1008 = vmatprep.subr.bf16.mxu0 %v1311_v13 }
  0x53   : > { %1105 = vmatpush3.bf16.msra.mxu1 %v1317_v14 }
  0x54   : > { %1009 = vmatpush3.bf16.msra.mxu0 %v1325_v15  ;;  %1106 = vmatprep.subr.bf16.mxu1 %v1186_v1 }
  0x55   : > { %1010 = vmatprep.subr.bf16.mxu0 %v1331_v16 }
  0x57   : > { %1107 = vmatpush3.bf16.msra.mxu1 %v1336_v17 }
  0x58   : > { %1011 = vmatpush3.bf16.msra.mxu0 %v1342_v18  ;;  %1108 = vmatprep.subr.bf16.mxu1 %v1186_v1 }
  0x59   : > { %1012 = vmatprep.subr.bf16.mxu0 %v1358_v20 }
  0x5b   : > { %1109 = vmatpush3.bf16.msra.mxu1 %v1369_v23 }
  0x5c   : > { %1013 = vmatpush3.bf16.msra.mxu0 %v1364_v21  ;;  %1030 = vmatprep.subr.bf16.mxu1 %v1229_v0 }
  0x5d   : > { %1014 = vmatprep.subr.bf16.mxu0 %v1376_v26 }
  0x5e   : > { %1111 = vmatmul.mubr.msk.bf16.vlgmr.msra.gmra.mrb[8].mxu1 %vm423_vm2, %v1172_v36 }
  0x5f   : > { %1031 = vmatpush3.bf16.msra.mxu1 %v1241_v3  ;;  %776 = vmatprep.mubr.bf16.mxu1 %v935_v37 }
  0x60   : > { %1015 = vmatpush3.bf16.msra.mxu0 %v1385_v29  ;;  %1032 = vmatprep.subr.bf16.mxu1 %v1247_v4 }
  0x61   : > { %1114 = vmatprep.subr.bf16.mxu0 %v1186_v1 }
  0x63   : > { %677 = vmatmul.mubr.bf16.vlgmr.msra.gmra.mrb[8].mxu0 %v928_v38  ;;  %1033 = vmatpush3.bf16.msra.mxu1 %v1262_v6 }
  0x64   : > { %1115 = vmatpush3.bf16.msra.mxu0 %v1235_v2  ;;  %1034 = vmatprep.subr.bf16.mxu1 %v1267_v7 }
  0x65   : > { %1116 = vmatprep.subr.bf16.mxu0 %v1186_v1  ;;  %1128 = vmatprep.mubr.msk.bf16.mxu0 %vm1187_vm0, %v1186_v1 }
  0x67   : > { %1035 = vmatpush3.bf16.msra.mxu1 %v1282_v9 }
  0x68   : > { %1117 = vmatpush3.bf16.msra.mxu0 %v1256_v5  ;;  %1036 = vmatprep.subr.bf16.mxu1 %v1288_v10 }
  0x69   : > { %1118 = vmatprep.subr.bf16.mxu0 %v1186_v1 }
  0x6b   : > { %1037 = vmatpush3.bf16.msra.mxu1 %v1305_v12 }
  0x6c   : > { %1119 = vmatpush3.bf16.msra.mxu0 %v1273_v8  ;;  %1038 = vmatprep.subr.bf16.mxu1 %v1311_v13 }
  0x6d   : > { %1120 = vmatprep.subr.bf16.mxu0 %v1186_v1 }
  0x6f   : > { %1039 = vmatpush3.bf16.msra.mxu1 %v1325_v15 }
  0x70   : > { %1121 = vmatpush3.bf16.msra.mxu0 %v1294_v11  ;;  %1040 = vmatprep.subr.bf16.mxu1 %v1331_v16 }
  0x71   : > { %1122 = vmatprep.subr.bf16.mxu0 %v1186_v1 }
  0x73   : > { %1041 = vmatpush3.bf16.msra.mxu1 %v1342_v18 }
  0x74   : > { %1123 = vmatpush3.bf16.msra.mxu0 %v1317_v14  ;;  %1042 = vmatprep.subr.bf16.mxu1 %v1358_v20 }
  0x75   : > { %1124 = vmatprep.subr.bf16.mxu0 %v1186_v1 }
  0x77   : > { %1043 = vmatpush3.bf16.msra.mxu1 %v1364_v21 }
  0x78   : > { %1125 = vmatpush3.bf16.msra.mxu0 %v1336_v17  ;;  %1044 = vmatprep.subr.bf16.mxu1 %v1376_v26 }
  0x79   : > { %1126 = vmatprep.subr.bf16.mxu0 %v1186_v1  ;;  %v919_v1 = vld [vmem:[%s1513_s4] ss:$0 sm:$0xff] }
  0x7b   : > { %1045 = vmatpush3.bf16.msra.mxu1 %v1385_v29 }
  0x7c   : > { %1127 = vmatpush3.bf16.msra.mxu0 %v1369_v23 }
  0x7e   : > { %777 = vmatmul.mubr.bf16.vlgmr.msra.gmra.mrb[12].mxu1 %v934_v39 }
  0x7f   : > { %1129 = vmatmul.mubr.msk.bf16.vlgmr.msra.gmra.mrb[12].mxu0 %vm423_vm2, %v1177_v40 }
  0xf5   : > { %v505_v41 = vpop.f32.mrb[0].mxu1 }
  0xf6   : > { %v1076_v42 = vpop.f32.mrb[1].mxu1 }
  0xf7   : > { %v508_v43 = vpop.f32.mrb[2].mxu1 }
  0xf8   : > { %v1077_v44 = vpop.f32.mrb[3].mxu1 }
  0xfa   : > { %v956_v45 = vpop.f32.mrb[0].mxu0 }
  0xfb   : > { %v957_v47 = vpop.f32.mrb[1].mxu0 }
  0xfc   : > { %v958_v48 = vadd.f32 %v957_v47, %v956_v45  ;;  %v959_v49 = vpop.f32.mrb[2].mxu0 }
  0xfd   : > { %v960_v50 = vpop.f32.mrb[3].mxu0 }
  0xfe   : > { %v466_v51 = vadd.f32 %v958_v48, %v890_v46 }
 0x100   : > { %v506_v52 = vadd.f32 %v505_v41, %v466_v51 }
 0x102   : > { %v518_v62 = vmul.f32 %v918_v54, %v506_v52 }
 0x104   : > { %v526_v3 = vadd.f32 %v919_v1, %v518_v62 }
 0x106   : > { %v527_v6 = vmax.f32 %v526_v3, 0.0 }
 0x115   : > { %v986_v53 = vpop.f32.mrb[4].mxu1 }
 0x116   : > { %v987_v55 = vpop.f32.mrb[5].mxu1  ;;  %v618_v56 = vpop.f32.mrb[4].mxu0 }
 0x117   : > { %v988_v57 = vadd.f32 %v987_v55, %v986_v53  ;;  %v989_v58 = vpop.f32.mrb[6].mxu1  ;;  %v1094_v59 = vpop.f32.mrb[5].mxu0 }
 0x118   : > { %v990_v60 = vpop.f32.mrb[7].mxu1  ;;  %v621_v61 = vpop.f32.mrb[6].mxu0 }
 0x119   : > { %v579_v63 = vadd.f32 %v988_v57, %v890_v46  ;;  %v1095_v0 = vpop.f32.mrb[7].mxu0 }
 0x11b   : > { %v619_v2 = vadd.f32 %v618_v56, %v579_v63 }
 0x11d   : > { %v624_v4 = vmul.f32 %v918_v54, %v619_v2 }
 0x11f   : > { %v625_v5 = vadd.f32 %v919_v1, %v624_v4 }
 0x121   : > { %v626_v7 = vmax.f32 %v625_v5, 0.0 }
 0x123   : > { %v627_v8 = vmax.f32 %v527_v6, %v626_v7 }
 0x131   : > { %v718_v9 = vpop.f32.mrb[8].mxu1 }
 0x132   : > { %v1112_v10 = vpop.f32.mrb[9].mxu1 }
 0x133   : > { %v721_v11 = vpop.f32.mrb[10].mxu1 }
 0x134   : > { %v1113_v12 = vpop.f32.mrb[11].mxu1 }
 0x136   : > { %v1016_v13 = vpop.f32.mrb[8].mxu0 }
 0x137   : > { %v1017_v14 = vpop.f32.mrb[9].mxu0 }
 0x138   : > { %v1018_v15 = vadd.f32 %v1017_v14, %v1016_v13  ;;  %v1019_v16 = vpop.f32.mrb[10].mxu0 }
 0x139   : > { %v1020_v17 = vpop.f32.mrb[11].mxu0 }
 0x13a   : > { %v679_v18 = vadd.f32 %v1018_v15, %v890_v46 }
 0x13c   : > { %v719_v19 = vadd.f32 %v718_v9, %v679_v18 }
 0x13e   : > { %v724_v20 = vmul.f32 %v918_v54, %v719_v19 }
 0x140   : > { %v725_v21 = vadd.f32 %v919_v1, %v724_v20 }
 0x142   : > { %v726_v22 = vmax.f32 %v725_v21, 0.0 }
 0x144   : > { %v727_v23 = vmax.f32 %v627_v8, %v726_v22 }
 0x151   : > { %v1046_v24 = vpop.f32.mrb[12].mxu1 }
 0x152   : > { %v1047_v25 = vpop.f32.mrb[13].mxu1  ;;  %v818_v26 = vpop.f32.mrb[12].mxu0 }
 0x153   : > { %v1048_v27 = vadd.f32 %v1047_v25, %v1046_v24  ;;  %v1049_v28 = vpop.f32.mrb[14].mxu1  ;;  %v1130_v29 = vpop.f32.mrb[13].mxu0 }
 0x154   : > { %v1050_v30 = vpop.f32.mrb[15].mxu1  ;;  %v821_v31 = vpop.f32.mrb[14].mxu0 }
 0x155   : > { %v779_v32 = vadd.f32 %v1048_v27, %v890_v46  ;;  %v1131_v33 = vpop.f32.mrb[15].mxu0 }
 0x157   : > { %v819_v34 = vadd.f32 %v818_v26, %v779_v32 }
 0x159   : > { %v824_v35 = vmul.f32 %v918_v54, %v819_v34 }
 0x15b   : > { %v825_v36 = vadd.f32 %v919_v1, %v824_v35 }
 0x15d   : > { %v826_v37 = vmax.f32 %v825_v36, 0.0 }
 0x15f   : > { %v827_v38 = vmax.f32 %v727_v23, %v826_v37 }
 0x161   : > { %829 = vst.msk [vmem:[%s222_s8] sm:$0xff] %vm828_vm3, %v827_v38 }
 0x162 PF: > { %s15_s18 = sadd.s32 1, %s1184_s18  }
 0x163   : > { %p12_p4 = scmp.ge.s32.totalorder %s15_s18, 4  }
 0x165   :  { %14 = sbr.rel (!%p12_p4) target bundleno = 1 (0x1), region = 73 }

// kernel: basenji_v1_forward.8
= control target key start
LH: loop header
LB: loop body
LE: loop exit
PB: predicated region body
PF: predicated region fallthrough
CT: control target
= control target key end

     0   :  { %s1190_s18 = smov 0   ;;  %s1534_s0 = inlined_call_operand.vmem [shape: bf16[2,4,2,405], index: 0, kind: input, shape index: {}]   ;;  %s1535_s1 = inlined_call_operand.vmem [shape: bf16[405,91], index: 1, kind: input, shape index: {}]   ;;  %s1536_s2 = inlined_call_operand.vmem [shape: f32[1,91], index: 2, kind: input, shape index: {}]   ;;  %s1537_s3 = inlined_call_operand.vmem [shape: f32[1,91], index: 3, kind: input, shape index: {}]   ;;  %s1538_s4 = inlined_call_operand.vmem [shape: f32[1,91], index: 4, kind: input, shape index: {}]   ;;  %s1539_s5 = inlined_call_operand.vmem [shape: f32[2,2,91], index: 5, kind: output, shape index: {}]  }
   0x1 LB: > { %s975_s19 = sadd.s32 4294967295, %s1155_s18   ;;  %p979_p0 = scmp.ge.s32.totalorder %s1155_s18, 1  ;;  %s1155_s18 = sphi %s1190_s18, %s15_s18  }
   0x2   : > { %p186_p1 = scmp.lt.s32.totalorder %s1155_s18, 3 }
   0x4   : > { %p187_p2 = pnand %p979_p0, %p186_p1 }
   0x5   : > { %v1201_v0 = vld [vmem:[%s1535_s1 + $0x80] sm:$0xff] (!%p187_p2)   ;;  %v1157_v1 = vmov (!%p187_p2), 0   ;;  %v1220_v4 = vld [vmem:[%s1535_s1 + $0x88] sm:$0xff] (!%p187_p2)   ;;  %v1238_v7 = vld [vmem:[%s1535_s1 + $0x90] sm:$0xff] (!%p187_p2)   ;;  %p212_p3 = scmp.lt.s32.totalorder (!%p187_p2), %s975_s19, 1  ;;  %v292_v21 = vlaneseq (!%p187_p2)  ;;  %vm465_vm0 = vcmask (!%p187_p2), 1041408  }
   0x6   : > { %190 = sbr.rel (%p187_p2) target bundleno = 389 (0x185), region = 40  ;;  %512 = vmatprep.subr.bf16.mxu1 (!%p187_p2), %v1157_v1  ;;  %v1207_v2 = vld [vmem:[%s1535_s1 + $0x40] sm:$0xff] (!%p187_p2)   ;;  %v1226_v5 = vld [vmem:[%s1535_s1 + $0x48] sm:$0xff] (!%p187_p2)   ;;  %v1244_v8 = vld [vmem:[%s1535_s1 + $0x50] sm:$0xff] (!%p187_p2)   ;;  %v1158_v26 = vmov (!%p187_p2), 1966171168  }
   0x7   : > { %513 = vmatpush1.bf16.msra.mxu1 (!%p187_p2), %v1201_v0  ;;  %v1213_v3 = vld [vmem:[%s1535_s1] sm:$0xff] (!%p187_p2)   ;;  %1024 = vmatprep.subr.bf16.mxu0 (!%p187_p2), %v1207_v2  ;;  %v1231_v6 = vld [vmem:[%s1535_s1 + $0x8] sm:$0xff] (!%p187_p2)   ;;  %v1250_v9 = vld [vmem:[%s1535_s1 + $0x10] sm:$0xff] (!%p187_p2)   ;;  %v290_v27 = vunpack.c.l.s4 (!%p187_p2), %v1158_v26  ;;  %v293_v28 = vshrl.u32 (!%p187_p2), %v292_v21, 7  ;;  %vm466_vm1 = vcmask (!%p187_p2), 1042432   ;;  %v1159_v33 = vmov (!%p187_p2), 65535  }
   0x8   : > { %514 = vmatprep.subr.bf16.mxu1 (!%p187_p2), %v1157_v1  ;;  %1025 = vmatpush3.bf16.msra.mxu0 (!%p187_p2), %v1213_v3  ;;  %v1256_v10 = vld [vmem:[%s1535_s1 + $0x98] sm:$0xff] (!%p187_p2)   ;;  %v1277_v13 = vld [vmem:[%s1535_s1 + $0x60] sm:$0xff] (!%p187_p2)   ;;  %v1300_v16 = vld [vmem:[%s1535_s1 + $0x68] sm:$0xff] (!%p187_p2)   ;;  %v467_v34 = vsel (!%p187_p2), %vm465_vm0, 4294967295, %v1159_v33  ;;  %vm461_vm2 = vcmask (!%p187_p2), 171008   ;;  %vm920_vm3 = vcmask (!%p187_p2), 738304  }
   0x9   : > { %1026 = vmatprep.subr.bf16.mxu0 (!%p187_p2), %v1226_v5  ;;  %v1262_v11 = vld [vmem:[%s1535_s1 + $0x58] sm:$0xff] (!%p187_p2)   ;;  %v1283_v14 = vld [vmem:[%s1535_s1 + $0xa0] sm:$0xff] (!%p187_p2)   ;;  %v1306_v17 = vld [vmem:[%s1535_s1 + $0xa8] sm:$0xff] (!%p187_p2)   ;;  %v291_v32 = vunpack.c.0.s8 (!%p187_p2), %v290_v27  ;;  %v468_v41 = vsel (!%p187_p2), %vm466_vm1, %v467_v34, 0 }
   0xa   : > { %v1271_v12 = vld [vmem:[%s1535_s1 + $0x18] sm:$0xff] (!%p187_p2)   ;;  %v1294_v15 = vld [vmem:[%s1535_s1 + $0x20] sm:$0xff] (!%p187_p2)   ;;  %v1314_v18 = vld [vmem:[%s1535_s1 + $0x28] sm:$0xff] (!%p187_p2)  }
   0xb   : > { %515 = vmatpush1.bf16.msra.mxu1 (!%p187_p2), %v1220_v4  ;;  %v1320_v19 = vld [vmem:[%s1535_s1 + $0x70] sm:$0xff] (!%p187_p2)   ;;  %v1343_v23 = vld [vmem:[%s1535_s1 + $0x78] sm:$0xff] (!%p187_p2)   ;;  %v1372_v37 = vld [vmem:[%s1535_s1 + $0xc0] sm:$0xff] (!%p187_p2)   ;;  %v1374_v38 = vsub.s32 (!%p187_p2), %v291_v32, %v293_v28 }
   0xc   : > { %516 = vmatprep.subr.bf16.mxu1 (!%p187_p2), %v1157_v1  ;;  %1027 = vmatpush3.bf16.msra.mxu0 (!%p187_p2), %v1231_v6  ;;  %v1326_v20 = vld [vmem:[%s1535_s1 + $0xb0] sm:$0xff] (!%p187_p2)   ;;  %v1351_v25 = vld [vmem:[%s1535_s1 + $0xb8] sm:$0xff] (!%p187_p2)   ;;  %v1148_v39 = vld [vmem:[%s1535_s1 + $0xc8] ss:$0 sps:$4 sm:$0x77] (!%p187_p2)  }
   0xd   : > { %1028 = vmatprep.subr.bf16.mxu0 %v1244_v8  ;;  %s1541_s19 = smov (!%p212_p3, %s975_s19), 1  ;;  %v1337_v22 = vld [vmem:[%s1535_s1 + $0x30] sm:$0xff]   ;;  %v1361_v30 = vld [vmem:[%s1535_s1 + $0x38] sm:$0xff]   ;;  %v1392_v47 = vand.u32 %v1148_v39, %v468_v41  ;;  %v982_v63 = vld [vmem:[%s1536_s2] ss:$0 sm:$0xff] }
   0xe   : > { %s980_s6 = sshll.u32 %s1541_s19, 4  ;;  %s981_s11 = sshll.u32 %s1541_s19, 1 }
   0xf   : > { %517 = vmatpush1.bf16.msra.mxu1 %v1238_v7  ;;  %s1331_s15 = scalar_lea.vmem %s1534_s0, %s980_s6  ;;  %s219_s14 = scalar_lea.vmem %s1539_s5, %s981_s11 }
  0x10   : > { %518 = vmatprep.subr.bf16.mxu1 %v1157_v1  ;;  %1029 = vmatpush3.bf16.msra.mxu0 %v1250_v9  ;;  %v983_v24 = vld.sshfl [vmem:[%s1331_s15] sm:$0x33 pattern:$0x75316420] }
  0x11   : > { %1030 = vmatprep.subr.bf16.mxu0 %v1262_v11  ;;  %v1355_v29 = vld.sshfl [vmem:[%s1331_s15 + $0x4] sm:$0x33 pattern:$0x75316420]  ;;  %v288_v31 = vcombine.high %v983_v24, %v983_v24  ;;  %v295_v43 = vrot.slane %v983_v24, %v1374_v38 }
  0x12   : > { %v579_v35 = vcombine.high %v1355_v29, %v1355_v29  ;;  %v1020_v36 = vld.sshfl [vmem:[%s1331_s15 + $0xc] sm:$0x33 pattern:$0x75316420]  ;;  %v586_v53 = vrot.slane %v1355_v29, %v1374_v38 }
  0x13   : > { %519 = vmatpush1.bf16.msra.mxu1 %v1256_v10  ;;  %v813_v40 = vcombine.high %v1020_v36, %v1020_v36  ;;  %v302_v42 = vrot.slane %v288_v31, %v1374_v38  ;;  %v1389_v46 = vrot.slane %v1020_v36, %v1374_v38  ;;  %v303_v49 = vcombine.high %v295_v43, %v295_v43  ;;  %v1017_v51 = vld.sshfl [vmem:[%s1331_s15 + $0x8] sm:$0x33 pattern:$0x75316420] }
  0x14   : > { %520 = vmatprep.subr.bf16.mxu1 %v1157_v1  ;;  %1031 = vmatpush3.bf16.msra.mxu0 %v1271_v12  ;;  %v593_v44 = vrot.slane %v579_v35, %v1374_v38  ;;  %v696_v52 = vcombine.high %v1017_v51, %v1017_v51  ;;  %v594_v55 = vcombine.high %v586_v53, %v586_v53 }
  0x15   : > { %1032 = vmatprep.subr.bf16.mxu0 %v1277_v13  ;;  %v1386_v45 = vrot.slane %v813_v40, %v1374_v38  ;;  %504 = vmatprep.mubr.bf16.mxu0 %v302_v42  ;;  %v304_v48 = vcombine.high %v302_v42, %v302_v42  ;;  %v703_v57 = vrot.slane %v1017_v51, %v1374_v38 }
  0x16   : > { %v595_v50 = vcombine.high %v593_v44, %v593_v44  ;;  %v710_v54 = vrot.slane %v696_v52, %v1374_v38  ;;  %v828_v60 = vcombine.high %v1389_v46, %v1389_v46 }
  0x17   : > { %521 = vmatpush1.bf16.msra.mxu1 %v1283_v14  ;;  %1010 = vmatprep.mubr.msk.bf16.mxu1 %vm461_vm2, %v304_v48  ;;  %v711_v58 = vcombine.high %v703_v57, %v703_v57  ;;  %v829_v59 = vcombine.high %v1386_v45, %v1386_v45 }
  0x18   : > { %522 = vmatprep.subr.bf16.mxu1 %v1157_v1  ;;  %1033 = vmatpush3.bf16.msra.mxu0 %v1294_v15  ;;  %v712_v56 = vcombine.high %v710_v54, %v710_v54 }
  0x19   : > { %1034 = vmatprep.subr.bf16.mxu0 %v1300_v16 }
  0x1b   : > { %523 = vmatpush1.bf16.msra.mxu1 %v1306_v17 }
  0x1c   : > { %524 = vmatprep.subr.bf16.mxu1 %v1157_v1  ;;  %1035 = vmatpush3.bf16.msra.mxu0 %v1314_v18 }
  0x1d   : > { %1036 = vmatprep.subr.bf16.mxu0 %v1320_v19 }
  0x1f   : > { %525 = vmatpush1.bf16.msra.mxu1 %v1326_v20 }
  0x20   : > { %526 = vmatprep.subr.bf16.mxu1 %v1157_v1  ;;  %1037 = vmatpush3.bf16.msra.mxu0 %v1337_v22 }
  0x21   : > { %1038 = vmatprep.subr.bf16.mxu0 %v1343_v23 }
  0x23   : > { %527 = vmatpush1.bf16.msra.mxu1 %v1351_v25 }
  0x24   : > { %528 = vmatprep.subr.bf16.mxu1 %v1157_v1  ;;  %1039 = vmatpush3.bf16.msra.mxu0 %v1361_v30 }
  0x25   : > { %1046 = vmatprep.subr.bf16.mxu0 %v1207_v2 }
  0x27   : > { %529 = vmatpush1.bf16.msra.mxu1 %v1372_v37  ;;  %505 = vmatmul.mubr.bf16.vlgmr.msra.gmra.mrb[0].mxu0 %v295_v43 }
  0x28   : > { %530 = vmatprep.subr.bf16.mxu1 %v1157_v1  ;;  %1047 = vmatpush3.bf16.msra.mxu0 %v1213_v3 }
  0x29   : > { %1048 = vmatprep.subr.bf16.mxu0 %v1226_v5  ;;  %634 = vmatprep.mubr.bf16.mxu0 %v593_v44 }
  0x2b   : > { %531 = vmatpush1.bf16.msra.mxu1 %v1392_v47 }
  0x2c   : > { %642 = vmatprep.subr.bf16.mxu1 %v1157_v1  ;;  %1049 = vmatpush3.bf16.msra.mxu0 %v1231_v6 }
  0x2d   : > { %1050 = vmatprep.subr.bf16.mxu0 %v1244_v8 }
  0x2e   : > { %545 = vmatmul.mubr.bf16.vlgmr.msra.gmra.mrb[0].mxu1 %v303_v49 }
  0x2f   : > { %643 = vmatpush1.bf16.msra.mxu1 %v1201_v0  ;;  %1015 = vmatprep.mubr.msk.bf16.mxu1 %vm461_vm2, %v595_v50 }
  0x30   : > { %644 = vmatprep.subr.bf16.mxu1 %v1157_v1  ;;  %1051 = vmatpush3.bf16.msra.mxu0 %v1250_v9 }
  0x31   : > { %1052 = vmatprep.subr.bf16.mxu0 %v1262_v11 }
  0x33   : > { %645 = vmatpush1.bf16.msra.mxu1 %v1220_v4 }
  0x34   : > { %646 = vmatprep.subr.bf16.mxu1 %v1157_v1  ;;  %1053 = vmatpush3.bf16.msra.mxu0 %v1271_v12 }
  0x35   : > { %1054 = vmatprep.subr.bf16.mxu0 %v1277_v13 }
  0x37   : > { %647 = vmatpush1.bf16.msra.mxu1 %v1238_v7 }
  0x38   : > { %648 = vmatprep.subr.bf16.mxu1 %v1157_v1  ;;  %1055 = vmatpush3.bf16.msra.mxu0 %v1294_v15 }
  0x39   : > { %1056 = vmatprep.subr.bf16.mxu0 %v1300_v16 }
  0x3b   : > { %649 = vmatpush1.bf16.msra.mxu1 %v1256_v10 }
  0x3c   : > { %650 = vmatprep.subr.bf16.mxu1 %v1157_v1  ;;  %1057 = vmatpush3.bf16.msra.mxu0 %v1314_v18 }
  0x3d   : > { %1058 = vmatprep.subr.bf16.mxu0 %v1320_v19 }
  0x3f   : > { %651 = vmatpush1.bf16.msra.mxu1 %v1283_v14 }
  0x40   : > { %652 = vmatprep.subr.bf16.mxu1 %v1157_v1  ;;  %1059 = vmatpush3.bf16.msra.mxu0 %v1337_v22 }
  0x41   : > { %1060 = vmatprep.subr.bf16.mxu0 %v1343_v23 }
  0x43   : > { %653 = vmatpush1.bf16.msra.mxu1 %v1306_v17 }
  0x44   : > { %654 = vmatprep.subr.bf16.mxu1 %v1157_v1  ;;  %1061 = vmatpush3.bf16.msra.mxu0 %v1361_v30 }
  0x45   : > { %1068 = vmatprep.subr.bf16.mxu0 %v1207_v2 }
  0x47   : > { %655 = vmatpush1.bf16.msra.mxu1 %v1326_v20  ;;  %635 = vmatmul.mubr.bf16.vlgmr.msra.gmra.mrb[4].mxu0 %v586_v53 }
  0x48   : > { %656 = vmatprep.subr.bf16.mxu1 %v1157_v1  ;;  %1069 = vmatpush3.bf16.msra.mxu0 %v1213_v3 }
  0x49   : > { %751 = vmatprep.mubr.bf16.mxu0 %v710_v54  ;;  %1070 = vmatprep.subr.bf16.mxu0 %v1226_v5 }
  0x4b   : > { %657 = vmatpush1.bf16.msra.mxu1 %v1351_v25 }
  0x4c   : > { %658 = vmatprep.subr.bf16.mxu1 %v1157_v1  ;;  %1071 = vmatpush3.bf16.msra.mxu0 %v1231_v6 }
  0x4d   : > { %1072 = vmatprep.subr.bf16.mxu0 %v1244_v8 }
  0x4f   : > { %659 = vmatpush1.bf16.msra.mxu1 %v1372_v37 }
  0x50   : > { %660 = vmatprep.subr.bf16.mxu1 %v1157_v1  ;;  %1073 = vmatpush3.bf16.msra.mxu0 %v1250_v9 }
  0x51   : > { %1074 = vmatprep.subr.bf16.mxu0 %v1262_v11 }
  0x53   : > { %661 = vmatpush1.bf16.msra.mxu1 %v1392_v47 }
  0x54   : > { %759 = vmatprep.subr.bf16.mxu1 %v1157_v1  ;;  %1075 = vmatpush3.bf16.msra.mxu0 %v1271_v12 }
  0x55   : > { %1076 = vmatprep.subr.bf16.mxu0 %v1277_v13 }
  0x56   : > { %675 = vmatmul.mubr.bf16.vlgmr.msra.gmra.mrb[4].mxu1 %v594_v55 }
  0x57   : > { %760 = vmatpush1.bf16.msra.mxu1 %v1201_v0  ;;  %1018 = vmatprep.mubr.msk.bf16.mxu1 %vm461_vm2, %v712_v56 }
  0x58   : > { %761 = vmatprep.subr.bf16.mxu1 %v1157_v1  ;;  %1077 = vmatpush3.bf16.msra.mxu0 %v1294_v15 }
  0x59   : > { %1078 = vmatprep.subr.bf16.mxu0 %v1300_v16 }
  0x5b   : > { %762 = vmatpush1.bf16.msra.mxu1 %v1220_v4 }
  0x5c   : > { %763 = vmatprep.subr.bf16.mxu1 %v1157_v1  ;;  %1079 = vmatpush3.bf16.msra.mxu0 %v1314_v18 }
  0x5d   : > { %1080 = vmatprep.subr.bf16.mxu0 %v1320_v19 }
  0x5f   : > { %764 = vmatpush1.bf16.msra.mxu1 %v1238_v7 }
  0x60   : > { %765 = vmatprep.subr.bf16.mxu1 %v1157_v1  ;;  %1081 = vmatpush3.bf16.msra.mxu0 %v1337_v22 }
  0x61   : > { %1082 = vmatprep.subr.bf16.mxu0 %v1343_v23 }
  0x63   : > { %766 = vmatpush1.bf16.msra.mxu1 %v1256_v10 }
  0x64   : > { %767 = vmatprep.subr.bf16.mxu1 %v1157_v1  ;;  %1083 = vmatpush3.bf16.msra.mxu0 %v1361_v30 }
  0x65   : > { %1090 = vmatprep.subr.bf16.mxu0 %v1207_v2 }
  0x67   : > { %768 = vmatpush1.bf16.msra.mxu1 %v1283_v14  ;;  %752 = vmatmul.mubr.bf16.vlgmr.msra.gmra.mrb[8].mxu0 %v703_v57 }
  0x68   : > { %769 = vmatprep.subr.bf16.mxu1 %v1157_v1  ;;  %1091 = vmatpush3.bf16.msra.mxu0 %v1213_v3 }
  0x69   : > { %868 = vmatprep.mubr.bf16.mxu0 %v1386_v45  ;;  %1092 = vmatprep.subr.bf16.mxu0 %v1226_v5 }
  0x6b   : > { %770 = vmatpush1.bf16.msra.mxu1 %v1306_v17 }
  0x6c   : > { %771 = vmatprep.subr.bf16.mxu1 %v1157_v1  ;;  %1093 = vmatpush3.bf16.msra.mxu0 %v1231_v6 }
  0x6d   : > { %1094 = vmatprep.subr.bf16.mxu0 %v1244_v8 }
  0x6f   : > { %772 = vmatpush1.bf16.msra.mxu1 %v1326_v20 }
  0x70   : > { %773 = vmatprep.subr.bf16.mxu1 %v1157_v1  ;;  %1095 = vmatpush3.bf16.msra.mxu0 %v1250_v9 }
  0x71   : > { %1096 = vmatprep.subr.bf16.mxu0 %v1262_v11 }
  0x73   : > { %774 = vmatpush1.bf16.msra.mxu1 %v1351_v25 }
  0x74   : > { %775 = vmatprep.subr.bf16.mxu1 %v1157_v1  ;;  %1097 = vmatpush3.bf16.msra.mxu0 %v1271_v12 }
  0x75   : > { %1098 = vmatprep.subr.bf16.mxu0 %v1277_v13 }
  0x77   : > { %776 = vmatpush1.bf16.msra.mxu1 %v1372_v37 }
  0x78   : > { %777 = vmatprep.subr.bf16.mxu1 %v1157_v1  ;;  %1099 = vmatpush3.bf16.msra.mxu0 %v1294_v15 }
  0x79   : > { %1100 = vmatprep.subr.bf16.mxu0 %v1300_v16 }
  0x7b   : > { %778 = vmatpush1.bf16.msra.mxu1 %v1392_v47 }
  0x7c   : > { %876 = vmatprep.subr.bf16.mxu1 %v1157_v1  ;;  %1101 = vmatpush3.bf16.msra.mxu0 %v1314_v18 }
  0x7d   : > { %1102 = vmatprep.subr.bf16.mxu0 %v1320_v19 }
  0x7e   : > { %792 = vmatmul.mubr.bf16.vlgmr.msra.gmra.mrb[8].mxu1 %v711_v58 }
  0x7f   : > { %877 = vmatpush1.bf16.msra.mxu1 %v1201_v0  ;;  %1021 = vmatprep.mubr.msk.bf16.mxu1 %vm461_vm2, %v829_v59 }
  0x80   : > { %878 = vmatprep.subr.bf16.mxu1 %v1157_v1  ;;  %1103 = vmatpush3.bf16.msra.mxu0 %v1337_v22 }
  0x81   : > { %1104 = vmatprep.subr.bf16.mxu0 %v1343_v23 }
  0x83   : > { %879 = vmatpush1.bf16.msra.mxu1 %v1220_v4 }
  0x84   : > { %880 = vmatprep.subr.bf16.mxu1 %v1157_v1  ;;  %1105 = vmatpush3.bf16.msra.mxu0 %v1361_v30 }
  0x87   : > { %881 = vmatpush1.bf16.msra.mxu1 %v1238_v7  ;;  %869 = vmatmul.mubr.bf16.vlgmr.msra.gmra.mrb[12].mxu0 %v1389_v46 }
  0x88   : > { %882 = vmatprep.subr.bf16.mxu1 %v1157_v1 }
  0x8b   : > { %883 = vmatpush1.bf16.msra.mxu1 %v1256_v10 }
  0x8c   : > { %884 = vmatprep.subr.bf16.mxu1 %v1157_v1 }
  0x8f   : > { %885 = vmatpush1.bf16.msra.mxu1 %v1283_v14  ;;  %v1011_v14 = vld [vmem:[%s1537_s3] ss:$0 sm:$0xff] }
  0x90   : > { %886 = vmatprep.subr.bf16.mxu1 %v1157_v1 }
  0x93   : > { %887 = vmatpush1.bf16.msra.mxu1 %v1306_v17  ;;  %v1012_v17 = vld [vmem:[%s1538_s4] ss:$0 sm:$0xff] }
  0x94   : > { %888 = vmatprep.subr.bf16.mxu1 %v1157_v1 }
  0x97   : > { %889 = vmatpush1.bf16.msra.mxu1 %v1326_v20 }
  0x98   : > { %890 = vmatprep.subr.bf16.mxu1 %v1157_v1 }
  0x9b   : > { %891 = vmatpush1.bf16.msra.mxu1 %v1351_v25 }
  0x9c   : > { %892 = vmatprep.subr.bf16.mxu1 %v1157_v1 }
  0x9f   : > { %893 = vmatpush1.bf16.msra.mxu1 %v1372_v37 }
  0xa0   : > { %894 = vmatprep.subr.bf16.mxu1 %v1157_v1 }
  0xa3   : > { %895 = vmatpush1.bf16.msra.mxu1 %v1392_v47 }
  0xa6   : > { %909 = vmatmul.mubr.bf16.vlgmr.msra.gmra.mrb[12].mxu1 %v828_v60 }
  0xfa   : > { %v1040_v61 = vpop.f32.mrb[0].mxu0 }
  0xfb   : > { %v1041_v62 = vpop.f32.mrb[1].mxu0 }
  0xfc   : > { %v1042_v0 = vadd.f32 %v1041_v62, %v1040_v61  ;;  %v1043_v2 = vpop.f32.mrb[2].mxu0 }
  0xfd   : > { %v1044_v3 = vpop.f32.mrb[3].mxu0 }
  0xfe   : > { %v507_v4 = vadd.f32 %v1042_v0, %v982_v63 }
 0x101   : > { %v546_v5 = vpop.f32.mrb[0].mxu1 }
 0x102   : > { %v547_v6 = vadd.f32 %v546_v5, %v507_v4  ;;  %v548_v7 = vpop.f32.mrb[1].mxu1 }
 0x103   : > { %v549_v1 = vpop.f32.mrb[2].mxu1 }
 0x104   : > { %v550_v8 = vpop.f32.mrb[3].mxu1  ;;  %v559_v16 = vmul.f32 %v1011_v14, %v547_v6 }
 0x106   : > { %v567_v22 = vadd.f32 %v1012_v17, %v559_v16 }
 0x108   : > { %v568_v26 = vmax.f32 %v567_v22, 0.0 }
 0x11a   : > { %v1062_v9 = vpop.f32.mrb[4].mxu0 }
 0x11b   : > { %v1063_v10 = vpop.f32.mrb[5].mxu0 }
 0x11c   : > { %v1064_v11 = vadd.f32 %v1063_v10, %v1062_v9  ;;  %v1065_v12 = vpop.f32.mrb[6].mxu0 }
 0x11d   : > { %v1066_v13 = vpop.f32.mrb[7].mxu0 }
 0x11e   : > { %v637_v15 = vadd.f32 %v1064_v11, %v982_v63 }
 0x129   : > { %v676_v18 = vpop.f32.mrb[4].mxu1 }
 0x12a   : > { %v677_v19 = vadd.f32 %v676_v18, %v637_v15  ;;  %v678_v20 = vpop.f32.mrb[5].mxu1 }
 0x12b   : > { %v679_v21 = vpop.f32.mrb[6].mxu1 }
 0x12c   : > { %v682_v23 = vmul.f32 %v1011_v14, %v677_v19  ;;  %v680_v24 = vpop.f32.mrb[7].mxu1 }
 0x12e   : > { %v683_v25 = vadd.f32 %v1012_v17, %v682_v23 }
 0x130   : > { %v684_v27 = vmax.f32 %v683_v25, 0.0 }
 0x132   : > { %v685_v28 = vmax.f32 %v568_v26, %v684_v27 }
 0x13a   : > { %v1084_v29 = vpop.f32.mrb[8].mxu0 }
 0x13b   : > { %v1085_v30 = vpop.f32.mrb[9].mxu0 }
 0x13c   : > { %v1086_v31 = vadd.f32 %v1085_v30, %v1084_v29  ;;  %v1087_v32 = vpop.f32.mrb[10].mxu0 }
 0x13d   : > { %v1088_v33 = vpop.f32.mrb[11].mxu0 }
 0x13e   : > { %v754_v34 = vadd.f32 %v1086_v31, %v982_v63 }
 0x151   : > { %v793_v35 = vpop.f32.mrb[8].mxu1 }
 0x152   : > { %v794_v36 = vadd.f32 %v793_v35, %v754_v34  ;;  %v795_v37 = vpop.f32.mrb[9].mxu1 }
 0x153   : > { %v796_v38 = vpop.f32.mrb[10].mxu1 }
 0x154   : > { %v799_v39 = vmul.f32 %v1011_v14, %v794_v36  ;;  %v797_v40 = vpop.f32.mrb[11].mxu1 }
 0x156   : > { %v800_v41 = vadd.f32 %v1012_v17, %v799_v39 }
 0x158   : > { %v801_v42 = vmax.f32 %v800_v41, 0.0 }
 0x15a   : > { %v802_v43 = vmax.f32 %v685_v28, %v801_v42  ;;  %v1106_v44 = vpop.f32.mrb[12].mxu0 }
 0x15b   : > { %v1107_v45 = vpop.f32.mrb[13].mxu0 }
 0x15c   : > { %v1108_v46 = vadd.f32 %v1107_v45, %v1106_v44  ;;  %v1109_v47 = vpop.f32.mrb[14].mxu0 }
 0x15d   : > { %v1110_v48 = vpop.f32.mrb[15].mxu0 }
 0x15e   : > { %v871_v49 = vadd.f32 %v1108_v46, %v982_v63 }
 0x179   : > { %v910_v50 = vpop.f32.mrb[12].mxu1 }
 0x17a   : > { %v911_v51 = vadd.f32 %v910_v50, %v871_v49  ;;  %v912_v52 = vpop.f32.mrb[13].mxu1 }
 0x17b   : > { %v913_v53 = vpop.f32.mrb[14].mxu1 }
 0x17c   : > { %v916_v54 = vmul.f32 %v1011_v14, %v911_v51  ;;  %v914_v55 = vpop.f32.mrb[15].mxu1 }
 0x17e   : > { %v917_v56 = vadd.f32 %v1012_v17, %v916_v54 }
 0x180   : > { %v918_v57 = vmax.f32 %v917_v56, 0.0 }
 0x182   : > { %v919_v58 = vmax.f32 %v802_v43, %v918_v57 }
 0x184   : > { %921 = vst.msk [vmem:[%s219_s14] sm:$0x3] %vm920_vm3, %v919_v58 }
 0x185 PF: > { %s15_s18 = sadd.s32 1, %s1155_s18  }
 0x186   : > { %p12_p4 = scmp.ge.s32.totalorder %s15_s18, 4  }
 0x188   :  { %14 = sbr.rel (!%p12_p4) target bundleno = 1 (0x1), region = 73 }

// kernel: basenji_v1_forward.9
= control target key start
LH: loop header
LB: loop body
LE: loop exit
PB: predicated region body
PF: predicated region fallthrough
CT: control target
= control target key end

     0   :  { %v4859_v1 = vmov 0.0   ;;  %vm4860_vm0 = vmmov 0   ;;  %v51_v14 = vlaneseq  ;;  %vm43_vm1 = vcmask 740352   ;;  %s5954_s0 = inlined_call_operand.vmem [shape: f32[4,91], index: 0, kind: input, shape index: {}]   ;;  %s5955_s1 = inlined_call_operand.vmem [shape: f32[4,1], index: 1, kind: input, shape index: {}]   ;;  %s5956_s2 = inlined_call_operand.vmem [shape: f32[4,1], index: 2, kind: input, shape index: {}]   ;;  %s5957_s3 = inlined_call_operand.vmem [shape: bf16[7,384,64], index: 3, kind: input, shape index: {}]   ;;  %s5958_s4 = inlined_call_operand.vmem [shape: f32[7,384], index: 4, kind: input, shape index: {}]   ;;  %s5959_s5 = inlined_call_operand.vmem [shape: f32[7,384], index: 5, kind: input, shape index: {}]   ;;  %s5960_s6 = inlined_call_operand.vmem [shape: bf16[7,64,96], index: 6, kind: input, shape index: {}]   ;;  %s5961_s7 = inlined_call_operand.vmem [shape: f32[7,64], index: 7, kind: input, shape index: {}]   ;;  %s5962_s8 = inlined_call_operand.vmem [shape: f32[7,64], index: 8, kind: input, shape index: {}]   ;;  %s5963_s9 = inlined_call_operand.vmem [shape: bf16[384,64], index: 9, kind: input, shape index: {}]   ;;  %s5964_s10 = inlined_call_operand.vmem [shape: f32[1,64], index: 10, kind: input, shape index: {}]   ;;  %s5965_s11 = inlined_call_operand.hbm [shape: f32[2,64], index: 11, kind: output, shape index: {}]  }
   0x1   :  { %v4610_v0 = vld [vmem:[%s5957_s3 + $0x40] sm:$0xff]   ;;  %4355 = vmatprep.subr.bf16.mxu1 %v4859_v1  ;;  %40 = vst [vmem:[#allocation2] sm:$0xff] %v4859_v1  ;;  %41 = vst [vmem:[#allocation2 + $0x8] sm:$0xf] %v4859_v1  ;;  %v4613_v4 = vld [vmem:[%s5957_s3 + $0x48] sm:$0xff]   ;;  %4371 = vmatprep.mubr.msk.bf16.mxu1 %vm4860_vm0, %v4859_v1  ;;  %v4861_v58 = vmov 0  }
   0x2   :  { %v4611_v2 = vld [vmem:[%s5957_s3] sm:$0xff]   ;;  %4072 = vmatprep.subr.bf16.mxu0 %v4610_v0  ;;  %v4614_v5 = vld [vmem:[%s5957_s3 + $0x8] sm:$0xff]   ;;  %v4616_v7 = vld [vmem:[%s5957_s3 + $0x50] sm:$0xff]   ;;  %v52_v18 = vshrl.u32 %v51_v14, 7  ;;  %4609 = vset.pattern.permute.xlu0 %v4861_v58 }
   0x3   :  { %v4612_v3 = vld [vmem:[%s5957_s3 + $0x80] sm:$0xff]   ;;  %4073 = vmatpush3.bf16.msra.mxu0 %v4611_v2  ;;  %v4615_v6 = vld [vmem:[%s5957_s3 + $0x88] sm:$0xff]   ;;  %v4617_v8 = vld [vmem:[%s5957_s3 + $0x10] sm:$0xff]  }
   0x4   :  { %4356 = vmatpush3.bf16.msra.mxu1 %v4612_v3  ;;  %4074 = vmatprep.subr.bf16.mxu0 %v4613_v4  ;;  %v4618_v9 = vld [vmem:[%s5957_s3 + $0x90] sm:$0xff]   ;;  %v4619_v10 = vld [vmem:[%s5957_s3 + $0x58] sm:$0xff]   ;;  %v4622_v13 = vld [vmem:[%s5957_s3 + $0x60] sm:$0xff]   ;;  %v4995_v22 = vsub.s32 0, %v52_v18  ;;  %v4998_v23 = vsub.s32 1, %v52_v18  ;;  %v5000_v24 = vsub.s32 2, %v52_v18 }
   0x5   :  { %4357 = vmatprep.subr.bf16.mxu1 %v4859_v1  ;;  %v4620_v11 = vld [vmem:[%s5957_s3 + $0x18] sm:$0xff]   ;;  %v4623_v15 = vld [vmem:[%s5957_s3 + $0x20] sm:$0xff]   ;;  %v4625_v17 = vld [vmem:[%s5957_s3 + $0x68] sm:$0xff]  }
   0x6   :  { %v4621_v12 = vld [vmem:[%s5957_s3 + $0x98] sm:$0xff]   ;;  %v4624_v16 = vld [vmem:[%s5957_s3 + $0xa0] sm:$0xff]   ;;  %v4626_v19 = vld [vmem:[%s5957_s3 + $0x28] sm:$0xff]  }
   0x7   :  { %4075 = vmatpush3.bf16.msra.mxu0 %v4614_v5  ;;  %v4627_v20 = vld [vmem:[%s5957_s3 + $0xa8] sm:$0xff]   ;;  %v4628_v21 = vld [vmem:[%s5957_s3 + $0x70] sm:$0xff]   ;;  %v4631_v27 = vld [vmem:[%s5957_s3 + $0x78] sm:$0xff]  }
   0x8   :  { %4358 = vmatpush3.bf16.msra.mxu1 %v4615_v6  ;;  %4076 = vmatprep.subr.bf16.mxu0 %v4616_v7  ;;  %v4629_v25 = vld [vmem:[%s5957_s3 + $0x30] sm:$0xff]   ;;  %v42_v28 = vld [vmem:[%s5954_s0] sm:$0xf]  ;;  %v4632_v30 = vld [vmem:[%s5957_s3 + $0x38] sm:$0xff]  }
   0x9   :  { %4359 = vmatprep.subr.bf16.mxu1 %v4859_v1  ;;  %v4630_v26 = vld [vmem:[%s5957_s3 + $0xb0] sm:$0xff]   ;;  %44 = vst.msk [vmem:[#allocation2] sm:$0xf] %vm43_vm1, %v42_v28  ;;  %v48_v34 = vld [vmem:[#allocation2 + $0x8] sm:$0xf]  ;;  %v4633_v36 = vld [vmem:[%s5957_s3 + $0xb8] sm:$0xff]  }
   0xa   :  { %v49_v29 = vld [vmem:[%s5958_s4] ss:$8 sm:$0x7]  ;;  %v4637_v56 = vld [vmem:[%s5960_s6 + $0x18] sm:$0xff]  }
   0xb   :  { %4077 = vmatpush3.bf16.msra.mxu0 %v4617_v8  ;;  %v54_v31 = vrot.slane %v49_v29, %v4995_v22  ;;  %v58_v32 = vrot.slane %v49_v29, %v4998_v23  ;;  %v68_v33 = vld [vmem:[%s5959_s5] ss:$8 sm:$0x7]  ;;  %v62_v35 = vrot.slane %v49_v29, %v5000_v24 }
   0xc   :  { %4360 = vmatpush3.bf16.msra.mxu1 %v4618_v9  ;;  %4078 = vmatprep.subr.bf16.mxu0 %v4619_v10  ;;  %v81_v37 = vrot.slane %v68_v33, %v5000_v24  ;;  %v73_v38 = vrot.slane %v68_v33, %v4995_v22  ;;  %v77_v39 = vrot.slane %v68_v33, %v4998_v23  ;;  %v4634_v51 = vld [vmem:[%s5960_s6] sm:$0xff]   ;;  %v4635_v54 = vld [vmem:[%s5960_s6 + $0x8] sm:$0xff]   ;;  %v4636_v55 = vld [vmem:[%s5960_s6 + $0x10] sm:$0xff]  }
   0xd   :  { %4361 = vmatprep.subr.bf16.mxu1 %v4859_v1  ;;  %v67_v40 = vmul.f32 %v62_v35, %v48_v34  ;;  %v64_v41 = vcombine.low %v54_v31, %v58_v32  ;;  %v45_v57 = vld [vmem:[%s5955_s1] sm:$0xf] }
   0xe   :  { %v83_v43 = vcombine.low %v73_v38, %v77_v39  ;;  %v46_v59 = vld [vmem:[%s5956_s2] sm:$0xf]  ;;  %464 = vperm.xlu0 %4609, %v45_v57  }
   0xf   :  { %4079 = vmatpush3.bf16.msra.mxu0 %v4620_v11  ;;  %v86_v42 = vadd.f32 %v81_v37, %v67_v40 }
  0x10   :  { %4362 = vmatpush3.bf16.msra.mxu1 %v4621_v12  ;;  %4080 = vmatprep.subr.bf16.mxu0 %v4622_v13  ;;  %v47_v45 = vld [vmem:[#allocation2] sm:$0xff] }
  0x11   :  { %4363 = vmatprep.subr.bf16.mxu1 %v4859_v1  ;;  %v88_v44 = vmax.f32 %v86_v42, 0.0  ;;  %v66_v46 = vmul.f32 %v64_v41, %v47_v45 }
  0x12   :  { %474 = vperm.xlu0 %4609, %v46_v59  }
  0x13   :  { %4081 = vmatpush3.bf16.msra.mxu0 %v4623_v15  ;;  %v94_v47 = vpack.c.bf16 %v88_v44, %v88_v44  ;;  %v85_v48 = vadd.f32 %v83_v43, %v66_v46 }
  0x14   :  { %4364 = vmatpush3.bf16.msra.mxu1 %v4624_v16  ;;  %4082 = vmatprep.subr.bf16.mxu0 %v4625_v17 }
  0x15   :  { %4365 = vmatprep.subr.bf16.mxu1 %v4859_v1  ;;  %v87_v49 = vmax.f32 %v85_v48, 0.0 }
  0x17   :  { %4083 = vmatpush3.bf16.msra.mxu0 %v4626_v19  ;;  %v90_v50 = vcombine.high %v87_v49, %v87_v49  ;;  %v92_v52 = vpack.c.bf16 %v87_v49, %v87_v49 }
  0x18   :  { %4366 = vmatpush3.bf16.msra.mxu1 %v4627_v20  ;;  %4084 = vmatprep.subr.bf16.mxu0 %v4628_v21 }
  0x19   :  { %4367 = vmatprep.subr.bf16.mxu1 %v4859_v1  ;;  %v93_v53 = vpack.c.bf16 %v90_v50, %v90_v50 }
  0x1b   :  { %4085 = vmatpush3.bf16.msra.mxu0 %v4629_v25  ;;  %319 = vmatprep.mubr.bf16.mxu0 %v93_v53 }
  0x1c   :  { %4368 = vmatpush3.bf16.msra.mxu1 %v4630_v26  ;;  %4086 = vmatprep.subr.bf16.mxu0 %v4631_v27 }
  0x1d   :  { %4369 = vmatprep.subr.bf16.mxu1 %v4859_v1 }
  0x1f   :  { %4087 = vmatpush3.bf16.msra.mxu0 %v4632_v30 }
  0x20   :  { %4370 = vmatpush3.bf16.msra.mxu1 %v4633_v36  ;;  %4375 = vmatprep.subr.bf16.mxu0 %v4859_v1 }
  0x22   :  { %320 = vmatmul.mubr.bf16.vlgmr.msra.gmra.mrb[0].mxu0 %v92_v52 }
  0x23   :  { %4372 = vmatmul.mubr.bf16.vlgmr.msra.gmra.mrb[0].mxu1 %v94_v47  ;;  %4376 = vmatpush3.bf16.msra.mxu0 %v4634_v51 }
  0x24   :  { %4383 = vmatprep.mubr.msk.bf16.mxu0 %vm4860_vm0, %v4859_v1  ;;  %4377 = vmatprep.subr.bf16.mxu0 %v4859_v1 }
  0x27   :  { %4378 = vmatpush3.bf16.msra.mxu0 %v4635_v54 }
  0x28   :  { %4379 = vmatprep.subr.bf16.mxu0 %v4859_v1 }
  0x2b   :  { %4380 = vmatpush3.bf16.msra.mxu0 %v4636_v55 }
  0x2c   :  { %4381 = vmatprep.subr.bf16.mxu0 %v4859_v1 }
  0x2f   :  { %4382 = vmatpush3.bf16.msra.mxu0 %v4637_v56 }
  0x30   :  { %4387 = vmatprep.subr.bf16.mxu0 %v4859_v1 }
  0x31   :  { %16 = vsyncpa [#allocation4], 0  ;;  %v3506_v5 = vld [vmem:[%s5961_s7] ss:$0 sm:$0xff]  ;;  %vm413_vm2 = vcmask 523264   ;;  %vm460_vm3 = vcmask 1040384  }
  0x32   :  { %v3507_v8 = vld [vmem:[%s5962_s8] ss:$0 sm:$0xff]  ;;  %v4641_v18 = vld [vmem:[%s5957_s3 + $0x108] sm:$0xff]   ;;  %vm470_vm4 = vcmask 1042432   ;;  %v4644_v30 = vld [vmem:[%s5957_s3 + $0x110] sm:$0xff]   ;;  %s4862_s23 = smov 32  }
  0x33   :  { %v4638_v14 = vld [vmem:[%s5957_s3 + $0x100] sm:$0xff]   ;;  %v4643_v25 = vld [vmem:[%s5957_s3 + $0x148] sm:$0xff]   ;;  %v4646_v34 = vld [vmem:[%s5957_s3 + $0x150] sm:$0xff]   ;;  %s4863_s27 = smov 96   ;;  %s4864_s19 = smov 59   ;;  %vm492_vm5 = vcmask 1003224  }
  0x34   :  { %v4639_v15 = vld [vmem:[%s5957_s3 + $0xc0] sm:$0xff]   ;;  %4108 = vmatprep.subr.bf16.mxu1 %v4638_v14  ;;  %v4642_v27 = vld [vmem:[%s5957_s3 + $0xc8] sm:$0xff]   ;;  %v4645_v35 = vld [vmem:[%s5957_s3 + $0xd0] sm:$0xff]   ;;  %s4865_s21 = smov 91   ;;  %vm933_vm6 = vcmask 1044440   ;;  %vm934_vm7 = vcmask 220164  }
  0x35   :  { %v4640_v16 = vld [vmem:[%s5957_s3 + $0x140] sm:$0xff]   ;;  %4109 = vmatpush3.bf16.msra.mxu1 %v4639_v15  ;;  %v4647_v36 = vld [vmem:[%s5957_s3 + $0x118] sm:$0xff]   ;;  %v4653_v43 = vld [vmem:[%s5957_s3 + $0x128] sm:$0xff]   ;;  %vm930_vm8 = vcmask 744448   ;;  %s4866_s18 = smov 123   ;;  %vm1373_vm10 = vcmask 478424  }
  0x36   :  { %4110 = vmatprep.subr.bf16.mxu1 %v4641_v18  ;;  %v4648_v38 = vld [vmem:[%s5957_s3 + $0xd8] sm:$0xff]   ;;  %v4650_v40 = vld [vmem:[%s5957_s3 + $0x120] sm:$0xff]   ;;  %v4654_v44 = vld [vmem:[%s5957_s3 + $0xe8] sm:$0xff]   ;;  %s4867_s14 = smov 27   ;;  %vm1811_vm11 = vcmask 740824   ;;  %vm3131_vm12 = vcmask 1041408  }
  0x37   :  { %v4649_v39 = vld [vmem:[%s5957_s3 + $0x158] sm:$0xff]   ;;  %v4651_v41 = vld [vmem:[%s5957_s3 + $0xe0] sm:$0xff]   ;;  %v4655_v45 = vld [vmem:[%s5957_s3 + $0x168] sm:$0xff]   ;;  %vm3153_vm13 = vcmask 1043458   ;;  %s4868_s30 = smov [#allocation3]   ;;  %vm3466_vm14 = vcmask 517120  }
  0x38   :  { %v4652_v42 = vld [vmem:[%s5957_s3 + $0x160] sm:$0xff]   ;;  %v4656_v46 = vld [vmem:[%s5957_s3 + $0x130] sm:$0xff]   ;;  %v4659_v52 = vld [vmem:[%s5957_s3 + $0x138] sm:$0xff]  }
  0x39   :  { %4111 = vmatpush3.bf16.msra.mxu1 %v4642_v27  ;;  %v4657_v48 = vld [vmem:[%s5957_s3 + $0xf0] sm:$0xff]   ;;  %v495_v56 = vld [vmem:[#allocation2 + $0x8] sm:$0xf]  ;;  %v4665_v27 = vld [vmem:[%s5960_s6 + $0x38] sm:$0xff]  }
  0x3a   :  { %4112 = vmatprep.subr.bf16.mxu1 %v4644_v30  ;;  %v4658_v49 = vld [vmem:[%s5957_s3 + $0x170] sm:$0xff]   ;;  %vm5294_vm9 = vmor %vm934_vm7, %vm933_vm6 }
  0x3b   :  { %v3513_v50 = vld [vmem:[%s5958_s4 + $0x1] ss:$8 sm:$0x7] }
  0x3c   :  { %v510_v53 = vrot.slane %v3513_v50, %v5000_v24  ;;  %v3514_v55 = vld [vmem:[%s5959_s5 + $0x1] ss:$8 sm:$0x7] }
  0x3d   :  { %4113 = vmatpush3.bf16.msra.mxu1 %v4645_v35  ;;  %v530_v59 = vrot.slane %v3514_v55, %v5000_v24 }
  0x3e   :  { %4114 = vmatprep.subr.bf16.mxu1 %v4647_v36  ;;  %v515_v58 = vmul.f32 %v510_v53, %v495_v56  ;;  %v3588_v36 = vld [vmem:[%s5962_s8 + $0x1] ss:$0 sm:$0xff]  ;;  %v4674_v56 = vld [vmem:[%s5957_s3 + $0x210] sm:$0xff]  }
  0x41   :  { %4115 = vmatpush3.bf16.msra.mxu1 %v4648_v38 }
  0x42   :  { %4116 = vmatprep.subr.bf16.mxu1 %v4650_v40 }
  0x45   :  { %4117 = vmatpush3.bf16.msra.mxu1 %v4651_v41  ;;  %v4666_v41 = vld [vmem:[%s5957_s3 + $0x1c0] sm:$0xff]  }
  0x46   :  { %4118 = vmatprep.subr.bf16.mxu1 %v4653_v43  ;;  %v4668_v43 = vld [vmem:[%s5957_s3 + $0x200] sm:$0xff]  }
  0x49   :  { %4119 = vmatpush3.bf16.msra.mxu1 %v4654_v44  ;;  %v4669_v44 = vld [vmem:[%s5957_s3 + $0x1c8] sm:$0xff]  }
  0x4a   :  { %4120 = vmatprep.subr.bf16.mxu1 %v4656_v46 }
  0x4d   :  { %4121 = vmatpush3.bf16.msra.mxu1 %v4657_v48 }
  0x4e   :  { %4122 = vmatprep.subr.bf16.mxu1 %v4659_v52 }
  0x8d   :  { %v5068_v13 = vpop.permute.xlu0 %464 }
  0x91   :  { %v5094_v32 = vpop.permute.xlu0 %474 }
  0xf5   :  { %v4088_v0 = vpop.f32.mrb[0].mxu0 }
  0xf6   :  { %v361_v60 = vpop.f32.mrb[0].mxu1  ;;  %v4089_v2 = vpop.f32.mrb[1].mxu0 }
  0xf7   :  { %v4373_v61 = vpop.f32.mrb[1].mxu1  ;;  %v4090_v3 = vadd.f32 %v4089_v2, %v4088_v0  ;;  %v4091_v4 = vpop.f32.mrb[2].mxu0 }
  0xf8   :  { %v364_v62 = vpop.f32.mrb[2].mxu1  ;;  %v4092_v6 = vpop.f32.mrb[3].mxu0  ;;  %v4661_v61 = vld [vmem:[%s5957_s3 + $0x178] sm:$0xff]   ;;  %v506_v4 = vrot.slane %v3513_v50, %v4998_v23 }
  0xf9   :  { %v4374_v63 = vpop.f32.mrb[3].mxu1  ;;  %v362_v7 = vadd.f32 %v4090_v3, %v361_v60  ;;  %v4660_v60 = vld [vmem:[%s5957_s3 + $0xf8] sm:$0xff]   ;;  %v535_v62 = vadd.f32 %v530_v59, %v515_v58  ;;  %v502_v3 = vrot.slane %v3513_v50, %v4995_v22  ;;  %v526_v6 = vrot.slane %v3514_v55, %v4998_v23  ;;  %v4673_v59 = vld [vmem:[%s5957_s3 + $0x190] sm:$0xff]  }
  0xfa   :  { %4123 = vmatpush3.bf16.msra.mxu1 %v4660_v60  ;;  %v4675_v60 = vld [vmem:[%s5957_s3 + $0x1d8] sm:$0xff]  }
  0xfb   :  { %v372_v9 = vmul.f32 %v3506_v5, %v362_v7  ;;  %v537_v63 = vmax.f32 %v535_v62, 0.0  ;;  %4407 = vmatprep.subr.bf16.mxu1 %v4859_v1  ;;  %v522_v5 = vrot.slane %v3514_v55, %v4995_v22  ;;  %v512_v7 = vcombine.low %v502_v3, %v506_v4  ;;  %v4677_v62 = vld [vmem:[%s5957_s3 + $0x218] sm:$0xff]   ;;  %v4681_v3 = vld [vmem:[%s5957_s3 + $0x1e8] sm:$0xff]  }
  0xfc   :  { %v4682_v4 = vld [vmem:[%s5957_s3 + $0x1a8] sm:$0xff]  }
  0xfd   :  { %v378_v10 = vadd.f32 %v3507_v8, %v372_v9  ;;  %v543_v0 = vpack.c.bf16 %v537_v63, %v537_v63  ;;  %v532_v8 = vcombine.low %v522_v5, %v526_v6  ;;  %v4678_v63 = vld [vmem:[%s5957_s3 + $0x1e0] sm:$0xff]   ;;  %v4683_v5 = vld [vmem:[%s5957_s3 + $0x228] sm:$0xff]  }
  0xff   :  { %v379_v11 = vmax.f32 %v378_v10, 0.0 }
 0x101   :  { %v380_v12 = vpack.c.bf16 %v379_v11, %v379_v11 }
 0x103   :  { %4384 = vmatmul.mubr.msk.bf16.vlgmr.msra.gmra.mrb[4].mxu0 %vm413_vm2, %v380_v12 }
 0x104   :  { %4403 = vmatprep.mubr.msk.bf16.mxu0 %vm4860_vm0, %v4859_v1  ;;  %4388 = vmatpush3.bf16.msra.mxu0 %v4640_v16  ;;  %v4662_v16 = vld [vmem:[%s5960_s6 + $0x20] sm:$0xff]  }
 0x105   :  { %4389 = vmatprep.subr.bf16.mxu0 %v4859_v1 }
 0x108   :  { %4390 = vmatpush3.bf16.msra.mxu0 %v4643_v25 }
 0x109   :  { %4391 = vmatprep.subr.bf16.mxu0 %v4859_v1 }
 0x10c   :  { %4392 = vmatpush3.bf16.msra.mxu0 %v4646_v34 }
 0x10d   :  { %4393 = vmatprep.subr.bf16.mxu0 %v4859_v1 }
 0x110   :  { %4394 = vmatpush3.bf16.msra.mxu0 %v4649_v39 }
 0x111   :  { %4395 = vmatprep.subr.bf16.mxu0 %v4859_v1 }
 0x114   :  { %4396 = vmatpush3.bf16.msra.mxu0 %v4652_v42  ;;  %v4667_v42 = vld [vmem:[%s5957_s3 + $0x180] sm:$0xff]  }
 0x115   :  { %4397 = vmatprep.subr.bf16.mxu0 %v4859_v1 }
 0x118   :  { %4398 = vmatpush3.bf16.msra.mxu0 %v4655_v45  ;;  %v4671_v45 = vld [vmem:[%s5957_s3 + $0x208] sm:$0xff]  }
 0x119   :  { %4399 = vmatprep.subr.bf16.mxu0 %v4859_v1 }
 0x11c   :  { %4400 = vmatpush3.bf16.msra.mxu0 %v4658_v49 }
 0x11d   :  { %4401 = vmatprep.subr.bf16.mxu0 %v4859_v1 }
 0x120   :  { %4402 = vmatpush3.bf16.msra.mxu0 %v4661_v61  ;;  %v4676_v61 = vld [vmem:[%s5957_s3 + $0x198] sm:$0xff]  }
 0x121   :  { %4144 = vmatprep.subr.bf16.mxu0 %v4666_v41 }
 0x123   :  { %4404 = vmatmul.mubr.bf16.vlgmr.msra.gmra.mrb[8].mxu0 %v543_v0  ;;  %v4679_v0 = vld [vmem:[%s5957_s3 + $0x1a0] sm:$0xff]  }
 0x124   :  { %4145 = vmatpush3.bf16.msra.mxu0 %v4667_v42 }
 0x125   :  { %4146 = vmatprep.subr.bf16.mxu0 %v4669_v44 }
 0x1d6   :  { %v451_v17 = vpop.f32.mrb[4].mxu0 }
 0x1d7   :  { %v458_v19 = vrot.slane %v451_v17, 7  ;;  %v468_v20 = vrot.slane %v451_v17, 1  ;;  %v4385_v21 = vpop.f32.mrb[5].mxu0 }
 0x1d8   :  { %v454_v26 = vpop.f32.mrb[6].mxu0 }
 0x1d9   :  { %v4386_v28 = vpop.f32.mrb[7].mxu0  ;;  %v461_v29 = vsel %vm460_vm3, 0.0, %v458_v19  ;;  %v471_v33 = vsel %vm470_vm4, %v468_v20, 0.0  ;;  %v4663_v20 = vld [vmem:[%s5960_s6 + $0x28] sm:$0xff]   ;;  %v4664_v26 = vld [vmem:[%s5960_s6 + $0x30] sm:$0xff]  }
 0x1da   :  { %v467_v31 = vmul.f32 %v5068_v13, %v461_v29  ;;  %v477_v37 = vmul.f32 %v5094_v32, %v471_v33  ;;  %v3587_v33 = vld [vmem:[%s5961_s7 + $0x1] ss:$0 sm:$0xff] }
 0x1dc   :  { %479 = vrot.lane.b32.xlu1 %v467_v31, %s4862_s23 }
 0x1e0   :  { %484 = vrot.lane.b32.xlu1 %v477_v37, %s4863_s27 }
 0x1f6   :  { %v811_v18 = vpop.f32.mrb[8].mxu0 }
 0x1f7   :  { %v4405_v19 = vpop.f32.mrb[9].mxu0 }
 0x1f8   :  { %v814_v21 = vpop.f32.mrb[10].mxu0 }
 0x1f9   :  { %v4406_v25 = vpop.f32.mrb[11].mxu0  ;;  %v4688_v21 = vld [vmem:[%s5957_s3 + $0x1b8] sm:$0xff]  }
 0x1fa   :  { %v4689_v25 = vld [vmem:[%s5957_s3 + $0x238] sm:$0xff]  }
 0x24e   :  { %v480_v47 = vpop.permute.xlu1 %479 }
 0x24f   :  { %v482_v51 = vadd.f32 %v480_v47, %v451_v17  ;;  %v4670_v47 = vld [vmem:[%s5957_s3 + $0x188] sm:$0xff]  }
 0x250   :  { %4147 = vmatpush3.bf16.msra.mxu0 %v4670_v47 }
 0x252   :  { %v485_v54 = vpop.permute.xlu1 %484 }
 0x253   :  { %v487_v57 = vadd.f32 %v485_v54, %v482_v51  ;;  %v4672_v51 = vld [vmem:[%s5957_s3 + $0x1d0] sm:$0xff]  }
 0x254   :  { %4148 = vmatprep.subr.bf16.mxu0 %v4672_v51 }
 0x255   :  { %489 = vrot.lane.b32.xlu0 %v487_v57, %s4864_s19  ;;  %4149 = vmatpush3.bf16.msra.mxu0 %v4673_v59  ;;  %v3676_v59 = vld [vmem:[%s5961_s7 + $0x2] ss:$0 sm:$0xff] }
 0x256   :  { %4150 = vmatprep.subr.bf16.mxu0 %v4675_v60 }
 0x259   :  { %4151 = vmatpush3.bf16.msra.mxu0 %v4676_v61 }
 0x25a   :  { %4152 = vmatprep.subr.bf16.mxu0 %v4678_v63 }
 0x25d   :  { %4153 = vmatpush3.bf16.msra.mxu0 %v4679_v0 }
 0x25e   :  { %4154 = vmatprep.subr.bf16.mxu0 %v4681_v3 }
 0x261   :  { %4155 = vmatpush3.bf16.msra.mxu0 %v4682_v4  ;;  %v4694_v4 = vld [vmem:[%s5957_s3 + $0x280] sm:$0xff]  }
 0x2c7   :  { %v490_v2 = vpop.permute.xlu0 %489 }
 0x2c8   :  { %493 = vst.msk [vmem:[#allocation2] sm:$0xf] %vm492_vm5, %v490_v2  ;;  %v4680_v2 = vld [vmem:[%s5957_s3 + $0x220] sm:$0xff]  }
 0x2cf   :  { %v494_v9 = vld [vmem:[#allocation2] sm:$0xff] }
 0x2d0   :  { %v514_v10 = vmul.f32 %v512_v7, %v494_v9  ;;  %v4684_v7 = vld [vmem:[%s5957_s3 + $0x1f0] sm:$0xff]  }
 0x2d1   :  { %4156 = vmatprep.subr.bf16.mxu0 %v4684_v7  ;;  %v4697_v7 = vld [vmem:[%s5957_s3 + $0x288] sm:$0xff]  }
 0x2d2   :  { %v534_v11 = vadd.f32 %v532_v8, %v514_v10 }
 0x2d4   :  { %v536_v12 = vmax.f32 %v534_v11, 0.0  ;;  %v4685_v11 = vld [vmem:[%s5957_s3 + $0x1b0] sm:$0xff]  }
 0x2d5   :  { %4157 = vmatpush3.bf16.msra.mxu0 %v4685_v11 }
 0x2d6   :  { %v539_v14 = vcombine.high %v536_v12, %v536_v12  ;;  %v541_v17 = vpack.c.bf16 %v536_v12, %v536_v12  ;;  %v4686_v12 = vld [vmem:[%s5957_s3 + $0x230] sm:$0xff]  }
 0x2d8   :  { %v542_v15 = vpack.c.bf16 %v539_v14, %v539_v14  ;;  %v3602_v14 = vld [vmem:[%s5958_s4 + $0x2] ss:$8 sm:$0x7] }
 0x2da   :  { %769 = vmatprep.mubr.bf16.mxu1 %v542_v15  ;;  %v4687_v15 = vld [vmem:[%s5957_s3 + $0x1f8] sm:$0xff]  }
 0x2db   :  { %770 = vmatmul.mubr.bf16.vlgmr.msra.gmra.mrb[4].mxu1 %v541_v17  ;;  %v3603_v17 = vld [vmem:[%s5959_s5 + $0x2] ss:$8 sm:$0x7]  ;;  %4158 = vmatprep.subr.bf16.mxu0 %v4687_v15 }
 0x2dc   :  { %4408 = vmatpush3.bf16.msra.mxu1 %v4662_v16  ;;  %4415 = vmatprep.mubr.msk.bf16.mxu1 %vm4860_vm0, %v4859_v1  ;;  %v953_v16 = vrot.slane %v3602_v14, %v5000_v24  ;;  %v4700_v15 = vld [vmem:[%s5957_s3 + $0x290] sm:$0xff]  }
 0x2dd   :  { %4409 = vmatprep.subr.bf16.mxu1 %v4859_v1  ;;  %4159 = vmatpush3.bf16.msra.mxu0 %v4688_v21 }
 0x2de   :  { %4439 = vmatprep.subr.bf16.mxu0 %v4859_v1 }
 0x2e0   :  { %4410 = vmatpush3.bf16.msra.mxu1 %v4663_v20  ;;  %v973_v20 = vrot.slane %v3603_v17, %v5000_v24 }
 0x2e1   :  { %4411 = vmatprep.subr.bf16.mxu1 %v4859_v1 }
 0x2e4   :  { %4412 = vmatpush3.bf16.msra.mxu1 %v4664_v26 }
 0x2e5   :  { %4413 = vmatprep.subr.bf16.mxu1 %v4859_v1 }
 0x2e8   :  { %4414 = vmatpush3.bf16.msra.mxu1 %v4665_v27 }
 0x2e9   :  { %4419 = vmatprep.subr.bf16.mxu1 %v4859_v1 }
 0x3ae   :  { %v4124_v28 = vpop.f32.mrb[4].mxu1 }
 0x3af   :  { %v4125_v29 = vpop.f32.mrb[5].mxu1 }
 0x3b0   :  { %v4126_v30 = vadd.f32 %v4125_v29, %v4124_v28  ;;  %v4127_v31 = vpop.f32.mrb[6].mxu1 }
 0x3b1   :  { %v4128_v34 = vpop.f32.mrb[7].mxu1 }
 0x3b2   :  { %v812_v35 = vadd.f32 %v4126_v30, %v811_v18  ;;  %v938_v18 = vld [vmem:[#allocation2 + $0x8] sm:$0xf]  ;;  %v945_v34 = vrot.slane %v3602_v14, %v4995_v22 }
 0x3b3   :  { %v958_v19 = vmul.f32 %v953_v16, %v938_v18 }
 0x3b4   :  { %v822_v37 = vmul.f32 %v3587_v33, %v812_v35  ;;  %v949_v35 = vrot.slane %v3602_v14, %v4998_v23 }
 0x3b5   :  { %v978_v26 = vadd.f32 %v973_v20, %v958_v19  ;;  %v4702_v20 = vld [vmem:[%s5957_s3 + $0x2d0] sm:$0xff]  }
 0x3b6   :  { %v828_v38 = vadd.f32 %v3588_v36, %v822_v37  ;;  %v965_v36 = vrot.slane %v3603_v17, %v4995_v22  ;;  %v969_v37 = vrot.slane %v3603_v17, %v4998_v23 }
 0x3b7   :  { %v980_v27 = vmax.f32 %v978_v26, 0.0  ;;  %v4701_v26 = vld [vmem:[%s5957_s3 + $0x250] sm:$0xff]  }
 0x3b8   :  { %v829_v39 = vmax.f32 %v828_v38, 0.0  ;;  %v955_v38 = vcombine.low %v945_v34, %v949_v35  ;;  %v4708_v34 = vld [vmem:[%s5957_s3 + $0x2e0] sm:$0xff]   ;;  %v4709_v35 = vld [vmem:[%s5957_s3 + $0x2a8] sm:$0xff]  }
 0x3b9   :  { %v986_v28 = vpack.c.bf16 %v980_v27, %v980_v27  ;;  %v4703_v27 = vld [vmem:[%s5957_s3 + $0x298] sm:$0xff]  }
 0x3ba   :  { %v830_v40 = vpack.c.bf16 %v829_v39, %v829_v39  ;;  %v975_v39 = vcombine.low %v965_v36, %v969_v37  ;;  %v4710_v36 = vld [vmem:[%s5957_s3 + $0x268] sm:$0xff]  }
 0x3bb   :  { %v4711_v37 = vld [vmem:[%s5957_s3 + $0x2e8] sm:$0xff]  }
 0x3bc   :  { %4416 = vmatmul.mubr.msk.bf16.vlgmr.msra.gmra.mrb[8].mxu1 %vm413_vm2, %v830_v40 }
 0x3bd   :  { %4435 = vmatprep.mubr.msk.bf16.mxu1 %vm4860_vm0, %v4859_v1  ;;  %4420 = vmatpush3.bf16.msra.mxu1 %v4668_v43 }
 0x3be   :  { %4421 = vmatprep.subr.bf16.mxu1 %v4859_v1 }
 0x3c1   :  { %4422 = vmatpush3.bf16.msra.mxu1 %v4671_v45 }
 0x3c2   :  { %4423 = vmatprep.subr.bf16.mxu1 %v4859_v1 }
 0x3c5   :  { %4424 = vmatpush3.bf16.msra.mxu1 %v4674_v56 }
 0x3c6   :  { %4425 = vmatprep.subr.bf16.mxu1 %v4859_v1 }
 0x3c9   :  { %4426 = vmatpush3.bf16.msra.mxu1 %v4677_v62  ;;  %v3677_v62 = vld [vmem:[%s5962_s8 + $0x2] ss:$0 sm:$0xff] }
 0x3ca   :  { %4427 = vmatprep.subr.bf16.mxu1 %v4859_v1 }
 0x3cd   :  { %4428 = vmatpush3.bf16.msra.mxu1 %v4680_v2 }
 0x3ce   :  { %4429 = vmatprep.subr.bf16.mxu1 %v4859_v1 }
 0x3d1   :  { %4430 = vmatpush3.bf16.msra.mxu1 %v4683_v5  ;;  %v4695_v5 = vld [vmem:[%s5957_s3 + $0x240] sm:$0xff]  }
 0x3d2   :  { %4431 = vmatprep.subr.bf16.mxu1 %v4859_v1 }
 0x3d5   :  { %4432 = vmatpush3.bf16.msra.mxu1 %v4686_v12 }
 0x3d6   :  { %4433 = vmatprep.subr.bf16.mxu1 %v4859_v1 }
 0x3d9   :  { %4434 = vmatpush3.bf16.msra.mxu1 %v4689_v25 }
 0x3da   :  { %4180 = vmatprep.subr.bf16.mxu1 %v4694_v4 }
 0x3dc   :  { %4436 = vmatmul.mubr.bf16.vlgmr.msra.gmra.mrb[12].mxu1 %v986_v28  ;;  %v4704_v28 = vld [vmem:[%s5957_s3 + $0x258] sm:$0xff]  }
 0x3dd   :  { %4181 = vmatpush3.bf16.msra.mxu1 %v4695_v5 }
 0x3de   :  { %4182 = vmatprep.subr.bf16.mxu1 %v4697_v7  ;;  %v4718_v7 = vld [vmem:[%s5960_s6 + $0x60] sm:$0xff]  }
 0x48f   :  { %v901_v46 = vpop.f32.mrb[8].mxu1 }
 0x490   :  { %v908_v48 = vrot.slane %v901_v46, 7  ;;  %v912_v49 = vrot.slane %v901_v46, 1  ;;  %v4417_v50 = vpop.f32.mrb[9].mxu1 }
 0x491   :  { %v904_v52 = vpop.f32.mrb[10].mxu1  ;;  %v4691_v50 = vld [vmem:[%s5960_s6 + $0x48] sm:$0xff]  }
 0x492   :  { %v4418_v53 = vpop.f32.mrb[11].mxu1  ;;  %v914_v54 = vsel %vm470_vm4, %v912_v49, 0.0  ;;  %v910_v55 = vsel %vm460_vm3, 0.0, %v908_v48 }
 0x493   :  { %v915_v57 = vmul.f32 %v914_v54, %v5094_v32  ;;  %v911_v58 = vmul.f32 %v910_v55, %v5068_v13  ;;  %v4692_v53 = vld [vmem:[%s5960_s6 + $0x50] sm:$0xff]   ;;  %v4693_v54 = vld [vmem:[%s5960_s6 + $0x58] sm:$0xff]  }
 0x495   :  { %922 = vrot.lane.b32.xlu0 %v915_v57, %s4863_s27  ;;  %917 = vrot.lane.b32.xlu1 %v911_v58, %s4862_s23 }
 0x4af   :  { %v1254_v48 = vpop.f32.mrb[12].mxu1 }
 0x4b0   :  { %v4437_v49 = vpop.f32.mrb[13].mxu1 }
 0x4b1   :  { %v1257_v51 = vpop.f32.mrb[14].mxu1 }
 0x4b2   :  { %v4438_v52 = vpop.f32.mrb[15].mxu1 }
 0x4b3   :  { %v4716_v52 = vld [vmem:[%s5957_s3 + $0x278] sm:$0xff]  }
 0x507   :  { %v918_v6 = vpop.permute.xlu1 %917  ;;  %v923_v9 = vpop.permute.xlu0 %922 }
 0x508   :  { %v920_v8 = vadd.f32 %v918_v6, %v901_v46  ;;  %v4690_v46 = vld [vmem:[%s5960_s6 + $0x40] sm:$0xff]  }
 0x509   :  { %v4696_v6 = vld [vmem:[%s5957_s3 + $0x2c0] sm:$0xff]  }
 0x50a   :  { %v925_v10 = vadd.f32 %v923_v9, %v920_v8  ;;  %v4699_v8 = vld [vmem:[%s5957_s3 + $0x2c8] sm:$0xff]  }
 0x50c   :  { %927 = vrot.lane.b32.xlu1 %v925_v10, %s4865_s21  ;;  %v4698_v10 = vld [vmem:[%s5957_s3 + $0x248] sm:$0xff]  }
 0x50d   :  { %4183 = vmatpush3.bf16.msra.mxu1 %v4698_v10 }
 0x50e   :  { %4184 = vmatprep.subr.bf16.mxu1 %v4700_v15  ;;  %v4720_v15 = vld [vmem:[%s5960_s6 + $0x70] sm:$0xff]  }
 0x511   :  { %4185 = vmatpush3.bf16.msra.mxu1 %v4701_v26 }
 0x512   :  { %4186 = vmatprep.subr.bf16.mxu1 %v4703_v27  ;;  %v3766_v27 = vld [vmem:[%s5962_s8 + $0x3] ss:$0 sm:$0xff] }
 0x515   :  { %4187 = vmatpush3.bf16.msra.mxu1 %v4704_v28 }
 0x57e   :  { %v928_v29 = vpop.permute.xlu1 %927 }
 0x57f   :  { %v929_v31 = vrot.slane %v928_v29, 4 }
 0x581   :  { %v931_v33 = vsel %vm930_vm8, %v929_v31, %v928_v29  ;;  %v4705_v29 = vld [vmem:[%s5957_s3 + $0x2d8] sm:$0xff]   ;;  %v4706_v31 = vld [vmem:[%s5957_s3 + $0x2a0] sm:$0xff]  }
 0x582   :  { %936 = vst.msk [vmem:[#allocation2] sm:$0xff] %vm5294_vm9, %v931_v33  ;;  %v4707_v33 = vld [vmem:[%s5957_s3 + $0x260] sm:$0xff]   ;;  %4188 = vmatprep.subr.bf16.mxu1 %v4706_v31 }
 0x583   :  { %4189 = vmatpush3.bf16.msra.mxu1 %v4707_v33 }
 0x584   :  { %4190 = vmatprep.subr.bf16.mxu1 %v4709_v35  ;;  %v4723_v35 = vld [vmem:[%s5957_s3 + $0x300] sm:$0xff]  }
 0x587   :  { %4191 = vmatpush3.bf16.msra.mxu1 %v4710_v36  ;;  %v4724_v36 = vld [vmem:[%s5957_s3 + $0x380] sm:$0xff]  }
 0x589   :  { %v937_v40 = vld [vmem:[#allocation2] sm:$0xff] }
 0x58a   :  { %v957_v41 = vmul.f32 %v955_v38, %v937_v40  ;;  %v4712_v38 = vld [vmem:[%s5957_s3 + $0x2b0] sm:$0xff]  }
 0x58b   :  { %v4713_v40 = vld [vmem:[%s5957_s3 + $0x270] sm:$0xff]   ;;  %4192 = vmatprep.subr.bf16.mxu1 %v4712_v38  ;;  %v4727_v38 = vld [vmem:[%s5957_s3 + $0x388] sm:$0xff]  }
 0x58c   :  { %v977_v42 = vadd.f32 %v975_v39, %v957_v41  ;;  %v4714_v41 = vld [vmem:[%s5957_s3 + $0x2f0] sm:$0xff]   ;;  %4193 = vmatpush3.bf16.msra.mxu1 %v4713_v40  ;;  %v4726_v40 = vld [vmem:[%s5957_s3 + $0x308] sm:$0xff]  }
 0x58e   :  { %v979_v43 = vmax.f32 %v977_v42, 0.0  ;;  %v3691_v42 = vld [vmem:[%s5958_s4 + $0x3] ss:$8 sm:$0x7] }
 0x590   :  { %v982_v44 = vcombine.high %v979_v43, %v979_v43  ;;  %v984_v47 = vpack.c.bf16 %v979_v43, %v979_v43 }
 0x592   :  { %v985_v45 = vpack.c.bf16 %v982_v44, %v982_v44  ;;  %v4715_v44 = vld [vmem:[%s5957_s3 + $0x2b8] sm:$0xff]  }
 0x593   :  { %4194 = vmatprep.subr.bf16.mxu1 %v4715_v44  ;;  %v4728_v44 = vld [vmem:[%s5957_s3 + $0x350] sm:$0xff]  }
 0x594   :  { %1212 = vmatprep.mubr.bf16.mxu0 %v985_v45  ;;  %v1391_v45 = vrot.slane %v3691_v42, %v5000_v24  ;;  %4195 = vmatpush3.bf16.msra.mxu1 %v4716_v52  ;;  %v4729_v52 = vld [vmem:[%s5957_s3 + $0x310] sm:$0xff]  }
 0x595   :  { %1213 = vmatmul.mubr.bf16.vlgmr.msra.gmra.mrb[12].mxu0 %v984_v47  ;;  %v3692_v47 = vld [vmem:[%s5959_s5 + $0x3] ss:$8 sm:$0x7]  ;;  %4471 = vmatprep.subr.bf16.mxu1 %v4859_v1 }
 0x596   :  { %4440 = vmatpush3.bf16.msra.mxu0 %v4690_v46  ;;  %4447 = vmatprep.mubr.msk.bf16.mxu0 %vm4860_vm0, %v4859_v1  ;;  %v1411_v51 = vrot.slane %v3692_v47, %v5000_v24 }
 0x597   :  { %4441 = vmatprep.subr.bf16.mxu0 %v4859_v1 }
 0x59a   :  { %4442 = vmatpush3.bf16.msra.mxu0 %v4691_v50 }
 0x59b   :  { %4443 = vmatprep.subr.bf16.mxu0 %v4859_v1 }
 0x59e   :  { %4444 = vmatpush3.bf16.msra.mxu0 %v4692_v53  ;;  %v4717_v53 = vld [vmem:[%s5957_s3 + $0x2f8] sm:$0xff]  }
 0x59f   :  { %4445 = vmatprep.subr.bf16.mxu0 %v4859_v1 }
 0x5a2   :  { %4446 = vmatpush3.bf16.msra.mxu0 %v4693_v54 }
 0x5a3   :  { %4451 = vmatprep.subr.bf16.mxu0 %v4859_v1 }
 0x668   :  { %v4160_v55 = vpop.f32.mrb[12].mxu0 }
 0x669   :  { %v4161_v56 = vpop.f32.mrb[13].mxu0 }
 0x66a   :  { %v4162_v57 = vadd.f32 %v4161_v56, %v4160_v55  ;;  %v4163_v58 = vpop.f32.mrb[14].mxu0 }
 0x66b   :  { %v4164_v60 = vpop.f32.mrb[15].mxu0  ;;  %v1383_v58 = vrot.slane %v3691_v42, %v4995_v22 }
 0x66c   :  { %v1255_v61 = vadd.f32 %v4162_v57, %v1254_v48  ;;  %v1376_v48 = vld [vmem:[#allocation2 + $0x8] sm:$0xf]  ;;  %v1403_v60 = vrot.slane %v3692_v47, %v4995_v22 }
 0x66d   :  { %v1396_v50 = vmul.f32 %v1391_v45, %v1376_v48 }
 0x66e   :  { %v1265_v63 = vmul.f32 %v3676_v59, %v1255_v61  ;;  %v1387_v59 = vrot.slane %v3691_v42, %v4998_v23  ;;  %v1407_v61 = vrot.slane %v3692_v47, %v4998_v23 }
 0x66f   :  { %v1416_v54 = vadd.f32 %v1411_v51, %v1396_v50 }
 0x670   :  { %v1271_v0 = vadd.f32 %v3677_v62, %v1265_v63  ;;  %v1393_v62 = vcombine.low %v1383_v58, %v1387_v59  ;;  %v1413_v63 = vcombine.low %v1403_v60, %v1407_v61  ;;  %v4736_v58 = vld [vmem:[%s5957_s3 + $0x3a0] sm:$0xff]   ;;  %v4737_v59 = vld [vmem:[%s5957_s3 + $0x368] sm:$0xff]  }
 0x671   :  { %v1418_v55 = vmax.f32 %v1416_v54, 0.0  ;;  %v4732_v54 = vld [vmem:[%s5957_s3 + $0x318] sm:$0xff]   ;;  %v4738_v60 = vld [vmem:[%s5957_s3 + $0x328] sm:$0xff]  }
 0x672   :  { %v1272_v2 = vmax.f32 %v1271_v0, 0.0  ;;  %v4739_v61 = vld [vmem:[%s5957_s3 + $0x3a8] sm:$0xff]  }
 0x673   :  { %v1424_v56 = vpack.c.bf16 %v1418_v55, %v1418_v55  ;;  %v4733_v55 = vld [vmem:[%s5957_s3 + $0x398] sm:$0xff]  }
 0x674   :  { %v1273_v3 = vpack.c.bf16 %v1272_v2, %v1272_v2 }
 0x676   :  { %4448 = vmatmul.mubr.msk.bf16.vlgmr.msra.gmra.mrb[16].mxu0 %vm413_vm2, %v1273_v3 }
 0x677   :  { %4467 = vmatprep.mubr.msk.bf16.mxu0 %vm4860_vm0, %v4859_v1  ;;  %4452 = vmatpush3.bf16.msra.mxu0 %v4696_v6 }
 0x678   :  { %4453 = vmatprep.subr.bf16.mxu0 %v4859_v1 }
 0x67b   :  { %4454 = vmatpush3.bf16.msra.mxu0 %v4699_v8 }
 0x67c   :  { %4455 = vmatprep.subr.bf16.mxu0 %v4859_v1 }
 0x67f   :  { %4456 = vmatpush3.bf16.msra.mxu0 %v4702_v20 }
 0x680   :  { %4457 = vmatprep.subr.bf16.mxu0 %v4859_v1 }
 0x683   :  { %4458 = vmatpush3.bf16.msra.mxu0 %v4705_v29 }
 0x684   :  { %4459 = vmatprep.subr.bf16.mxu0 %v4859_v1 }
 0x687   :  { %4460 = vmatpush3.bf16.msra.mxu0 %v4708_v34  ;;  %v4722_v34 = vld [vmem:[%s5957_s3 + $0x340] sm:$0xff]  }
 0x688   :  { %4461 = vmatprep.subr.bf16.mxu0 %v4859_v1 }
 0x68b   :  { %4462 = vmatpush3.bf16.msra.mxu0 %v4711_v37  ;;  %v4725_v37 = vld [vmem:[%s5957_s3 + $0x348] sm:$0xff]  }
 0x68c   :  { %4463 = vmatprep.subr.bf16.mxu0 %v4859_v1 }
 0x68f   :  { %4464 = vmatpush3.bf16.msra.mxu0 %v4714_v41 }
 0x690   :  { %4465 = vmatprep.subr.bf16.mxu0 %v4859_v1 }
 0x693   :  { %4466 = vmatpush3.bf16.msra.mxu0 %v4717_v53  ;;  %v4731_v53 = vld [vmem:[%s5957_s3 + $0x358] sm:$0xff]  }
 0x694   :  { %4216 = vmatprep.subr.bf16.mxu0 %v4722_v34 }
 0x696   :  { %4468 = vmatmul.mubr.bf16.vlgmr.msra.gmra.mrb[20].mxu0 %v1424_v56  ;;  %v4734_v56 = vld [vmem:[%s5957_s3 + $0x360] sm:$0xff]  }
 0x697   :  { %4217 = vmatpush3.bf16.msra.mxu0 %v4723_v35 }
 0x698   :  { %4218 = vmatprep.subr.bf16.mxu0 %v4725_v37  ;;  %v4746_v37 = vld [vmem:[%s5960_s6 + $0x80] sm:$0xff]  }
 0x69b   :  { %4219 = vmatpush3.bf16.msra.mxu0 %v4726_v40 }
 0x69c   :  { %4220 = vmatprep.subr.bf16.mxu0 %v4728_v44  ;;  %v4748_v44 = vld [vmem:[%s5960_s6 + $0x90] sm:$0xff]  }
 0x69f   :  { %4221 = vmatpush3.bf16.msra.mxu0 %v4729_v52 }
 0x6a0   :  { %4222 = vmatprep.subr.bf16.mxu0 %v4731_v53  ;;  %v3855_v53 = vld [vmem:[%s5962_s8 + $0x4] ss:$0 sm:$0xff] }
 0x6a3   :  { %4223 = vmatpush3.bf16.msra.mxu0 %v4732_v54 }
 0x6a4   :  { %4224 = vmatprep.subr.bf16.mxu0 %v4734_v56 }
 0x749   :  { %v1344_v9 = vpop.f32.mrb[16].mxu0 }
 0x74a   :  { %v1351_v11 = vrot.slane %v1344_v9, 7  ;;  %v1355_v12 = vrot.slane %v1344_v9, 1  ;;  %v4449_v14 = vpop.f32.mrb[17].mxu0 }
 0x74b   :  { %v1347_v16 = vpop.f32.mrb[18].mxu0 }
 0x74c   :  { %v4450_v17 = vpop.f32.mrb[19].mxu0  ;;  %v1357_v18 = vsel %vm470_vm4, %v1355_v12, 0.0  ;;  %v1353_v19 = vsel %vm460_vm3, 0.0, %v1351_v11  ;;  %v4719_v11 = vld [vmem:[%s5960_s6 + $0x68] sm:$0xff]   ;;  %v4721_v16 = vld [vmem:[%s5960_s6 + $0x78] sm:$0xff]  }
 0x74d   :  { %v1358_v21 = vmul.f32 %v1357_v18, %v5094_v32  ;;  %v1354_v25 = vmul.f32 %v1353_v19, %v5068_v13 }
 0x74f   :  { %1365 = vrot.lane.b32.xlu1 %v1358_v21, %s4863_s27  ;;  %1360 = vrot.lane.b32.xlu0 %v1354_v25, %s4862_s23  ;;  %v3765_v21 = vld [vmem:[%s5961_s7 + $0x3] ss:$0 sm:$0xff] }
 0x7c1   :  { %v1361_v39 = vpop.permute.xlu0 %1360  ;;  %v1366_v46 = vpop.permute.xlu1 %1365 }
 0x7c2   :  { %v1363_v43 = vadd.f32 %v1361_v39, %v1344_v9  ;;  %v1692_v9 = vpop.f32.mrb[20].mxu0 }
 0x7c3   :  { %v4469_v10 = vpop.f32.mrb[21].mxu0 }
 0x7c4   :  { %v1368_v49 = vadd.f32 %v1366_v46, %v1363_v43  ;;  %v1695_v12 = vpop.f32.mrb[22].mxu0 }
 0x7c5   :  { %v4470_v14 = vpop.f32.mrb[23].mxu0 }
 0x7c6   :  { %1370 = vrot.lane.b32.xlu0 %v1368_v49, %s4866_s18  ;;  %v4730_v49 = vld [vmem:[%s5957_s3 + $0x390] sm:$0xff]   ;;  %v4744_v14 = vld [vmem:[%s5957_s3 + $0x338] sm:$0xff]  }
 0x838   :  { %v1371_v57 = vpop.permute.xlu0 %1370 }
 0x839   :  { %1374 = vst.msk [vmem:[#allocation2 + $0x4] sm:$0xf] %vm1373_vm10, %v1371_v57  ;;  %v4735_v57 = vld [vmem:[%s5957_s3 + $0x320] sm:$0xff]  }
 0x83a   :  { %4225 = vmatpush3.bf16.msra.mxu0 %v4735_v57 }
 0x83b   :  { %4226 = vmatprep.subr.bf16.mxu0 %v4737_v59  ;;  %v4751_v59 = vld [vmem:[%s5957_s3 + $0x3c0] sm:$0xff]  }
 0x83e   :  { %4227 = vmatpush3.bf16.msra.mxu0 %v4738_v60  ;;  %v4752_v60 = vld [vmem:[%s5957_s3 + $0x440] sm:$0xff]  }
 0x840   :  { %v1375_v0 = vld [vmem:[#allocation2] sm:$0xff] }
 0x841   :  { %v1395_v2 = vmul.f32 %v1393_v62, %v1375_v0  ;;  %v4740_v62 = vld [vmem:[%s5957_s3 + $0x370] sm:$0xff]  }
 0x842   :  { %v4741_v0 = vld [vmem:[%s5957_s3 + $0x330] sm:$0xff]   ;;  %4228 = vmatprep.subr.bf16.mxu0 %v4740_v62  ;;  %v4755_v62 = vld [vmem:[%s5957_s3 + $0x448] sm:$0xff]  }
 0x843   :  { %v1415_v3 = vadd.f32 %v1413_v63, %v1395_v2  ;;  %v4742_v2 = vld [vmem:[%s5957_s3 + $0x3b0] sm:$0xff]   ;;  %4229 = vmatpush3.bf16.msra.mxu0 %v4741_v0  ;;  %v4754_v0 = vld [vmem:[%s5957_s3 + $0x3c8] sm:$0xff]  }
 0x845   :  { %v1417_v4 = vmax.f32 %v1415_v3, 0.0  ;;  %v3780_v3 = vld [vmem:[%s5958_s4 + $0x4] ss:$8 sm:$0x7] }
 0x847   :  { %v1420_v5 = vcombine.high %v1417_v4, %v1417_v4  ;;  %v1422_v8 = vpack.c.bf16 %v1417_v4, %v1417_v4 }
 0x849   :  { %v1423_v6 = vpack.c.bf16 %v1420_v5, %v1420_v5  ;;  %v4743_v5 = vld [vmem:[%s5957_s3 + $0x378] sm:$0xff]  }
 0x84a   :  { %4230 = vmatprep.subr.bf16.mxu0 %v4743_v5  ;;  %v4756_v5 = vld [vmem:[%s5957_s3 + $0x410] sm:$0xff]  }
 0x84b   :  { %1650 = vmatprep.mubr.bf16.mxu1 %v1423_v6  ;;  %v1829_v6 = vrot.slane %v3780_v3, %v5000_v24  ;;  %4231 = vmatpush3.bf16.msra.mxu0 %v4744_v14  ;;  %v4757_v14 = vld [vmem:[%s5957_s3 + $0x3d0] sm:$0xff]  }
 0x84c   :  { %1651 = vmatmul.mubr.bf16.vlgmr.msra.gmra.mrb[16].mxu1 %v1422_v8  ;;  %v3781_v8 = vld [vmem:[%s5959_s5 + $0x4] ss:$8 sm:$0x7]  ;;  %4503 = vmatprep.subr.bf16.mxu0 %v4859_v1 }
 0x84d   :  { %4472 = vmatpush3.bf16.msra.mxu1 %v4718_v7  ;;  %4479 = vmatprep.mubr.msk.bf16.mxu1 %vm4860_vm0, %v4859_v1  ;;  %v1849_v12 = vrot.slane %v3781_v8, %v5000_v24 }
 0x84e   :  { %4473 = vmatprep.subr.bf16.mxu1 %v4859_v1 }
 0x851   :  { %4474 = vmatpush3.bf16.msra.mxu1 %v4719_v11 }
 0x852   :  { %4475 = vmatprep.subr.bf16.mxu1 %v4859_v1 }
 0x855   :  { %4476 = vmatpush3.bf16.msra.mxu1 %v4720_v15  ;;  %v4745_v15 = vld [vmem:[%s5957_s3 + $0x3b8] sm:$0xff]  }
 0x856   :  { %4477 = vmatprep.subr.bf16.mxu1 %v4859_v1 }
 0x859   :  { %4478 = vmatpush3.bf16.msra.mxu1 %v4721_v16 }
 0x85a   :  { %4483 = vmatprep.subr.bf16.mxu1 %v4859_v1 }
 0x91f   :  { %v4196_v17 = vpop.f32.mrb[16].mxu1 }
 0x920   :  { %v4197_v18 = vpop.f32.mrb[17].mxu1 }
 0x921   :  { %v4198_v19 = vadd.f32 %v4197_v18, %v4196_v17  ;;  %v4199_v20 = vpop.f32.mrb[18].mxu1 }
 0x922   :  { %v4200_v25 = vpop.f32.mrb[19].mxu1  ;;  %v1821_v20 = vrot.slane %v3780_v3, %v4995_v22 }
 0x923   :  { %v1693_v26 = vadd.f32 %v4198_v19, %v1692_v9  ;;  %v1814_v9 = vld [vmem:[#allocation2 + $0x8] sm:$0xf]  ;;  %v1841_v25 = vrot.slane %v3781_v8, %v4995_v22 }
 0x924   :  { %v1834_v11 = vmul.f32 %v1829_v6, %v1814_v9 }
 0x925   :  { %v1703_v28 = vmul.f32 %v3765_v21, %v1693_v26  ;;  %v1825_v21 = vrot.slane %v3780_v3, %v4998_v23  ;;  %v1845_v26 = vrot.slane %v3781_v8, %v4998_v23 }
 0x926   :  { %v1854_v16 = vadd.f32 %v1849_v12, %v1834_v11 }
 0x927   :  { %v1709_v29 = vadd.f32 %v3766_v27, %v1703_v28  ;;  %v1831_v27 = vcombine.low %v1821_v20, %v1825_v21  ;;  %v1851_v28 = vcombine.low %v1841_v25, %v1845_v26  ;;  %v4764_v20 = vld [vmem:[%s5957_s3 + $0x460] sm:$0xff]   ;;  %v4765_v21 = vld [vmem:[%s5957_s3 + $0x428] sm:$0xff]  }
 0x928   :  { %v1856_v17 = vmax.f32 %v1854_v16, 0.0  ;;  %v4760_v16 = vld [vmem:[%s5957_s3 + $0x3d8] sm:$0xff]   ;;  %v4766_v25 = vld [vmem:[%s5957_s3 + $0x3e8] sm:$0xff]  }
 0x929   :  { %v1710_v31 = vmax.f32 %v1709_v29, 0.0  ;;  %v4767_v26 = vld [vmem:[%s5957_s3 + $0x468] sm:$0xff]  }
 0x92a   :  { %v1862_v18 = vpack.c.bf16 %v1856_v17, %v1856_v17  ;;  %v4761_v17 = vld [vmem:[%s5957_s3 + $0x458] sm:$0xff]  }
 0x92b   :  { %v1711_v33 = vpack.c.bf16 %v1710_v31, %v1710_v31 }
 0x92d   :  { %4480 = vmatmul.mubr.msk.bf16.vlgmr.msra.gmra.mrb[20].mxu1 %vm413_vm2, %v1711_v33 }
 0x92e   :  { %4499 = vmatprep.mubr.msk.bf16.mxu1 %vm4860_vm0, %v4859_v1  ;;  %4484 = vmatpush3.bf16.msra.mxu1 %v4724_v36 }
 0x92f   :  { %4485 = vmatprep.subr.bf16.mxu1 %v4859_v1 }
 0x932   :  { %4486 = vmatpush3.bf16.msra.mxu1 %v4727_v38 }
 0x933   :  { %4487 = vmatprep.subr.bf16.mxu1 %v4859_v1 }
 0x936   :  { %4488 = vmatpush3.bf16.msra.mxu1 %v4730_v49 }
 0x937   :  { %4489 = vmatprep.subr.bf16.mxu1 %v4859_v1 }
 0x93a   :  { %4490 = vmatpush3.bf16.msra.mxu1 %v4733_v55 }
 0x93b   :  { %4491 = vmatprep.subr.bf16.mxu1 %v4859_v1 }
 0x93e   :  { %4492 = vmatpush3.bf16.msra.mxu1 %v4736_v58  ;;  %v4750_v58 = vld [vmem:[%s5957_s3 + $0x400] sm:$0xff]  }
 0x93f   :  { %4493 = vmatprep.subr.bf16.mxu1 %v4859_v1 }
 0x942   :  { %4494 = vmatpush3.bf16.msra.mxu1 %v4739_v61  ;;  %v4753_v61 = vld [vmem:[%s5957_s3 + $0x408] sm:$0xff]  }
 0x943   :  { %4495 = vmatprep.subr.bf16.mxu1 %v4859_v1 }
 0x946   :  { %4496 = vmatpush3.bf16.msra.mxu1 %v4742_v2 }
 0x947   :  { %4497 = vmatprep.subr.bf16.mxu1 %v4859_v1 }
 0x94a   :  { %4498 = vmatpush3.bf16.msra.mxu1 %v4745_v15  ;;  %v4759_v15 = vld [vmem:[%s5957_s3 + $0x418] sm:$0xff]  }
 0x94b   :  { %4252 = vmatprep.subr.bf16.mxu1 %v4750_v58 }
 0x94d   :  { %4500 = vmatmul.mubr.bf16.vlgmr.msra.gmra.mrb[24].mxu1 %v1862_v18  ;;  %v4762_v18 = vld [vmem:[%s5957_s3 + $0x420] sm:$0xff]  }
 0x94e   :  { %4253 = vmatpush3.bf16.msra.mxu1 %v4751_v59 }
 0x94f   :  { %4254 = vmatprep.subr.bf16.mxu1 %v4753_v61  ;;  %v4774_v61 = vld [vmem:[%s5960_s6 + $0xa0] sm:$0xff]  }
 0x952   :  { %4255 = vmatpush3.bf16.msra.mxu1 %v4754_v0 }
 0x953   :  { %4256 = vmatprep.subr.bf16.mxu1 %v4756_v5  ;;  %v4776_v5 = vld [vmem:[%s5960_s6 + $0xb0] sm:$0xff]  }
 0x956   :  { %4257 = vmatpush3.bf16.msra.mxu1 %v4757_v14 }
 0x957   :  { %4258 = vmatprep.subr.bf16.mxu1 %v4759_v15  ;;  %v3944_v15 = vld [vmem:[%s5962_s8 + $0x5] ss:$0 sm:$0xff] }
 0x95a   :  { %4259 = vmatpush3.bf16.msra.mxu1 %v4760_v16 }
 0x95b   :  { %4260 = vmatprep.subr.bf16.mxu1 %v4762_v18 }
 0xa00   :  { %v1782_v39 = vpop.f32.mrb[20].mxu1 }
 0xa01   :  { %v1789_v41 = vrot.slane %v1782_v39, 7  ;;  %v1793_v42 = vrot.slane %v1782_v39, 1  ;;  %v4481_v43 = vpop.f32.mrb[21].mxu1 }
 0xa02   :  { %v1785_v45 = vpop.f32.mrb[22].mxu1 }
 0xa03   :  { %v4482_v46 = vpop.f32.mrb[23].mxu1  ;;  %v1795_v47 = vsel %vm470_vm4, %v1793_v42, 0.0  ;;  %v1791_v48 = vsel %vm460_vm3, 0.0, %v1789_v41  ;;  %v4747_v41 = vld [vmem:[%s5960_s6 + $0x88] sm:$0xff]   ;;  %v4749_v45 = vld [vmem:[%s5960_s6 + $0x98] sm:$0xff]  }
 0xa04   :  { %v1796_v50 = vmul.f32 %v1795_v47, %v5094_v32  ;;  %v1792_v51 = vmul.f32 %v1791_v48, %v5068_v13 }
 0xa06   :  { %1803 = vrot.lane.b32.xlu0 %v1796_v50, %s4863_s27  ;;  %1798 = vrot.lane.b32.xlu1 %v1792_v51, %s4862_s23  ;;  %v3854_v50 = vld [vmem:[%s5961_s7 + $0x4] ss:$0 sm:$0xff] }
 0xa78   :  { %v1799_v63 = vpop.permute.xlu1 %1798  ;;  %v1804_v7 = vpop.permute.xlu0 %1803 }
 0xa79   :  { %v1801_v4 = vadd.f32 %v1799_v63, %v1782_v39  ;;  %v2130_v39 = vpop.f32.mrb[24].mxu1 }
 0xa7a   :  { %v4501_v40 = vpop.f32.mrb[25].mxu1 }
 0xa7b   :  { %v1806_v10 = vadd.f32 %v1804_v7, %v1801_v4  ;;  %v2133_v42 = vpop.f32.mrb[26].mxu1 }
 0xa7c   :  { %v4502_v43 = vpop.f32.mrb[27].mxu1 }
 0xa7d   :  { %1808 = vrot.lane.b32.xlu1 %v1806_v10, %s4867_s14  ;;  %v4758_v10 = vld [vmem:[%s5957_s3 + $0x450] sm:$0xff]   ;;  %v4772_v43 = vld [vmem:[%s5957_s3 + $0x3f8] sm:$0xff]  }
 0xaef   :  { %v1809_v19 = vpop.permute.xlu1 %1808 }
 0xaf0   :  { %1812 = vst.msk [vmem:[#allocation2 + $0x4] sm:$0xf] %vm1811_vm11, %v1809_v19  ;;  %v4763_v19 = vld [vmem:[%s5957_s3 + $0x3e0] sm:$0xff]  }
 0xaf1   :  { %4261 = vmatpush3.bf16.msra.mxu1 %v4763_v19 }
 0xaf2   :  { %4262 = vmatprep.subr.bf16.mxu1 %v4765_v21  ;;  %v4779_v21 = vld [vmem:[%s5957_s3 + $0x4c0] sm:$0xff]  }
 0xaf5   :  { %4263 = vmatpush3.bf16.msra.mxu1 %v4766_v25  ;;  %v4780_v25 = vld [vmem:[%s5957_s3 + $0x480] sm:$0xff]  }
 0xaf7   :  { %v1813_v29 = vld [vmem:[#allocation2] sm:$0xff] }
 0xaf8   :  { %v1833_v31 = vmul.f32 %v1831_v27, %v1813_v29  ;;  %v4768_v27 = vld [vmem:[%s5957_s3 + $0x430] sm:$0xff]  }
 0xaf9   :  { %v4769_v29 = vld [vmem:[%s5957_s3 + $0x3f0] sm:$0xff]   ;;  %4264 = vmatprep.subr.bf16.mxu1 %v4768_v27  ;;  %v4781_v27 = vld [vmem:[%s5957_s3 + $0x508] sm:$0xff]  }
 0xafa   :  { %v1853_v33 = vadd.f32 %v1851_v28, %v1833_v31  ;;  %v4770_v31 = vld [vmem:[%s5957_s3 + $0x470] sm:$0xff]   ;;  %4265 = vmatpush3.bf16.msra.mxu1 %v4769_v29  ;;  %v4783_v29 = vld [vmem:[%s5957_s3 + $0x488] sm:$0xff]  }
 0xafc   :  { %v1855_v34 = vmax.f32 %v1853_v33, 0.0  ;;  %v3869_v33 = vld [vmem:[%s5958_s4 + $0x5] ss:$8 sm:$0x7] }
 0xafe   :  { %v1858_v35 = vcombine.high %v1855_v34, %v1855_v34  ;;  %v1860_v38 = vpack.c.bf16 %v1855_v34, %v1855_v34 }
 0xb00   :  { %v1861_v36 = vpack.c.bf16 %v1858_v35, %v1858_v35  ;;  %v4771_v35 = vld [vmem:[%s5957_s3 + $0x438] sm:$0xff]  }
 0xb01   :  { %4266 = vmatprep.subr.bf16.mxu1 %v4771_v35  ;;  %v4785_v35 = vld [vmem:[%s5957_s3 + $0x4d0] sm:$0xff]  }
 0xb02   :  { %2088 = vmatprep.mubr.bf16.mxu0 %v1861_v36  ;;  %v2266_v36 = vrot.slane %v3869_v33, %v5000_v24  ;;  %4267 = vmatpush3.bf16.msra.mxu1 %v4772_v43  ;;  %v4786_v43 = vld [vmem:[%s5957_s3 + $0x490] sm:$0xff]  }
 0xb03   :  { %2089 = vmatmul.mubr.bf16.vlgmr.msra.gmra.mrb[24].mxu0 %v1860_v38  ;;  %v3870_v38 = vld [vmem:[%s5959_s5 + $0x5] ss:$8 sm:$0x7]  ;;  %4535 = vmatprep.subr.bf16.mxu1 %v4859_v1 }
 0xb04   :  { %4504 = vmatpush3.bf16.msra.mxu0 %v4746_v37  ;;  %4511 = vmatprep.mubr.msk.bf16.mxu0 %vm4860_vm0, %v4859_v1  ;;  %v2286_v42 = vrot.slane %v3870_v38, %v5000_v24 }
 0xb05   :  { %4505 = vmatprep.subr.bf16.mxu0 %v4859_v1 }
 0xb08   :  { %4506 = vmatpush3.bf16.msra.mxu0 %v4747_v41 }
 0xb09   :  { %4507 = vmatprep.subr.bf16.mxu0 %v4859_v1 }
 0xb0c   :  { %4508 = vmatpush3.bf16.msra.mxu0 %v4748_v44  ;;  %v4773_v44 = vld [vmem:[%s5957_s3 + $0x478] sm:$0xff]  }
 0xb0d   :  { %4509 = vmatprep.subr.bf16.mxu0 %v4859_v1 }
 0xb10   :  { %4510 = vmatpush3.bf16.msra.mxu0 %v4749_v45 }
 0xb11   :  { %4515 = vmatprep.subr.bf16.mxu0 %v4859_v1 }
 0xbd6   :  { %v4232_v46 = vpop.f32.mrb[24].mxu0 }
 0xbd7   :  { %v4233_v47 = vpop.f32.mrb[25].mxu0 }
 0xbd8   :  { %v4234_v48 = vadd.f32 %v4233_v47, %v4232_v46  ;;  %v4235_v49 = vpop.f32.mrb[26].mxu0 }
 0xbd9   :  { %v4236_v51 = vpop.f32.mrb[27].mxu0  ;;  %v2258_v49 = vrot.slane %v3869_v33, %v4995_v22 }
 0xbda   :  { %v2131_v52 = vadd.f32 %v4234_v48, %v2130_v39  ;;  %v2251_v39 = vld [vmem:[#allocation2 + $0x8] sm:$0xf]  ;;  %v2278_v51 = vrot.slane %v3870_v38, %v4995_v22 }
 0xbdb   :  { %v2271_v41 = vmul.f32 %v2266_v36, %v2251_v39 }
 0xbdc   :  { %v2141_v54 = vmul.f32 %v3854_v50, %v2131_v52  ;;  %v2262_v50 = vrot.slane %v3869_v33, %v4998_v23  ;;  %v2282_v52 = vrot.slane %v3870_v38, %v4998_v23 }
 0xbdd   :  { %v2291_v45 = vadd.f32 %v2286_v42, %v2271_v41 }
 0xbde   :  { %v2147_v55 = vadd.f32 %v3855_v53, %v2141_v54  ;;  %v2268_v53 = vcombine.low %v2258_v49, %v2262_v50  ;;  %v2288_v54 = vcombine.low %v2278_v51, %v2282_v52  ;;  %v4792_v49 = vld [vmem:[%s5957_s3 + $0x4a0] sm:$0xff]   ;;  %v4793_v50 = vld [vmem:[%s5957_s3 + $0x528] sm:$0xff]  }
 0xbdf   :  { %v2293_v46 = vmax.f32 %v2291_v45, 0.0  ;;  %v4788_v45 = vld [vmem:[%s5957_s3 + $0x4d8] sm:$0xff]   ;;  %v4794_v51 = vld [vmem:[%s5957_s3 + $0x4e8] sm:$0xff]  }
 0xbe0   :  { %v2148_v56 = vmax.f32 %v2147_v55, 0.0  ;;  %v4795_v52 = vld [vmem:[%s5957_s3 + $0x4a8] sm:$0xff]  }
 0xbe1   :  { %v2299_v47 = vpack.c.bf16 %v2293_v46, %v2293_v46  ;;  %v4789_v46 = vld [vmem:[%s5957_s3 + $0x498] sm:$0xff]  }
 0xbe2   :  { %v2149_v57 = vpack.c.bf16 %v2148_v56, %v2148_v56 }
 0xbe4   :  { %4512 = vmatmul.mubr.msk.bf16.vlgmr.msra.gmra.mrb[28].mxu0 %vm413_vm2, %v2149_v57 }
 0xbe5   :  { %4531 = vmatprep.mubr.msk.bf16.mxu0 %vm4860_vm0, %v4859_v1  ;;  %4516 = vmatpush3.bf16.msra.mxu0 %v4752_v60 }
 0xbe6   :  { %4517 = vmatprep.subr.bf16.mxu0 %v4859_v1 }
 0xbe9   :  { %4518 = vmatpush3.bf16.msra.mxu0 %v4755_v62 }
 0xbea   :  { %4519 = vmatprep.subr.bf16.mxu0 %v4859_v1 }
 0xbed   :  { %4520 = vmatpush3.bf16.msra.mxu0 %v4758_v10 }
 0xbee   :  { %4521 = vmatprep.subr.bf16.mxu0 %v4859_v1 }
 0xbf1   :  { %4522 = vmatpush3.bf16.msra.mxu0 %v4761_v17 }
 0xbf2   :  { %4523 = vmatprep.subr.bf16.mxu0 %v4859_v1 }
 0xbf5   :  { %4524 = vmatpush3.bf16.msra.mxu0 %v4764_v20  ;;  %v4778_v20 = vld [vmem:[%s5957_s3 + $0x500] sm:$0xff]  }
 0xbf6   :  { %4525 = vmatprep.subr.bf16.mxu0 %v4859_v1 }
 0xbf9   :  { %4526 = vmatpush3.bf16.msra.mxu0 %v4767_v26  ;;  %v4782_v26 = vld [vmem:[%s5957_s3 + $0x4c8] sm:$0xff]  }
 0xbfa   :  { %4527 = vmatprep.subr.bf16.mxu0 %v4859_v1 }
 0xbfd   :  { %4528 = vmatpush3.bf16.msra.mxu0 %v4770_v31 }
 0xbfe   :  { %4529 = vmatprep.subr.bf16.mxu0 %v4859_v1 }
 0xc01   :  { %4530 = vmatpush3.bf16.msra.mxu0 %v4773_v44  ;;  %v4787_v44 = vld [vmem:[%s5957_s3 + $0x518] sm:$0xff]  }
 0xc02   :  { %4288 = vmatprep.subr.bf16.mxu0 %v4779_v21 }
 0xc04   :  { %4532 = vmatmul.mubr.bf16.vlgmr.msra.gmra.mrb[32].mxu0 %v2299_v47  ;;  %v4790_v47 = vld [vmem:[%s5957_s3 + $0x520] sm:$0xff]  }
 0xc05   :  { %4289 = vmatpush3.bf16.msra.mxu0 %v4780_v25 }
 0xc06   :  { %4290 = vmatprep.subr.bf16.mxu0 %v4782_v26 }
 0xc09   :  { %4291 = vmatpush3.bf16.msra.mxu0 %v4783_v29 }
 0xc0a   :  { %4292 = vmatprep.subr.bf16.mxu0 %v4785_v35 }
 0xc0d   :  { %4293 = vmatpush3.bf16.msra.mxu0 %v4786_v43 }
 0xc0e   :  { %4294 = vmatprep.subr.bf16.mxu0 %v4788_v45 }
 0xc11   :  { %4295 = vmatpush3.bf16.msra.mxu0 %v4789_v46 }
 0xcb7   :  { %v2220_v63 = vpop.f32.mrb[28].mxu0 }
 0xcb8   :  { %v2227_v2 = vrot.slane %v2220_v63, 7  ;;  %v2231_v3 = vrot.slane %v2220_v63, 1  ;;  %v4513_v4 = vpop.f32.mrb[29].mxu0 }
 0xcb9   :  { %v2223_v6 = vpop.f32.mrb[30].mxu0 }
 0xcba   :  { %v4514_v7 = vpop.f32.mrb[31].mxu0  ;;  %v2233_v8 = vsel %vm470_vm4, %v2231_v3, 0.0  ;;  %v2229_v9 = vsel %vm460_vm3, 0.0, %v2227_v2  ;;  %v4775_v2 = vld [vmem:[%s5960_s6 + $0xa8] sm:$0xff]   ;;  %v4777_v6 = vld [vmem:[%s5960_s6 + $0xb8] sm:$0xff]  }
 0xcbb   :  { %v2234_v11 = vmul.f32 %v2233_v8, %v5094_v32  ;;  %v2230_v12 = vmul.f32 %v2229_v9, %v5068_v13 }
 0xcbd   :  { %2241 = vrot.lane.b32.xlu1 %v2234_v11, %s4863_s27  ;;  %2236 = vrot.lane.b32.xlu0 %v2230_v12, %s4862_s23  ;;  %v3943_v11 = vld [vmem:[%s5961_s7 + $0x5] ss:$0 sm:$0xff] }
 0xd2f   :  { %v2237_v28 = vpop.permute.xlu0 %2236  ;;  %v2242_v37 = vpop.permute.xlu1 %2241 }
 0xd30   :  { %v2239_v34 = vadd.f32 %v2237_v28, %v2220_v63  ;;  %v2567_v63 = vpop.f32.mrb[32].mxu0 }
 0xd31   :  { %v4533_v0 = vpop.f32.mrb[33].mxu0 }
 0xd32   :  { %v2244_v40 = vadd.f32 %v2242_v37, %v2239_v34  ;;  %v2570_v3 = vpop.f32.mrb[34].mxu0 }
 0xd33   :  { %v4534_v4 = vpop.f32.mrb[35].mxu0  ;;  %v3958_v3 = vld [vmem:[%s5958_s4 + $0x6] ss:$8 sm:$0x7] }
 0xd34   :  { %2246 = vrot.lane.b32.xlu0 %v2244_v40, %s4864_s19  ;;  %v4784_v40 = vld [vmem:[%s5957_s3 + $0x510] sm:$0xff]   ;;  %s3474_s19 = sshll.u32 %s4868_s30, 4  ;;  %s3475_s19 = int_to_ptr.vmem [resolvable:$true] %s3474_s19 }
 0xd35   :  { %p4840_p1 = scmp.lt.s32.totalorder %s3475_s19, %s3475_s19 }
 0xda6   :  { %v2247_v48 = vpop.permute.xlu0 %2246 }
 0xda7   :  { %2249 = vst.msk [vmem:[#allocation2 + $0x4] sm:$0xf] %vm492_vm5, %v2247_v48  ;;  %v4791_v48 = vld [vmem:[%s5957_s3 + $0x4e0] sm:$0xff]  }
 0xda8   :  { %4296 = vmatprep.subr.bf16.mxu0 %v4791_v48 }
 0xda9   :  { %4297 = vmatpush3.bf16.msra.mxu0 %v4792_v49  ;;  %v4807_v49 = vld [vmem:[%s5963_s9 + $0x10] sm:$0xff]  }
 0xdaa   :  { %4298 = vmatprep.subr.bf16.mxu0 %v4794_v51 }
 0xdad   :  { %4299 = vmatpush3.bf16.msra.mxu0 %v4795_v52  ;;  %v4809_v52 = vld [vmem:[%s5963_s9 + $0x58] sm:$0xff]  }
 0xdae   :  { %v2250_v55 = vld [vmem:[#allocation2] sm:$0xff] }
 0xdaf   :  { %v2270_v56 = vmul.f32 %v2268_v53, %v2250_v55  ;;  %v4796_v53 = vld [vmem:[%s5957_s3 + $0x530] sm:$0xff]  }
 0xdb0   :  { %v4797_v55 = vld [vmem:[%s5957_s3 + $0x4f0] sm:$0xff]  }
 0xdb1   :  { %v2290_v57 = vadd.f32 %v2288_v54, %v2270_v56  ;;  %4300 = vmatprep.subr.bf16.mxu0 %v4797_v55 }
 0xdb3   :  { %v2292_v58 = vmax.f32 %v2290_v57, 0.0 }
 0xdb5   :  { %v2295_v59 = vcombine.high %v2292_v58, %v2292_v58  ;;  %v2297_v62 = vpack.c.bf16 %v2292_v58, %v2292_v58 }
 0xdb7   :  { %v2298_v60 = vpack.c.bf16 %v2295_v59, %v2295_v59  ;;  %v4798_v59 = vld [vmem:[%s5957_s3 + $0x4b0] sm:$0xff]  }
 0xdb8   :  { %4301 = vmatpush3.bf16.msra.mxu0 %v4798_v59 }
 0xdb9   :  { %2525 = vmatprep.mubr.bf16.mxu1 %v2298_v60  ;;  %v4799_v60 = vld [vmem:[%s5957_s3 + $0x538] sm:$0xff]  }
 0xdba   :  { %2526 = vmatmul.mubr.bf16.vlgmr.msra.gmra.mrb[28].mxu1 %v2297_v62  ;;  %v4801_v62 = vld [vmem:[%s5963_s9 + $0x40] sm:$0xff]  }
 0xdbb   :  { %4536 = vmatpush3.bf16.msra.mxu1 %v4774_v61  ;;  %4543 = vmatprep.mubr.msk.bf16.mxu1 %vm4860_vm0, %v4859_v1  ;;  %v4800_v61 = vld [vmem:[%s5957_s3 + $0x4f8] sm:$0xff]  }
 0xdbc   :  { %4537 = vmatprep.subr.bf16.mxu1 %v4859_v1  ;;  %4302 = vmatprep.subr.bf16.mxu0 %v4800_v61  ;;  %v4812_v61 = vld [vmem:[%s5963_s9 + $0x20] sm:$0xff]  }
 0xdbf   :  { %4538 = vmatpush3.bf16.msra.mxu1 %v4775_v2 }
 0xdc0   :  { %4539 = vmatprep.subr.bf16.mxu1 %v4859_v1 }
 0xdc3   :  { %4540 = vmatpush3.bf16.msra.mxu1 %v4776_v5  ;;  %v3959_v5 = vld [vmem:[%s5959_s5 + $0x6] ss:$8 sm:$0x7] }
 0xdc4   :  { %4541 = vmatprep.subr.bf16.mxu1 %v4859_v1 }
 0xdc7   :  { %4542 = vmatpush3.bf16.msra.mxu1 %v4777_v6  ;;  %v2697_v6 = vrot.slane %v3958_v3, %v4995_v22 }
 0xdc8   :  { %4547 = vmatprep.subr.bf16.mxu1 %v4859_v1 }
 0xe8d   :  { %v4268_v7 = vpop.f32.mrb[28].mxu1 }
 0xe8e   :  { %v4269_v8 = vpop.f32.mrb[29].mxu1 }
 0xe8f   :  { %v4270_v9 = vadd.f32 %v4269_v8, %v4268_v7  ;;  %v4271_v10 = vpop.f32.mrb[30].mxu1  ;;  %v2701_v7 = vrot.slane %v3958_v3, %v4998_v23  ;;  %v2717_v8 = vrot.slane %v3959_v5, %v4995_v22 }
 0xe90   :  { %v4272_v12 = vpop.f32.mrb[31].mxu1  ;;  %v2705_v10 = vrot.slane %v3958_v3, %v5000_v24  ;;  %v4815_v3 = vld [vmem:[%s5963_s9 + $0x70] sm:$0xff]  }
 0xe91   :  { %v2568_v14 = vadd.f32 %v4270_v9, %v2567_v63  ;;  %v4802_v63 = vld [vmem:[%s5957_s3 + $0x4b8] sm:$0xff]   ;;  %v2721_v9 = vrot.slane %v3959_v5, %v4998_v23  ;;  %v2725_v12 = vrot.slane %v3959_v5, %v5000_v24  ;;  %v4803_v24 = vld [vmem:[%s5963_s9] sm:$0xff]  }
 0xe92   :  { %4303 = vmatpush3.bf16.msra.mxu0 %v4802_v63 }
 0xe93   :  { %v2578_v16 = vmul.f32 %v3943_v11, %v2568_v14  ;;  %4567 = vmatprep.subr.bf16.mxu0 %v4859_v1  ;;  %v2707_v11 = vcombine.low %v2697_v6, %v2701_v7  ;;  %v2727_v14 = vcombine.low %v2717_v8, %v2721_v9  ;;  %v4816_v6 = vld [vmem:[%s5963_s9 + $0x30] sm:$0xff]   ;;  %v4817_v7 = vld [vmem:[%s5963_s9 + $0x78] sm:$0xff]  }
 0xe95   :  { %v2584_v17 = vadd.f32 %v3944_v15, %v2578_v16 }
 0xe97   :  { %v2585_v18 = vmax.f32 %v2584_v17, 0.0 }
 0xe99   :  { %v2586_v19 = vpack.c.bf16 %v2585_v18, %v2585_v18 }
 0xe9b   :  { %4544 = vmatmul.mubr.msk.bf16.vlgmr.msra.gmra.mrb[32].mxu1 %vm413_vm2, %v2586_v19 }
 0xe9c   :  { %4563 = vmatprep.mubr.msk.bf16.mxu1 %vm4860_vm0, %v4859_v1  ;;  %4548 = vmatpush3.bf16.msra.mxu1 %v4778_v20 }
 0xe9d   :  { %4549 = vmatprep.subr.bf16.mxu1 %v4859_v1 }
 0xea0   :  { %4550 = vmatpush3.bf16.msra.mxu1 %v4781_v27 }
 0xea1   :  { %4551 = vmatprep.subr.bf16.mxu1 %v4859_v1 }
 0xea4   :  { %4552 = vmatpush3.bf16.msra.mxu1 %v4784_v40 }
 0xea5   :  { %4553 = vmatprep.subr.bf16.mxu1 %v4859_v1 }
 0xea8   :  { %4554 = vmatpush3.bf16.msra.mxu1 %v4787_v44  ;;  %v4806_v44 = vld [vmem:[%s5963_s9 + $0x50] sm:$0xff]  }
 0xea9   :  { %4555 = vmatprep.subr.bf16.mxu1 %v4859_v1 }
 0xeac   :  { %4556 = vmatpush3.bf16.msra.mxu1 %v4790_v47 }
 0xead   :  { %4557 = vmatprep.subr.bf16.mxu1 %v4859_v1 }
 0xeb0   :  { %4558 = vmatpush3.bf16.msra.mxu1 %v4793_v50 }
 0xeb1   :  { %4559 = vmatprep.subr.bf16.mxu1 %v4859_v1 }
 0xeb4   :  { %4560 = vmatpush3.bf16.msra.mxu1 %v4796_v53 }
 0xeb5   :  { %4561 = vmatprep.subr.bf16.mxu1 %v4859_v1 }
 0xeb8   :  { %4562 = vmatpush3.bf16.msra.mxu1 %v4799_v60 }
 0xeb9   :  { %4324 = vmatprep.subr.bf16.mxu1 %v4801_v62  ;;  %v4813_v62 = vld [vmem:[%s5963_s9 + $0x68] sm:$0xff]  }
 0xf6e   :  { %v2657_v28 = vpop.f32.mrb[32].mxu1 }
 0xf6f   :  { %v2664_v31 = vrot.slane %v2657_v28, 7  ;;  %v2668_v33 = vrot.slane %v2657_v28, 1  ;;  %v4545_v34 = vpop.f32.mrb[33].mxu1 }
 0xf70   :  { %v2660_v36 = vpop.f32.mrb[34].mxu1  ;;  %v4804_v34 = vld [vmem:[%s5963_s9 + $0x48] sm:$0xff]  }
 0xf71   :  { %v4546_v37 = vpop.f32.mrb[35].mxu1  ;;  %v2670_v38 = vsel %vm470_vm4, %v2668_v33, 0.0  ;;  %v2666_v39 = vsel %vm460_vm3, 0.0, %v2664_v31 }
 0xf72   :  { %v2671_v41 = vmul.f32 %v2670_v38, %v5094_v32  ;;  %v2667_v42 = vmul.f32 %v2666_v39, %v5068_v13 }
 0xf74   :  { %2678 = vrot.lane.b32.xlu0 %v2671_v41, %s4863_s27  ;;  %2673 = vrot.lane.b32.xlu1 %v2667_v42, %s4862_s23  ;;  %v4805_v41 = vld [vmem:[%s5963_s9 + $0x8] sm:$0xff]  }
 0xfe6   :  { %v2674_v54 = vpop.permute.xlu1 %2673  ;;  %v2679_v57 = vpop.permute.xlu0 %2678 }
 0xfe7   :  { %v2676_v56 = vadd.f32 %v2674_v54, %v2657_v28 }
 0xfe9   :  { %v2681_v58 = vadd.f32 %v2679_v57, %v2676_v56  ;;  %v4810_v57 = vld [vmem:[%s5963_s9 + $0x18] sm:$0xff]  }
 0xfeb   :  { %2683 = vrot.lane.b32.xlu1 %v2681_v58, %s4865_s21  ;;  %v4811_v58 = vld [vmem:[%s5963_s9 + $0x60] sm:$0xff]  }
0x105d   :  { %v2684_v0 = vpop.permute.xlu1 %2683 }
0x105e   :  { %v2685_v2 = vrot.slane %v2684_v0, 4 }
0x1060   :  { %v2686_v4 = vsel %vm930_vm8, %v2685_v2, %v2684_v0  ;;  %v4814_v2 = vld [vmem:[%s5963_s9 + $0x28] sm:$0xff]  }
0x1061   :  { %2688 = vst.msk [vmem:[#allocation2 + $0x4] sm:$0xff] %vm5294_vm9, %v2686_v4 }
0x1068   :  { %v2690_v15 = vld [vmem:[#allocation2 + $0x8] sm:$0xf]  ;;  %v2689_v16 = vld [vmem:[#allocation2] sm:$0xff] }
0x1069   :  { %v2710_v17 = vmul.f32 %v2705_v10, %v2690_v15  ;;  %v2709_v18 = vmul.f32 %v2707_v11, %v2689_v16  ;;  %v3129_v30 = vcombine.high %v2689_v16, %v2689_v16  ;;  %v3132_v38 = vsel %vm3131_vm12, %v2689_v16, -inf  ;;  %v4818_v10 = vld [vmem:[%s5963_s9 + $0x38] sm:$0xff]   ;;  %v4820_v15 = vld [vmem:[%s5960_s6 + $0xc8] sm:$0xff]  }
0x106a   :  { %v3154_v39 = vsel %vm3153_vm13, %v2689_v16, -inf  ;;  %v3133_v47 = vrot.slane %v3132_v38, 4  ;;  %v4821_v16 = vld [vmem:[%s5960_s6 + $0xd0] sm:$0xff]  }
0x106b   :  { %v2730_v19 = vadd.f32 %v2725_v12, %v2710_v17  ;;  %v2729_v20 = vadd.f32 %v2727_v14, %v2709_v18  ;;  %v3139_v21 = vsel %vm3131_vm12, %v3129_v30, -inf  ;;  %v3161_v22 = vsel %vm3153_vm13, %v3129_v30, -inf  ;;  %v4819_v14 = vld [vmem:[%s5960_s6 + $0xc0] sm:$0xff]   ;;  %v4822_v17 = vld [vmem:[%s5960_s6 + $0xd8] sm:$0xff]  }
0x106c   :  { %v3140_v23 = vrot.slane %v3139_v21, 4  ;;  %v3162_v25 = vrot.slane %v3161_v22, 4  ;;  %v3155_v48 = vrot.slane %v3154_v39, 4  ;;  %v3134_v54 = vmax.f32 %v3132_v38, %v3133_v47 }
0x106d   :  { %v2732_v26 = vmax.f32 %v2730_v19, 0.0  ;;  %v2731_v27 = vmax.f32 %v2729_v20, 0.0 }
0x106e   :  { %v3141_v28 = vmax.f32 %v3139_v21, %v3140_v23  ;;  %v3163_v29 = vmax.f32 %v3161_v22, %v3162_v25  ;;  %v3156_v55 = vmax.f32 %v3154_v39, %v3155_v48  ;;  %v3135_v59 = vrot.slane %v3134_v54, 2 }
0x106f   :  { %v2738_v31 = vpack.c.bf16 %v2732_v26, %v2732_v26  ;;  %v2734_v33 = vcombine.high %v2731_v27, %v2731_v27  ;;  %v2736_v40 = vpack.c.bf16 %v2731_v27, %v2731_v27  ;;  %v4032_v26 = vld [vmem:[%s5961_s7 + $0x6] ss:$0 sm:$0xff] }
0x1070   :  { %v3142_v35 = vrot.slane %v3141_v28, 2  ;;  %v3164_v36 = vrot.slane %v3163_v29, 2  ;;  %v3157_v60 = vrot.slane %v3156_v55, 2  ;;  %v3136_v63 = vmax.f32 %v3134_v54, %v3135_v59  ;;  %v4830_v59 = vld [vmem:[%s5963_s9 + $0xb8] sm:$0xff]  }
0x1071   :  { %4564 = vmatmul.mubr.bf16.vlgmr.msra.gmra.mrb[36].mxu1 %v2738_v31  ;;  %v2737_v37 = vpack.c.bf16 %v2734_v33, %v2734_v33 }
0x1072   :  { %4325 = vmatpush3.bf16.msra.mxu1 %v4803_v24  ;;  %v3143_v42 = vmax.f32 %v3141_v28, %v3142_v35  ;;  %v3165_v43 = vmax.f32 %v3163_v29, %v3164_v36  ;;  %v3158_v0 = vmax.f32 %v3156_v55, %v3157_v60  ;;  %v3137_v4 = vrot.slane %v3136_v63, 1  ;;  %v4033_v28 = vld [vmem:[%s5962_s8 + $0x6] ss:$0 sm:$0xff] }
0x1073   :  { %2964 = vmatprep.mubr.bf16.mxu0 %v2737_v37  ;;  %4326 = vmatprep.subr.bf16.mxu1 %v4804_v34 }
0x1074   :  { %2965 = vmatmul.mubr.bf16.vlgmr.msra.gmra.mrb[36].mxu0 %v2736_v40  ;;  %v3144_v45 = vrot.slane %v3143_v42, 1  ;;  %v3166_v46 = vrot.slane %v3165_v43, 1  ;;  %v3159_v5 = vrot.slane %v3158_v0, 1  ;;  %v3138_v8 = vmax.f32 %v3136_v63, %v3137_v4  ;;  %v4823_v40 = vld [vmem:[%s5963_s9 + $0x80] sm:$0xff]  }
0x1075   :  { %4575 = vmatprep.mubr.msk.bf16.mxu0 %vm4860_vm0, %v4859_v1  ;;  %4568 = vmatpush3.bf16.msra.mxu0 %v4819_v14 }
0x1076   :  { %4327 = vmatpush3.bf16.msra.mxu1 %v4805_v41  ;;  %v3145_v50 = vmax.f32 %v3143_v42, %v3144_v45  ;;  %v3167_v51 = vmax.f32 %v3165_v43, %v3166_v46  ;;  %v3160_v9 = vmax.f32 %v3158_v0, %v3159_v5  ;;  %4569 = vmatprep.subr.bf16.mxu0 %v4859_v1  ;;  %v4824_v41 = vld [vmem:[%s5963_s9 + $0x88] sm:$0xff]  }
0x1077   :  { %4328 = vmatprep.subr.bf16.mxu1 %v4806_v44 }
0x1078   :  { %v3176_v53 = vsel %vm460_vm3, %v3145_v50, %v3167_v51  ;;  %v3175_v11 = vsel %vm460_vm3, %v3138_v8, %v3160_v9 }
0x1079   :  { %v3179_v56 = vpack.c.bf16 %v3176_v53, %v3176_v53  ;;  %v3178_v12 = vpack.c.bf16 %v3175_v11, %v3175_v11  ;;  %4570 = vmatpush3.bf16.msra.mxu0 %v4820_v15  ;;  %v4826_v53 = vld [vmem:[%s5963_s9 + $0x98] sm:$0xff]   ;;  %v4047_v15 = vld [vmem:[%s5964_s10] ss:$0 sm:$0xff]  ;;  %s4835_s10 = scalar_lea.vmem %s3475_s19, 32 }
0x107a   :  { %4329 = vmatpush3.bf16.msra.mxu1 %v4807_v49  ;;  %4571 = vmatprep.subr.bf16.mxu0 %v4859_v1  ;;  %p4836_p0 = scmp.ne.s32.totalorder %s3475_s19, %s4835_s10  ;;  %p4841_p2 = scmp.lt.s32.totalorder %s4835_s10, %s4835_s10 }
0x107b   :  { %3412 = vmatprep.mubr.bf16.mxu1 %v3179_v56  ;;  %4330 = vmatprep.subr.bf16.mxu1 %v4809_v52  ;;  %v4825_v52 = vld [vmem:[%s5963_s9 + $0x90] sm:$0xff]   ;;  %v4828_v56 = vld [vmem:[%s5963_s9 + $0xa8] sm:$0xff]  }
0x107c   :  { %p4842_p3 = por %p4841_p2, %p4840_p1 }
0x107d   :  { %4572 = vmatpush3.bf16.msra.mxu0 %v4821_v16 }
0x107e   :  { %4331 = vmatpush3.bf16.msra.mxu1 %v4810_v57  ;;  %4573 = vmatprep.subr.bf16.mxu0 %v4859_v1  ;;  %p4843_p4 = pnand %p4842_p3, %p4836_p0 }
0x107f   :  { %4332 = vmatprep.subr.bf16.mxu1 %v4811_v58  ;;  %v4829_v58 = vld [vmem:[%s5963_s9 + $0xb0] sm:$0xff]  }
0x1081   :  { %4574 = vmatpush3.bf16.msra.mxu0 %v4822_v17 }
0x1082   :  { %4333 = vmatpush3.bf16.msra.mxu1 %v4812_v61  ;;  %4579 = vmatprep.subr.bf16.mxu0 %v4859_v1 }
0x1083   :  { %4334 = vmatprep.subr.bf16.mxu1 %v4813_v62 }
0x1086   :  { %4335 = vmatpush3.bf16.msra.mxu1 %v4814_v2 }
0x1087   :  { %4336 = vmatprep.subr.bf16.mxu1 %v4815_v3 }
0x108a   :  { %4337 = vmatpush3.bf16.msra.mxu1 %v4816_v6 }
0x108b   :  { %4338 = vmatprep.subr.bf16.mxu1 %v4817_v7 }
0x108e   :  { %4339 = vmatpush3.bf16.msra.mxu1 %v4818_v10 }
0x1091   :  { %3413 = vmatmul.mubr.bf16.vlgmr.msra.gmra.mrb[40].mxu1 %v3178_v12 }
0x1144   :  { %v3006_v18 = vpop.f32.mrb[36].mxu1 }
0x1145   :  { %v4565_v30 = vpop.f32.mrb[37].mxu1 }
0x1146   :  { %v3009_v19 = vpop.f32.mrb[38].mxu1 }
0x1147   :  { %v4304_v20 = vpop.f32.mrb[36].mxu0  ;;  %v4566_v21 = vpop.f32.mrb[39].mxu1 }
0x1148   :  { %v4305_v22 = vpop.f32.mrb[37].mxu0 }
0x1149   :  { %v4306_v23 = vadd.f32 %v4305_v22, %v4304_v20  ;;  %v4307_v25 = vpop.f32.mrb[38].mxu0 }
0x114a   :  { %v4308_v27 = vpop.f32.mrb[39].mxu0 }
0x114b   :  { %v3007_v24 = vadd.f32 %v4306_v23, %v3006_v18 }
0x114d   :  { %v3017_v29 = vmul.f32 %v4032_v26, %v3007_v24 }
0x114f   :  { %v3023_v31 = vadd.f32 %v4033_v28, %v3017_v29 }
0x1151   :  { %v3024_v33 = vmax.f32 %v3023_v31, 0.0 }
0x1153   :  { %v3025_v34 = vpack.c.bf16 %v3024_v33, %v3024_v33 }
0x1155   :  { %4576 = vmatmul.mubr.msk.bf16.vlgmr.msra.gmra.mrb[40].mxu0 %vm413_vm2, %v3025_v34 }
0x1156   :  { %4595 = vmatprep.mubr.msk.bf16.mxu0 %vm4860_vm0, %v4859_v1  ;;  %4580 = vmatpush3.bf16.msra.mxu0 %v4823_v40 }
0x1157   :  { %4581 = vmatprep.subr.bf16.mxu0 %v4859_v1 }
0x115a   :  { %4582 = vmatpush3.bf16.msra.mxu0 %v4824_v41 }
0x115b   :  { %4583 = vmatprep.subr.bf16.mxu0 %v4859_v1 }
0x115e   :  { %4584 = vmatpush3.bf16.msra.mxu0 %v4825_v52 }
0x115f   :  { %4585 = vmatprep.subr.bf16.mxu0 %v4859_v1 }
0x1162   :  { %4586 = vmatpush3.bf16.msra.mxu0 %v4826_v53 }
0x1163   :  { %4587 = vmatprep.subr.bf16.mxu0 %v4859_v1 }
0x1164   :  { %v4340_v35 = vpop.f32.mrb[40].mxu1 }
0x1165   :  { %v4341_v36 = vpop.f32.mrb[41].mxu1 }
0x1166   :  { %v5894_v37 = vadd.f32 %v4341_v36, %v4340_v35  ;;  %v4343_v38 = vpop.f32.mrb[42].mxu1 }
0x1167   :  { %v4344_v39 = vpop.f32.mrb[43].mxu1 }
0x1168   :  { %v3415_v16 = vadd.f32 %v5894_v37, %v4047_v15 }
0x1228   :  { %v3096_v42 = vpop.f32.mrb[40].mxu0 }
0x1229   :  { %v3103_v43 = vrot.slane %v3096_v42, 7  ;;  %v3107_v44 = vrot.slane %v3096_v42, 1  ;;  %v4577_v45 = vpop.f32.mrb[41].mxu0 }
0x122a   :  { %v3099_v46 = vpop.f32.mrb[42].mxu0 }
0x122b   :  { %v4578_v47 = vpop.f32.mrb[43].mxu0  ;;  %v3109_v48 = vsel %vm470_vm4, %v3107_v44, 0.0  ;;  %v3105_v49 = vsel %vm460_vm3, 0.0, %v3103_v43 }
0x122c   :  { %v3110_v50 = vmul.f32 %v3109_v48, %v5094_v32  ;;  %v3106_v51 = vmul.f32 %v3105_v49, %v5068_v13  ;;  %v4827_v13 = vld [vmem:[%s5963_s9 + $0xa0] sm:$0xff]  }
0x122d   :  { %4588 = vmatpush3.bf16.msra.mxu0 %v4827_v13 }
0x122e   :  { %3117 = vrot.lane.b32.xlu1 %v3110_v50, %s4863_s27  ;;  %3112 = vrot.lane.b32.xlu0 %v3106_v51, %s4862_s23 }
0x122f   :  { %4589 = vmatprep.subr.bf16.mxu0 %v4859_v1 }
0x1231   :  { %4590 = vmatpush3.bf16.msra.mxu0 %v4828_v56 }
0x1232   :  { %4591 = vmatprep.subr.bf16.mxu0 %v4859_v1 }
0x1235   :  { %4592 = vmatpush3.bf16.msra.mxu0 %v4829_v58 }
0x1236   :  { %4593 = vmatprep.subr.bf16.mxu0 %v4859_v1 }
0x1239   :  { %4594 = vmatpush3.bf16.msra.mxu0 %v4830_v59 }
0x12a0   :  { %v3113_v32 = vpop.permute.xlu0 %3112  ;;  %v3118_v55 = vpop.permute.xlu1 %3117 }
0x12a1   :  { %v3115_v54 = vadd.f32 %v3113_v32, %v3096_v42 }
0x12a3   :  { %v3120_v57 = vadd.f32 %v3118_v55, %v3115_v54 }
0x12a5   :  { %3122 = vrot.lane.b32.xlu0 %v3120_v57, %s4866_s18 }
0x1317   :  { %v3123_v60 = vpop.permute.xlu0 %3122 }
0x1318   :  { %3125 = vst.msk [vmem:[#allocation2 + $0x8] sm:$0xf] %vm1373_vm10, %v3123_v60 }
0x131f   :  { %v3127_v61 = vld [vmem:[#allocation2 + $0x8] sm:$0xf] }
0x1320   :  { %v3146_v62 = vsel %vm3131_vm12, %v3127_v61, -inf  ;;  %v3168_v63 = vsel %vm3153_vm13, %v3127_v61, -inf }
0x1321   :  { %v3147_v0 = vrot.slane %v3146_v62, 4  ;;  %v3169_v2 = vrot.slane %v3168_v63, 4 }
0x1323   :  { %v3148_v3 = vmax.f32 %v3146_v62, %v3147_v0  ;;  %v3170_v4 = vmax.f32 %v3168_v63, %v3169_v2 }
0x1325   :  { %v3149_v5 = vrot.slane %v3148_v3, 2  ;;  %v3171_v6 = vrot.slane %v3170_v4, 2 }
0x1327   :  { %v3150_v7 = vmax.f32 %v3148_v3, %v3149_v5  ;;  %v3172_v8 = vmax.f32 %v3170_v4, %v3171_v6 }
0x1329   :  { %v3151_v9 = vrot.slane %v3150_v7, 1  ;;  %v3173_v10 = vrot.slane %v3172_v8, 1 }
0x132b   :  { %v3152_v1 = vmax.f32 %v3150_v7, %v3151_v9  ;;  %v3174_v11 = vmax.f32 %v3172_v8, %v3173_v10 }
0x132d   :  { %v3177_v12 = vsel %vm460_vm3, %v3152_v1, %v3174_v11 }
0x132e   :  { %v3180_v14 = vpack.c.bf16 %v3177_v12, %v3177_v12 }
0x1330   :  { %4596 = vmatmul.mubr.bf16.vlgmr.msra.gmra.mrb[44].mxu0 %v3180_v14 }
0x1403   :  { %v3454_v17 = vpop.f32.mrb[44].mxu0 }
0x1404   :  { %v3455_v18 = vadd.f32 %v3454_v17, %v3415_v16  ;;  %v4597_v30 = vpop.f32.mrb[45].mxu0 }
0x1405   :  { %v3457_v19 = vpop.f32.mrb[46].mxu0 }
0x1406   :  { %v3460_v20 = vsub.f32 0.0, %v3455_v18  ;;  %v4598_v21 = vpop.f32.mrb[47].mxu0 }
0x1408   :  { %v3461_v22 = vmul.f32 1.442695, %v3460_v20 }
0x140a   :  { %4831 = vpow2.f32 %v3461_v22 }
0x1414   :  { %v4832_v23 = vpop.eup %4831 }
0x1415   :  { %v3463_v25 = vadd.f32 1.0, %v4832_v23 }
0x1417   :  { %4833 = vrcp.f32 %v3463_v25 }
0x1421   :  { %v4834_v26 = vpop.eup %4833 }
0x1422   :  { %3467 = vst.msk [vmem:[#allocation3] sm:$0x3] %vm3466_vm14, %v4834_v26 }
0x1423   :  { %4846 = shalt.err (!%p4843_p4)
}
0x1424   :  { %s4847_s13 = scalar_lea.hbm %s5965_s11, 32 }
0x1425   :  { %p4848_p5 = scmp.ne.s32.totalorder %s5965_s11, %s4847_s13  ;;  %p4851_p6 = scmp.lt.u32.totalorder %s4847_s13, %s5965_s11 }
0x1427   :  { %p4853_p7 = pnand %p4851_p6, %p4848_p5 }
0x1429   :  { %4856 = shalt.err (!%p4853_p7)
}
0x142a   :  { %3477 = dma.vmem_to_hbm [thread:$0]  %s3475_s19, 32, %s5965_s11, [#allocation4]  }
0x142b   :  { %4857 = dma.done.wait [#allocation4], 32  }
0x142c   :  { %4858 = vsyncadd [#allocation4], 4294967264 }
0x142d   :  { %3481 = vsyncpa [#allocation4], 1 }

</bundles_post_ra>
